<compile_context>
chip_gen: v7x
topology: tpu7x:2x2x1
jax: 0.10.0
libtpu: 0.0.40
codegen_flags: <defaults>
</compile_context>

<pallas_src>
import jax
import jax.numpy as jnp
from jax.experimental import pallas as pl
from jax.experimental.pallas import tpu as pltpu

TOTAL_FEATURES = 768
EMBED_DIM = 256
HIDDEN_DIM = 32
B_TILE = 256   # default batch rows per grid step (clamped down for small B)


def nnue_kernel(idx_ref, emb_ref, w1_ref, b1_ref, w2_ref, b2_ref,
                w3_ref, b3_ref, out_ref):
    # idx_ref : (K, Bt) int32         -- indices, batch on the lane axis
    # emb_ref : (E, F)  table^T       -- resident (constant index_map), bf16/f32
    # w*_ref  : transposed weights    -- resident, same dtype as the table
    # b*_ref  : (N, 1) f32            -- resident biases
    # out_ref : (1, Bt) f32           -- lane-dense output block
    idx = idx_ref[...]
    K, Bt = idx.shape
    E, F = emb_ref.shape

    # EmbeddingBag(mode='sum') as multi-hot counts (exact even with duplicate
    # indices).  Single hoisted 2-D iota; statically-unrolled loop over the K
    # active features accumulating into ONE (F, Bt) f32 buffer (no 3-D temp).
    f_iota = jax.lax.broadcasted_iota(jnp.int32, (F, Bt), 0)   # hoisted out of the K loop
    multihot = jnp.zeros((F, Bt), jnp.float32)
    for k in range(K):                                          # K is static (trace-time)
        multihot = multihot + (f_iota == idx[k, :][None, :]).astype(jnp.float32)
    # Cast ONCE to the table dtype (counts <= K=8 are exact in bf16).
    multihot = multihot.astype(emb_ref.dtype)

    # Layer 1 on the MXU: (E, F) @ (F, Bt) -> (E, Bt), f32 accumulation.
    x = jnp.dot(emb_ref[...], multihot, preferred_element_type=jnp.float32)

    # Tail layers: cast activations once to the resident weight dtype, keep f32
    # accumulation and f32 bias adds.  Dropout is identity in eval mode.
    # TODO(synk): training-mode dropout would need pltpu.prng_seed/prng_random_bits.
    xw = x.astype(w1_ref.dtype)
    h1 = jnp.dot(w1_ref[...], xw, preferred_element_type=jnp.float32) + b1_ref[...]
    h1 = jnp.maximum(h1, 0.0)

    h1w = h1.astype(w2_ref.dtype)
    h2 = jnp.dot(w2_ref[...], h1w, preferred_element_type=jnp.float32) + b2_ref[...]
    h2 = jnp.maximum(h2, 0.0)

    # Output layer -> (1, Bt), already lane-dense.
    h2w = h2.astype(w3_ref.dtype)
    out_ref[...] = (jnp.dot(w3_ref[...], h2w, preferred_element_type=jnp.float32)
                    + b3_ref[...])


def _round_up(x, m):
    return ((x + m - 1) // m) * m


def nnue_forward(features_indices, params, *, block_b=B_TILE,
                 table_dtype=jnp.bfloat16):
    """features_indices: [B, K] int32 with values in [0, TOTAL_FEATURES)."""
    emb, w1, b1, w2, b2, w3, b3 = params
    B, K = features_indices.shape

    # Lane-aligned batch tile, clamped so tiny batches don't pad to 256+.
    bt = min(_round_up(block_b, 128), _round_up(B, 128))
    n_tiles = pl.cdiv(B, bt)
    B_pad = n_tiles * bt

    idx = features_indices.astype(jnp.int32)
    if B_pad != B:
        # Padded rows are computed but sliced off below; pad value is irrelevant.
        idx = jnp.pad(idx, ((0, B_pad - B), (0, 0)))
    idx_t = idx.T                                    # (K, B_pad): batch on lanes

    # Transposed parameter layout so the kernel works in [feature, batch] form.
    embT = emb.T.astype(table_dtype)                 # (E, F) resident table
    w1T = w1.T.astype(table_dtype)                   # (32, 256)
    w2T = w2.T.astype(table_dtype)                   # (16, 32)
    w3T = w3.T.astype(table_dtype)                   # (1, 16)
    b1T = b1.reshape(-1, 1).astype(jnp.float32)      # (32, 1)
    b2T = b2.reshape(-1, 1).astype(jnp.float32)      # (16, 1)
    b3T = b3.reshape(-1, 1).astype(jnp.float32)      # (1, 1)

    const = lambda i: (0, 0)   # resident across all batch tiles

    out = pl.pallas_call(
        nnue_kernel,
        out_shape=jax.ShapeDtypeStruct((1, B_pad), jnp.float32),
        grid=(n_tiles,),
        in_specs=[
            pl.BlockSpec((K, bt), lambda i: (0, i)),        # indices advance with grid
            pl.BlockSpec(embT.shape, const),                # table: VMEM-resident
            pl.BlockSpec(w1T.shape, const),
            pl.BlockSpec(b1T.shape, const),
            pl.BlockSpec(w2T.shape, const),
            pl.BlockSpec(b2T.shape, const),
            pl.BlockSpec(w3T.shape, const),
            pl.BlockSpec(b3T.shape, const),
        ],
        out_specs=pl.BlockSpec((1, bt), lambda i: (0, i)),
        compiler_params=pltpu.CompilerParams(
            dimension_semantics=("parallel",),   # shard batch tiles across TCs (v7x)
        ),
    )(idx_t, embT, w1T, b1T, w2T, b2T, w3T, b3T)

    return out[0, :B].reshape(B, 1)


def init_params(key, feature_dim=TOTAL_FEATURES, embed_dim=EMBED_DIM,
                hidden_dim=HIDDEN_DIM):
    ks = jax.random.split(key, 7)
    emb = jax.random.normal(ks[0], (feature_dim, embed_dim), jnp.float32) * 0.05
    w1 = jax.random.normal(ks[1], (embed_dim, hidden_dim), jnp.float32) * 0.05
    b1 = jax.random.normal(ks[2], (1, hidden_dim), jnp.float32) * 0.01
    w2 = jax.random.normal(ks[3], (hidden_dim, hidden_dim // 2), jnp.float32) * 0.05
    b2 = jax.random.normal(ks[4], (1, hidden_dim // 2), jnp.float32) * 0.01
    w3 = jax.random.normal(ks[5], (hidden_dim // 2, 1), jnp.float32) * 0.05
    b3 = jax.random.normal(ks[6], (1, 1), jnp.float32) * 0.01
    return (emb, w1, b1, w2, b2, w3, b3)


def nnue_reference(features_indices, params):
    """Plain-JAX f32 reference mirroring the PyTorch forward (eval mode)."""
    emb, w1, b1, w2, b2, w3, b3 = params
    x = jnp.sum(emb[features_indices], axis=1)          # EmbeddingBag sum
    x = jnp.maximum(x @ w1 + b1, 0.0)
    x = jnp.maximum(x @ w2 + b2, 0.0)
    return x @ w3 + b3


if __name__ == "__main__":
    key = jax.random.PRNGKey(0)
    k_param, k_idx1, k_idx2 = jax.random.split(key, 3)
    params = init_params(k_param)

    # Small case: 8 positions, 8 active features per bag (single 128-wide tile).
    idx_small = jax.random.randint(k_idx1, (8, 8), 0, TOTAL_FEATURES,
                                   dtype=jnp.int32)
    out_small = jax.block_until_ready(nnue_forward(idx_small, params))
    ref_small = nnue_reference(idx_small, params)
    assert out_small.shape == (8, 1)
    # bf16-resident table + bf16 tail weights/activations -> relaxed tolerance.
    assert jnp.allclose(out_small, ref_small, rtol=2e-2, atol=1e-2), (
        float(jnp.max(jnp.abs(out_small - ref_small))))

    # Larger, non-multiple-of-tile batch: exercises the batch grid (2 tiles of 256)
    # + padding path.
    idx_big = jax.random.randint(k_idx2, (300, 8), 0, TOTAL_FEATURES,
                                 dtype=jnp.int32)
    out_big = jax.block_until_ready(nnue_forward(idx_big, params))
    ref_big = nnue_reference(idx_big, params)
    assert out_big.shape == (300, 1)
    assert jnp.allclose(out_big, ref_big, rtol=2e-2, atol=1e-2), (
        float(jnp.max(jnp.abs(out_big - ref_big))))

    # Exactness check with everything resident in f32 (no bf16 rounding anywhere).
    out_exact = jax.block_until_ready(
        nnue_forward(idx_small, params, table_dtype=jnp.float32))
    assert jnp.allclose(out_exact, ref_small, rtol=1e-5, atol=1e-5)

    print("KERNEL_OK")
</pallas_src>

<mosaic_0001>
module attributes {stable_mosaic.version = 11 : i64} {
  func.func @nnue_kernel(%arg0: i32, %arg1: memref<8x128xi32, #tpu.memory_space<vmem>>, %arg2: memref<256x768xbf16, #tpu.memory_space<vmem>>, %arg3: memref<32x256xbf16, #tpu.memory_space<vmem>>, %arg4: memref<32x1xf32, #tpu.memory_space<vmem>>, %arg5: memref<16x32xbf16, #tpu.memory_space<vmem>>, %arg6: memref<16x1xf32, #tpu.memory_space<vmem>>, %arg7: memref<1x16xbf16, #tpu.memory_space<vmem>>, %arg8: memref<1x1xf32, #tpu.memory_space<vmem>>, %arg9: memref<1x128xf32, #tpu.memory_space<vmem>>) attributes {dimension_semantics = [#tpu.dimension_semantics<parallel>], iteration_bounds = array<i64: 1>, scalar_prefetch = 0 : i64, scratch_operands = 0 : i64, tpu.core_type = #tpu.core_type<tc>, window_params = [{transform_indices = @transform_0, window_bounds = array<i64: 8, 128>}, {pipeline_mode = #tpu.pipeline_mode<synchronous>, transform_indices = @transform_1, window_bounds = array<i64: 256, 768>}, {pipeline_mode = #tpu.pipeline_mode<synchronous>, transform_indices = @transform_2, window_bounds = array<i64: 32, 256>}, {pipeline_mode = #tpu.pipeline_mode<synchronous>, transform_indices = @transform_3, window_bounds = array<i64: 32, 1>}, {pipeline_mode = #tpu.pipeline_mode<synchronous>, transform_indices = @transform_4, window_bounds = array<i64: 16, 32>}, {pipeline_mode = #tpu.pipeline_mode<synchronous>, transform_indices = @transform_5, window_bounds = array<i64: 16, 1>}, {pipeline_mode = #tpu.pipeline_mode<synchronous>, transform_indices = @transform_6, window_bounds = array<i64: 1, 16>}, {pipeline_mode = #tpu.pipeline_mode<synchronous>, transform_indices = @transform_7, window_bounds = array<i64: 1, 1>}, {transform_indices = @transform_8, window_bounds = array<i64: 1, 128>}]} {
    %c0 = arith.constant 0 : index
    %c0_0 = arith.constant 0 : index
    %0 = vector.load %arg1[%c0, %c0_0] : memref<8x128xi32, #tpu.memory_space<vmem>>, vector<8x128xi32>
    %1 = tpu.iota {dimensions = array<i32: 0>} : vector<768x128xi32>
    %cst = arith.constant 0.000000e+00 : f32
    %2 = vector.broadcast %cst : f32 to vector<768x128xf32>
    %3 = vector.extract_strided_slice %0 {offsets = [0, 0], sizes = [1, 128], strides = [1, 1]} : vector<8x128xi32> to vector<1x128xi32>
    %4 = vector.shape_cast %3 : vector<1x128xi32> to vector<128xi32>
    %5 = vector.shape_cast %4 : vector<128xi32> to vector<1x128xi32>
    %6 = vector.broadcast %5 : vector<1x128xi32> to vector<768x128xi32>
    %7 = arith.cmpi eq, %1, %6 : vector<768x128xi32>
    %8 = arith.extui %7 : vector<768x128xi1> to vector<768x128xi32>
    %9 = arith.sitofp %8 : vector<768x128xi32> to vector<768x128xf32>
    %10 = arith.addf %2, %9 : vector<768x128xf32>
    %11 = vector.extract_strided_slice %0 {offsets = [1, 0], sizes = [1, 128], strides = [1, 1]} : vector<8x128xi32> to vector<1x128xi32>
    %12 = vector.shape_cast %11 : vector<1x128xi32> to vector<128xi32>
    %13 = vector.shape_cast %12 : vector<128xi32> to vector<1x128xi32>
    %14 = vector.broadcast %13 : vector<1x128xi32> to vector<768x128xi32>
    %15 = arith.cmpi eq, %1, %14 : vector<768x128xi32>
    %16 = arith.extui %15 : vector<768x128xi1> to vector<768x128xi32>
    %17 = arith.sitofp %16 : vector<768x128xi32> to vector<768x128xf32>
    %18 = arith.addf %10, %17 : vector<768x128xf32>
    %19 = vector.extract_strided_slice %0 {offsets = [2, 0], sizes = [1, 128], strides = [1, 1]} : vector<8x128xi32> to vector<1x128xi32>
    %20 = vector.shape_cast %19 : vector<1x128xi32> to vector<128xi32>
    %21 = vector.shape_cast %20 : vector<128xi32> to vector<1x128xi32>
    %22 = vector.broadcast %21 : vector<1x128xi32> to vector<768x128xi32>
    %23 = arith.cmpi eq, %1, %22 : vector<768x128xi32>
    %24 = arith.extui %23 : vector<768x128xi1> to vector<768x128xi32>
    %25 = arith.sitofp %24 : vector<768x128xi32> to vector<768x128xf32>
    %26 = arith.addf %18, %25 : vector<768x128xf32>
    %27 = vector.extract_strided_slice %0 {offsets = [3, 0], sizes = [1, 128], strides = [1, 1]} : vector<8x128xi32> to vector<1x128xi32>
    %28 = vector.shape_cast %27 : vector<1x128xi32> to vector<128xi32>
    %29 = vector.shape_cast %28 : vector<128xi32> to vector<1x128xi32>
    %30 = vector.broadcast %29 : vector<1x128xi32> to vector<768x128xi32>
    %31 = arith.cmpi eq, %1, %30 : vector<768x128xi32>
    %32 = arith.extui %31 : vector<768x128xi1> to vector<768x128xi32>
    %33 = arith.sitofp %32 : vector<768x128xi32> to vector<768x128xf32>
    %34 = arith.addf %26, %33 : vector<768x128xf32>
    %35 = vector.extract_strided_slice %0 {offsets = [4, 0], sizes = [1, 128], strides = [1, 1]} : vector<8x128xi32> to vector<1x128xi32>
    %36 = vector.shape_cast %35 : vector<1x128xi32> to vector<128xi32>
    %37 = vector.shape_cast %36 : vector<128xi32> to vector<1x128xi32>
    %38 = vector.broadcast %37 : vector<1x128xi32> to vector<768x128xi32>
    %39 = arith.cmpi eq, %1, %38 : vector<768x128xi32>
    %40 = arith.extui %39 : vector<768x128xi1> to vector<768x128xi32>
    %41 = arith.sitofp %40 : vector<768x128xi32> to vector<768x128xf32>
    %42 = arith.addf %34, %41 : vector<768x128xf32>
    %43 = vector.extract_strided_slice %0 {offsets = [5, 0], sizes = [1, 128], strides = [1, 1]} : vector<8x128xi32> to vector<1x128xi32>
    %44 = vector.shape_cast %43 : vector<1x128xi32> to vector<128xi32>
    %45 = vector.shape_cast %44 : vector<128xi32> to vector<1x128xi32>
    %46 = vector.broadcast %45 : vector<1x128xi32> to vector<768x128xi32>
    %47 = arith.cmpi eq, %1, %46 : vector<768x128xi32>
    %48 = arith.extui %47 : vector<768x128xi1> to vector<768x128xi32>
    %49 = arith.sitofp %48 : vector<768x128xi32> to vector<768x128xf32>
    %50 = arith.addf %42, %49 : vector<768x128xf32>
    %51 = vector.extract_strided_slice %0 {offsets = [6, 0], sizes = [1, 128], strides = [1, 1]} : vector<8x128xi32> to vector<1x128xi32>
    %52 = vector.shape_cast %51 : vector<1x128xi32> to vector<128xi32>
    %53 = vector.shape_cast %52 : vector<128xi32> to vector<1x128xi32>
    %54 = vector.broadcast %53 : vector<1x128xi32> to vector<768x128xi32>
    %55 = arith.cmpi eq, %1, %54 : vector<768x128xi32>
    %56 = arith.extui %55 : vector<768x128xi1> to vector<768x128xi32>
    %57 = arith.sitofp %56 : vector<768x128xi32> to vector<768x128xf32>
    %58 = arith.addf %50, %57 : vector<768x128xf32>
    %59 = vector.extract_strided_slice %0 {offsets = [7, 0], sizes = [1, 128], strides = [1, 1]} : vector<8x128xi32> to vector<1x128xi32>
    %60 = vector.shape_cast %59 : vector<1x128xi32> to vector<128xi32>
    %61 = vector.shape_cast %60 : vector<128xi32> to vector<1x128xi32>
    %62 = vector.broadcast %61 : vector<1x128xi32> to vector<768x128xi32>
    %63 = arith.cmpi eq, %1, %62 : vector<768x128xi32>
    %64 = arith.extui %63 : vector<768x128xi1> to vector<768x128xi32>
    %65 = arith.sitofp %64 : vector<768x128xi32> to vector<768x128xf32>
    %66 = arith.addf %58, %65 : vector<768x128xf32>
    %67 = arith.truncf %66 : vector<768x128xf32> to vector<768x128xbf16>
    %c0_1 = arith.constant 0 : index
    %c0_2 = arith.constant 0 : index
    %68 = vector.load %arg2[%c0_1, %c0_2] : memref<256x768xbf16, #tpu.memory_space<vmem>>, vector<256x768xbf16>
    %cst_3 = arith.constant dense<0.000000e+00> : vector<256x128xf32>
    %69 = tpu.matmul %68, %67, %cst_3 {dimension_numbers = #tpu.dot_dimension_numbers<[1], [0], [0], [1], [0, 0, 1, 1], [], []>} : vector<256x768xbf16>, vector<768x128xbf16>, vector<256x128xf32> -> vector<256x128xf32>
    %70 = arith.truncf %69 : vector<256x128xf32> to vector<256x128xbf16>
    %c0_4 = arith.constant 0 : index
    %c0_5 = arith.constant 0 : index
    %71 = vector.load %arg3[%c0_4, %c0_5] : memref<32x256xbf16, #tpu.memory_space<vmem>>, vector<32x256xbf16>
    %cst_6 = arith.constant dense<0.000000e+00> : vector<32x128xf32>
    %72 = tpu.matmul %71, %70, %cst_6 {dimension_numbers = #tpu.dot_dimension_numbers<[1], [0], [0], [1], [0, 0, 1, 1], [], []>} : vector<32x256xbf16>, vector<256x128xbf16>, vector<32x128xf32> -> vector<32x128xf32>
    %c0_7 = arith.constant 0 : index
    %c0_8 = arith.constant 0 : index
    %73 = vector.load %arg4[%c0_7, %c0_8] : memref<32x1xf32, #tpu.memory_space<vmem>>, vector<32x1xf32>
    %74 = vector.broadcast %73 : vector<32x1xf32> to vector<32x128xf32>
    %75 = arith.addf %72, %74 : vector<32x128xf32>
    %cst_9 = arith.constant 0.000000e+00 : f32
    %76 = vector.broadcast %cst_9 : f32 to vector<32x128xf32>
    %77 = arith.maximumf %75, %76 : vector<32x128xf32>
    %78 = arith.truncf %77 : vector<32x128xf32> to vector<32x128xbf16>
    %c0_10 = arith.constant 0 : index
    %c0_11 = arith.constant 0 : index
    %79 = vector.load %arg5[%c0_10, %c0_11] : memref<16x32xbf16, #tpu.memory_space<vmem>>, vector<16x32xbf16>
    %cst_12 = arith.constant dense<0.000000e+00> : vector<16x128xf32>
    %80 = tpu.matmul %79, %78, %cst_12 {dimension_numbers = #tpu.dot_dimension_numbers<[1], [0], [0], [1], [0, 0, 1, 1], [], []>} : vector<16x32xbf16>, vector<32x128xbf16>, vector<16x128xf32> -> vector<16x128xf32>
    %c0_13 = arith.constant 0 : index
    %c0_14 = arith.constant 0 : index
    %81 = vector.load %arg6[%c0_13, %c0_14] : memref<16x1xf32, #tpu.memory_space<vmem>>, vector<16x1xf32>
    %82 = vector.broadcast %81 : vector<16x1xf32> to vector<16x128xf32>
    %83 = arith.addf %80, %82 : vector<16x128xf32>
    %cst_15 = arith.constant 0.000000e+00 : f32
    %84 = vector.broadcast %cst_15 : f32 to vector<16x128xf32>
    %85 = arith.maximumf %83, %84 : vector<16x128xf32>
    %86 = arith.truncf %85 : vector<16x128xf32> to vector<16x128xbf16>
    %c0_16 = arith.constant 0 : index
    %c0_17 = arith.constant 0 : index
    %87 = vector.load %arg7[%c0_16, %c0_17] : memref<1x16xbf16, #tpu.memory_space<vmem>>, vector<1x16xbf16>
    %cst_18 = arith.constant dense<0.000000e+00> : vector<1x128xf32>
    %88 = tpu.matmul %87, %86, %cst_18 {dimension_numbers = #tpu.dot_dimension_numbers<[1], [0], [0], [1], [0, 0, 1, 1], [], []>} : vector<1x16xbf16>, vector<16x128xbf16>, vector<1x128xf32> -> vector<1x128xf32>
    %c0_19 = arith.constant 0 : index
    %c0_20 = arith.constant 0 : index
    %89 = vector.load %arg8[%c0_19, %c0_20] : memref<1x1xf32, #tpu.memory_space<vmem>>, vector<1x1xf32>
    %90 = vector.broadcast %89 : vector<1x1xf32> to vector<1x128xf32>
    %91 = arith.addf %88, %90 : vector<1x128xf32>
    %c0_21 = arith.constant 0 : index
    %c0_22 = arith.constant 0 : index
    %92 = vector.load %arg9[%c0_21, %c0_22] : memref<1x128xf32, #tpu.memory_space<vmem>>, vector<1x128xf32>
    tpu.vector_store %arg9[%c0_21, %c0_22], %91 {strides = array<i32>} : memref<1x128xf32, #tpu.memory_space<vmem>>, vector<1x128xf32>,
    return
  }
  func.func @transform_0(%arg0: i32) -> (i32, i32) {
    %c0_i32 = arith.constant 0 : i32
    %c0_i32_0 = arith.constant 0 : i32
    return %c0_i32, %arg0 : i32, i32
  }
  func.func @transform_1(%arg0: i32) -> (i32, i32) {
    %c0_i32 = arith.constant 0 : i32
    %c0_i32_0 = arith.constant 0 : i32
    %c0_i32_1 = arith.constant 0 : i32
    return %c0_i32, %c0_i32_0 : i32, i32
  }
  func.func @transform_2(%arg0: i32) -> (i32, i32) {
    %c0_i32 = arith.constant 0 : i32
    %c0_i32_0 = arith.constant 0 : i32
    %c0_i32_1 = arith.constant 0 : i32
    return %c0_i32, %c0_i32_0 : i32, i32
  }
  func.func @transform_3(%arg0: i32) -> (i32, i32) {
    %c0_i32 = arith.constant 0 : i32
    %c0_i32_0 = arith.constant 0 : i32
    %c0_i32_1 = arith.constant 0 : i32
    return %c0_i32, %c0_i32_0 : i32, i32
  }
  func.func @transform_4(%arg0: i32) -> (i32, i32) {
    %c0_i32 = arith.constant 0 : i32
    %c0_i32_0 = arith.constant 0 : i32
    %c0_i32_1 = arith.constant 0 : i32
    return %c0_i32, %c0_i32_0 : i32, i32
  }
  func.func @transform_5(%arg0: i32) -> (i32, i32) {
    %c0_i32 = arith.constant 0 : i32
    %c0_i32_0 = arith.constant 0 : i32
    %c0_i32_1 = arith.constant 0 : i32
    return %c0_i32, %c0_i32_0 : i32, i32
  }
  func.func @transform_6(%arg0: i32) -> (i32, i32) {
    %c0_i32 = arith.constant 0 : i32
    %c0_i32_0 = arith.constant 0 : i32
    %c0_i32_1 = arith.constant 0 : i32
    return %c0_i32, %c0_i32_0 : i32, i32
  }
  func.func @transform_7(%arg0: i32) -> (i32, i32) {
    %c0_i32 = arith.constant 0 : i32
    %c0_i32_0 = arith.constant 0 : i32
    %c0_i32_1 = arith.constant 0 : i32
    return %c0_i32, %c0_i32_0 : i32, i32
  }
  func.func @transform_8(%arg0: i32) -> (i32, i32) {
    %c0_i32 = arith.constant 0 : i32
    %c0_i32_0 = arith.constant 0 : i32
    return %c0_i32, %arg0 : i32, i32
  }
}

</mosaic_0001>

<bundles_post_ra>
// kernel: tpu_custom_call.1
= control target key start
LH: loop header
LB: loop body
LE: loop exit
PB: predicated region body
PF: predicated region fallthrough
CT: control target
= control target key end

     0   :  { %s8611_s0 = inlined_call_operand.vmem [shape: s32[8,128], index: 0, kind: input, shape index: {}]   ;;  %s8612_s1 = inlined_call_operand.hbm [shape: bf16[256,768], index: 1, kind: input, shape index: {}]   ;;  %s8613_s2 = inlined_call_operand.vmem [shape: bf16[32,256], index: 2, kind: input, shape index: {}]   ;;  %s8614_s3 = inlined_call_operand.vmem [shape: f32[32,1], index: 3, kind: input, shape index: {}]   ;;  %s8615_s4 = inlined_call_operand.vmem [shape: bf16[16,32], index: 4, kind: input, shape index: {}]   ;;  %s8616_s5 = inlined_call_operand.vmem [shape: f32[16,1], index: 5, kind: input, shape index: {}]   ;;  %s8617_s6 = inlined_call_operand.vmem [shape: bf16[1,16], index: 6, kind: input, shape index: {}]   ;;  %s8618_s7 = inlined_call_operand.<no memory space> [shape: f32[1,1], index: 7, kind: input, shape index: {}]   ;;  %s8619_s8 = inlined_call_operand.hbm [shape: f32[1,128], index: 8, kind: output, shape index: {}]  }
   0x1   :  { %v13_v0 = vstv %s8618_s7 }
   0x2   :  { %14 = vst [vmem:[#allocation2] sm:$0x1] %v13_v0 }
   0x3   :  { %15 = vsyncpa [#allocation4], 0 }
   0x4   :  { %16 = vsyncpa [#allocation5], 0  ;;  %s6091_s29 = smov [#allocation3]   ;;  %s6043_s11 = scalar_lea.hbm %s8612_s1, 12288 }
   0x5   :  { %s24_s30 = sshll.u32 %s6091_s29, 4  ;;  %p6044_p0 = scmp.ne.s32.totalorder %s8612_s1, %s6043_s11  ;;  %s25_s30 = int_to_ptr.vmem [resolvable:$true] %s24_s30 }
   0x6   :  { %p6047_p1 = scmp.lt.u32.totalorder %s6043_s11, %s8612_s1 }
   0x8   :  { %p6049_p2 = pnand %p6047_p1, %p6044_p0 }
   0xa   :  { %6052 = shalt.err (!%p6049_p2)
}
   0xb   :  { %s6053_s7 = scalar_lea.vmem %s25_s30, 12288  ;;  %p6058_p4 = scmp.lt.s32.totalorder %s25_s30, %s25_s30 }
   0xc   :  { %p6054_p3 = scmp.ne.s32.totalorder %s25_s30, %s6053_s7  ;;  %p6059_p5 = scmp.lt.s32.totalorder %s6053_s7, %s6053_s7 }
   0xe   :  { %p6060_p6 = por %p6059_p5, %p6058_p4 }
  0x10   :  { %p6061_p7 = pnand %p6060_p6, %p6054_p3 }
  0x12   :  { %6064 = shalt.err (!%p6061_p7)
}
  0x13   :  { %s6092_s16 = smov 384   ;;  %s6093_s17 = smov 24  }
  0x14   :  { %30 = dma.hbm_to_vmem [thread:$0]  %s8612_s1, 12288, %s25_s30, [#allocation4], %s6092_s16, %s6092_s16, %s6093_s17  }
  0x15   :  { %6087 = dma.done.wait [#allocation4], 12288  }
  0x16   :  { %6088 = vsyncadd [#allocation4], 4294955008  ;;  %v48_v1 = vlaneseq  ;;  %v47_v15 = vld [vmem:[%s8611_s0] sm:$0xff]  ;;  %v6094_v28 = vmov 0.0   ;;  %s6097_s17 = smov [#allocation6]  }
  0x17   :  { %s4604_s18 = sshll.u32 %s6097_s17, 4  ;;  %s4605_s18 = int_to_ptr.vmem [resolvable:$true] %s4604_s18 }
  0x18   :  { %v6158_v2 = vshrl.u32 %v48_v1, 7  ;;  %s6065_s19 = scalar_lea.vmem %s4605_s18, 16  ;;  %s6069_s1 = scalar_lea.vmem %s4605_s18, 32 }
  0x19   :  { %p6066_p8 = scmp.ne.s32.totalorder %s4605_s18, %s6065_s19  ;;  %p6070_p9 = scmp.lt.s32.totalorder %s4605_s18, %s4605_s18 }
  0x1a   :  { %v6161_v3 = vadd.s32 128, %v6158_v2  ;;  %v6164_v4 = vadd.s32 136, %v6158_v2  ;;  %v147_v5 = vsub.s32 0, %v6158_v2  ;;  %v535_v6 = vsub.s32 1, %v6158_v2  ;;  %p6071_p10 = scmp.lt.s32.totalorder %s6069_s1, %s6065_s19 }
  0x1b   :  { %v923_v7 = vsub.s32 2, %v6158_v2  ;;  %v1311_v8 = vsub.s32 3, %v6158_v2  ;;  %v1699_v9 = vsub.s32 4, %v6158_v2  ;;  %v2087_v10 = vsub.s32 5, %v6158_v2 }
  0x1c   :  { %v2475_v11 = vsub.s32 6, %v6158_v2  ;;  %v2863_v12 = vsub.s32 7, %v6158_v2  ;;  %v6175_v13 = vadd.s32 8, %v6158_v2  ;;  %v6178_v14 = vadd.s32 144, %v6158_v2  ;;  %p6072_p11 = por %p6071_p10, %p6070_p9 }
  0x1d   :  { %v6184_v16 = vadd.s32 152, %v6158_v2  ;;  %v6187_v17 = vadd.s32 16, %v6158_v2  ;;  %v6190_v18 = vadd.s32 24, %v6158_v2  ;;  %v6193_v19 = vadd.s32 160, %v6158_v2 }
  0x1e   :  { %v6197_v20 = vrot.slane %v47_v15, %v147_v5  ;;  %v6199_v21 = vrot.slane %v47_v15, %v535_v6  ;;  %v6201_v22 = vrot.slane %v47_v15, %v923_v7  ;;  %v6203_v23 = vrot.slane %v47_v15, %v1311_v8  ;;  %p6073_p12 = pnand %p6072_p11, %p6066_p8 }
  0x1f   :  { %v6205_v24 = vrot.slane %v47_v15, %v1699_v9  ;;  %v6207_v25 = vrot.slane %v47_v15, %v2087_v10  ;;  %v6209_v26 = vrot.slane %v47_v15, %v2475_v11  ;;  %v6211_v27 = vrot.slane %v47_v15, %v2863_v12 }
  0x20   :  { %vm165_vm0 = vcmp.eq.s32.totalorder %v6161_v3, %v6197_v20  ;;  %vm166_vm1 = vcmp.eq.s32.totalorder %v6164_v4, %v6197_v20  ;;  %vm553_vm2 = vcmp.eq.s32.totalorder %v6161_v3, %v6199_v21  ;;  %vm554_vm3 = vcmp.eq.s32.totalorder %v6164_v4, %v6199_v21 }
  0x21   :  { %v4629_v29 = vsel %vm165_vm0, 1.0, %v6094_v28  ;;  %v4630_v30 = vsel %vm166_vm1, 1.0, %v6094_v28  ;;  %v4725_v31 = vsel %vm553_vm2, 1.0, %v6094_v28  ;;  %v4726_v32 = vsel %vm554_vm3, 1.0, %v6094_v28 }
  0x22   :  { %v841_v33 = vadd.f32 %v4725_v31, %v4629_v29  ;;  %v842_v34 = vadd.f32 %v4726_v32, %v4630_v30  ;;  %vm941_vm4 = vcmp.eq.s32.totalorder %v6161_v3, %v6201_v22  ;;  %vm942_vm5 = vcmp.eq.s32.totalorder %v6164_v4, %v6201_v22 }
  0x23   :  { %v4821_v35 = vsel %vm941_vm4, 1.0, %v6094_v28  ;;  %v4822_v36 = vsel %vm942_vm5, 1.0, %v6094_v28  ;;  %vm1329_vm6 = vcmp.eq.s32.totalorder %v6161_v3, %v6203_v23  ;;  %vm1330_vm7 = vcmp.eq.s32.totalorder %v6164_v4, %v6203_v23 }
  0x24   :  { %v1229_v37 = vadd.f32 %v4821_v35, %v841_v33  ;;  %v1230_v38 = vadd.f32 %v4822_v36, %v842_v34  ;;  %v4917_v39 = vsel %vm1329_vm6, 1.0, %v6094_v28  ;;  %v4918_v40 = vsel %vm1330_vm7, 1.0, %v6094_v28 }
  0x25   :  { %vm1717_vm8 = vcmp.eq.s32.totalorder %v6161_v3, %v6205_v24  ;;  %vm1718_vm9 = vcmp.eq.s32.totalorder %v6164_v4, %v6205_v24  ;;  %vm2105_vm10 = vcmp.eq.s32.totalorder %v6161_v3, %v6207_v25  ;;  %vm2106_vm11 = vcmp.eq.s32.totalorder %v6164_v4, %v6207_v25 }
  0x26   :  { %v1617_v41 = vadd.f32 %v4917_v39, %v1229_v37  ;;  %v1618_v42 = vadd.f32 %v4918_v40, %v1230_v38  ;;  %v5013_v43 = vsel %vm1717_vm8, 1.0, %v6094_v28  ;;  %v5014_v44 = vsel %vm1718_vm9, 1.0, %v6094_v28 }
  0x27   :  { %v5109_v45 = vsel %vm2105_vm10, 1.0, %v6094_v28  ;;  %v5110_v46 = vsel %vm2106_vm11, 1.0, %v6094_v28  ;;  %vm2493_vm12 = vcmp.eq.s32.totalorder %v6161_v3, %v6209_v26  ;;  %vm2494_vm13 = vcmp.eq.s32.totalorder %v6164_v4, %v6209_v26 }
  0x28   :  { %v2005_v47 = vadd.f32 %v5013_v43, %v1617_v41  ;;  %v2006_v48 = vadd.f32 %v5014_v44, %v1618_v42  ;;  %v5205_v49 = vsel %vm2493_vm12, 1.0, %v6094_v28  ;;  %v5206_v50 = vsel %vm2494_vm13, 1.0, %v6094_v28 }
  0x29   :  { %vm2881_vm14 = vcmp.eq.s32.totalorder %v6161_v3, %v6211_v27  ;;  %vm2882_vm15 = vcmp.eq.s32.totalorder %v6164_v4, %v6211_v27  ;;  %vm149_vm0 = vcmp.eq.s32.totalorder %v6158_v2, %v6197_v20  ;;  %vm150_vm1 = vcmp.eq.s32.totalorder %v6175_v13, %v6197_v20 }
  0x2a   :  { %v2393_v51 = vadd.f32 %v5109_v45, %v2005_v47  ;;  %v2394_v52 = vadd.f32 %v5110_v46, %v2006_v48  ;;  %v5301_v53 = vsel %vm2881_vm14, 1.0, %v6094_v28  ;;  %v5302_v54 = vsel %vm2882_vm15, 1.0, %v6094_v28 }
  0x2b   :  { %v4613_v55 = vsel %vm149_vm0, 1.0, %v6094_v28  ;;  %v4614_v56 = vsel %vm150_vm1, 1.0, %v6094_v28  ;;  %vm537_vm2 = vcmp.eq.s32.totalorder %v6158_v2, %v6199_v21  ;;  %vm538_vm3 = vcmp.eq.s32.totalorder %v6175_v13, %v6199_v21 }
  0x2c   :  { %v2781_v57 = vadd.f32 %v5205_v49, %v2393_v51  ;;  %v2782_v58 = vadd.f32 %v5206_v50, %v2394_v52  ;;  %v4709_v59 = vsel %vm537_vm2, 1.0, %v6094_v28  ;;  %v4710_v60 = vsel %vm538_vm3, 1.0, %v6094_v28 }
  0x2d   :  { %v825_v61 = vadd.f32 %v4709_v59, %v4613_v55  ;;  %v826_v62 = vadd.f32 %v4710_v60, %v4614_v56  ;;  %vm925_vm4 = vcmp.eq.s32.totalorder %v6158_v2, %v6201_v22  ;;  %vm926_vm5 = vcmp.eq.s32.totalorder %v6175_v13, %v6201_v22 }
  0x2e   :  { %v3169_v63 = vadd.f32 %v5301_v53, %v2781_v57  ;;  %v3170_v0 = vadd.f32 %v5302_v54, %v2782_v58  ;;  %v4805_v1 = vsel %vm925_vm4, 1.0, %v6094_v28  ;;  %v4806_v3 = vsel %vm926_vm5, 1.0, %v6094_v28 }
  0x2f   :  { %v1213_v4 = vadd.f32 %v4805_v1, %v825_v61  ;;  %v1214_v6 = vadd.f32 %v4806_v3, %v826_v62  ;;  %vm1313_vm6 = vcmp.eq.s32.totalorder %v6158_v2, %v6203_v23  ;;  %vm1314_vm7 = vcmp.eq.s32.totalorder %v6175_v13, %v6203_v23 }
  0x30   :  { %v3257_v7 = vpack.c.bf16 %v3170_v0, %v3169_v63  ;;  %v4901_v8 = vsel %vm1313_vm6, 1.0, %v6094_v28  ;;  %v4902_v9 = vsel %vm1314_vm7, 1.0, %v6094_v28  ;;  %vm1701_vm8 = vcmp.eq.s32.totalorder %v6158_v2, %v6205_v24 }
  0x31   :  { %v1601_v10 = vadd.f32 %v4901_v8, %v1213_v4  ;;  %v1602_v11 = vadd.f32 %v4902_v9, %v1214_v6  ;;  %vm1702_vm9 = vcmp.eq.s32.totalorder %v6175_v13, %v6205_v24  ;;  %v4997_v12 = vsel %vm1701_vm8, 1.0, %v6094_v28 }
  0x32   :  { %5484 = vmatprep.subr.bf16.mxu0 %v3257_v7  ;;  %5867 = vmatprep.subr.bf16.mxu1 %v3257_v7  ;;  %v4998_v15 = vsel %vm1702_vm9, 1.0, %v6094_v28  ;;  %vm2089_vm10 = vcmp.eq.s32.totalorder %v6158_v2, %v6207_v25  ;;  %vm2090_vm11 = vcmp.eq.s32.totalorder %v6175_v13, %v6207_v25  ;;  %vm2477_vm12 = vcmp.eq.s32.totalorder %v6158_v2, %v6209_v26 }
  0x33   :  { %v1989_v29 = vadd.f32 %v4997_v12, %v1601_v10  ;;  %v1990_v30 = vadd.f32 %v4998_v15, %v1602_v11  ;;  %v5093_v31 = vsel %vm2089_vm10, 1.0, %v6094_v28  ;;  %v5094_v32 = vsel %vm2090_vm11, 1.0, %v6094_v28 }
  0x34   :  { %vm2478_vm13 = vcmp.eq.s32.totalorder %v6175_v13, %v6209_v26  ;;  %v5189_v33 = vsel %vm2477_vm12, 1.0, %v6094_v28  ;;  %vm2865_vm14 = vcmp.eq.s32.totalorder %v6158_v2, %v6211_v27  ;;  %vm2866_vm15 = vcmp.eq.s32.totalorder %v6175_v13, %v6211_v27 }
  0x35   :  { %v2377_v34 = vadd.f32 %v5093_v31, %v1989_v29  ;;  %v2378_v35 = vadd.f32 %v5094_v32, %v1990_v30  ;;  %v5190_v36 = vsel %vm2478_vm13, 1.0, %v6094_v28  ;;  %v5285_v37 = vsel %vm2865_vm14, 1.0, %v6094_v28 }
  0x36   :  { %v5286_v38 = vsel %vm2866_vm15, 1.0, %v6094_v28  ;;  %vm167_vm0 = vcmp.eq.s32.totalorder %v6178_v14, %v6197_v20  ;;  %vm168_vm1 = vcmp.eq.s32.totalorder %v6184_v16, %v6197_v20  ;;  %vm555_vm2 = vcmp.eq.s32.totalorder %v6178_v14, %v6199_v21 }
  0x37   :  { %v2765_v39 = vadd.f32 %v5189_v33, %v2377_v34  ;;  %v2766_v40 = vadd.f32 %v5190_v36, %v2378_v35  ;;  %v4631_v13 = vsel %vm167_vm0, 1.0, %v6094_v28  ;;  %v4632_v41 = vsel %vm168_vm1, 1.0, %v6094_v28 }
  0x38   :  { %vm556_vm3 = vcmp.eq.s32.totalorder %v6184_v16, %v6199_v21  ;;  %v4727_v42 = vsel %vm555_vm2, 1.0, %v6094_v28  ;;  %vm943_vm4 = vcmp.eq.s32.totalorder %v6178_v14, %v6201_v22  ;;  %vm944_vm5 = vcmp.eq.s32.totalorder %v6184_v16, %v6201_v22 }
  0x39   :  { %v3153_v43 = vadd.f32 %v5285_v37, %v2765_v39  ;;  %v3154_v44 = vadd.f32 %v5286_v38, %v2766_v40  ;;  %v4728_v45 = vsel %vm556_vm3, 1.0, %v6094_v28  ;;  %v843_v46 = vadd.f32 %v4727_v42, %v4631_v13 }
  0x3a   :  { %v844_v47 = vadd.f32 %v4728_v45, %v4632_v41  ;;  %v4823_v48 = vsel %vm943_vm4, 1.0, %v6094_v28  ;;  %v4824_v49 = vsel %vm944_vm5, 1.0, %v6094_v28  ;;  %vm1331_vm6 = vcmp.eq.s32.totalorder %v6178_v14, %v6203_v23 }
  0x3b   :  { %v3249_v50 = vpack.c.bf16 %v3154_v44, %v3153_v43  ;;  %v1231_v51 = vadd.f32 %v4823_v48, %v843_v46  ;;  %vm1332_vm7 = vcmp.eq.s32.totalorder %v6184_v16, %v6203_v23  ;;  %v4919_v52 = vsel %vm1331_vm6, 1.0, %v6094_v28 }
  0x3c   :  { %v1232_v53 = vadd.f32 %v4824_v49, %v844_v47  ;;  %v4920_v54 = vsel %vm1332_vm7, 1.0, %v6094_v28  ;;  %vm1719_vm8 = vcmp.eq.s32.totalorder %v6178_v14, %v6205_v24  ;;  %vm1720_vm9 = vcmp.eq.s32.totalorder %v6184_v16, %v6205_v24 }
  0x3d   :  { %5485 = vmatpush3.bf16.msra.mxu0 %v3249_v50  ;;  %5875 = vmatpush3.bf16.msra.mxu1 %v3249_v50  ;;  %v1619_v55 = vadd.f32 %v4919_v52, %v1231_v51  ;;  %v5015_v56 = vsel %vm1719_vm8, 1.0, %v6094_v28  ;;  %v5016_v57 = vsel %vm1720_vm9, 1.0, %v6094_v28  ;;  %vm2107_vm10 = vcmp.eq.s32.totalorder %v6178_v14, %v6207_v25 }
  0x3e   :  { %v1620_v58 = vadd.f32 %v4920_v54, %v1232_v53  ;;  %vm2108_vm11 = vcmp.eq.s32.totalorder %v6184_v16, %v6207_v25  ;;  %v5111_v59 = vsel %vm2107_vm10, 1.0, %v6094_v28  ;;  %vm2495_vm12 = vcmp.eq.s32.totalorder %v6178_v14, %v6209_v26 }
  0x3f   :  { %v2007_v60 = vadd.f32 %v5015_v56, %v1619_v55  ;;  %v5112_v61 = vsel %vm2108_vm11, 1.0, %v6094_v28  ;;  %vm2496_vm13 = vcmp.eq.s32.totalorder %v6184_v16, %v6209_v26  ;;  %v5207_v62 = vsel %vm2495_vm12, 1.0, %v6094_v28 }
  0x40   :  { %v2008_v63 = vadd.f32 %v5016_v57, %v1620_v58  ;;  %v5208_v0 = vsel %vm2496_vm13, 1.0, %v6094_v28  ;;  %vm2883_vm14 = vcmp.eq.s32.totalorder %v6178_v14, %v6211_v27  ;;  %vm2884_vm15 = vcmp.eq.s32.totalorder %v6184_v16, %v6211_v27 }
  0x41   :  { %v2395_v1 = vadd.f32 %v5111_v59, %v2007_v60  ;;  %v5303_v3 = vsel %vm2883_vm14, 1.0, %v6094_v28  ;;  %v5304_v4 = vsel %vm2884_vm15, 1.0, %v6094_v28  ;;  %vm151_vm0 = vcmp.eq.s32.totalorder %v6187_v17, %v6197_v20 }
  0x42   :  { %v2396_v6 = vadd.f32 %v5112_v61, %v2008_v63  ;;  %vm152_vm1 = vcmp.eq.s32.totalorder %v6190_v18, %v6197_v20  ;;  %v4615_v7 = vsel %vm151_vm0, 1.0, %v6094_v28  ;;  %vm539_vm2 = vcmp.eq.s32.totalorder %v6187_v17, %v6199_v21 }
  0x43   :  { %v2783_v14 = vadd.f32 %v5207_v62, %v2395_v1  ;;  %v4616_v16 = vsel %vm152_vm1, 1.0, %v6094_v28  ;;  %vm540_vm3 = vcmp.eq.s32.totalorder %v6190_v18, %v6199_v21  ;;  %v4711_v8 = vsel %vm539_vm2, 1.0, %v6094_v28 }
  0x44   :  { %v2784_v9 = vadd.f32 %v5208_v0, %v2396_v6  ;;  %v4712_v10 = vsel %vm540_vm3, 1.0, %v6094_v28  ;;  %v827_v11 = vadd.f32 %v4711_v8, %v4615_v7  ;;  %vm927_vm4 = vcmp.eq.s32.totalorder %v6187_v17, %v6201_v22 }
  0x45   :  { %v3171_v12 = vadd.f32 %v5303_v3, %v2783_v14  ;;  %v828_v15 = vadd.f32 %v4712_v10, %v4616_v16  ;;  %vm928_vm5 = vcmp.eq.s32.totalorder %v6190_v18, %v6201_v22  ;;  %v4807_v29 = vsel %vm927_vm4, 1.0, %v6094_v28 }
  0x46   :  { %v3172_v30 = vadd.f32 %v5304_v4, %v2784_v9  ;;  %v4808_v31 = vsel %vm928_vm5, 1.0, %v6094_v28  ;;  %v1215_v32 = vadd.f32 %v4807_v29, %v827_v11  ;;  %vm1315_vm6 = vcmp.eq.s32.totalorder %v6187_v17, %v6203_v23 }
  0x47   :  { %v1216_v33 = vadd.f32 %v4808_v31, %v828_v15  ;;  %vm1316_vm7 = vcmp.eq.s32.totalorder %v6190_v18, %v6203_v23  ;;  %v4903_v34 = vsel %vm1315_vm6, 1.0, %v6094_v28  ;;  %vm1703_vm8 = vcmp.eq.s32.totalorder %v6187_v17, %v6205_v24 }
  0x48   :  { %v3258_v35 = vpack.c.bf16 %v3172_v30, %v3171_v12  ;;  %v4904_v36 = vsel %vm1316_vm7, 1.0, %v6094_v28  ;;  %v1603_v37 = vadd.f32 %v4903_v34, %v1215_v32  ;;  %vm1704_vm9 = vcmp.eq.s32.totalorder %v6190_v18, %v6205_v24 }
  0x49   :  { %v1604_v38 = vadd.f32 %v4904_v36, %v1216_v33  ;;  %v4999_v39 = vsel %vm1703_vm8, 1.0, %v6094_v28  ;;  %v5000_v40 = vsel %vm1704_vm9, 1.0, %v6094_v28  ;;  %vm2091_vm10 = vcmp.eq.s32.totalorder %v6187_v17, %v6207_v25 }
  0x4a   :  { %5486 = vmatprep.subr.bf16.mxu0 %v3258_v35  ;;  %5868 = vmatprep.subr.bf16.mxu1 %v3258_v35  ;;  %v1991_v13 = vadd.f32 %v4999_v39, %v1603_v37  ;;  %vm2092_vm11 = vcmp.eq.s32.totalorder %v6190_v18, %v6207_v25  ;;  %v5095_v41 = vsel %vm2091_vm10, 1.0, %v6094_v28  ;;  %vm2479_vm12 = vcmp.eq.s32.totalorder %v6187_v17, %v6209_v26 }
  0x4b   :  { %v1992_v42 = vadd.f32 %v5000_v40, %v1604_v38  ;;  %v5096_v43 = vsel %vm2092_vm11, 1.0, %v6094_v28  ;;  %vm2480_vm13 = vcmp.eq.s32.totalorder %v6190_v18, %v6209_v26  ;;  %v5191_v44 = vsel %vm2479_vm12, 1.0, %v6094_v28 }
  0x4c   :  { %v2379_v45 = vadd.f32 %v5095_v41, %v1991_v13  ;;  %v5192_v46 = vsel %vm2480_vm13, 1.0, %v6094_v28  ;;  %vm2867_vm14 = vcmp.eq.s32.totalorder %v6187_v17, %v6211_v27  ;;  %vm2868_vm15 = vcmp.eq.s32.totalorder %v6190_v18, %v6211_v27 }
  0x4d   :  { %v2380_v47 = vadd.f32 %v5096_v43, %v1992_v42  ;;  %v5287_v48 = vsel %vm2867_vm14, 1.0, %v6094_v28  ;;  %v5288_v49 = vsel %vm2868_vm15, 1.0, %v6094_v28  ;;  %v70_v50 = vadd.s32 168, %v6158_v2 }
  0x4e   :  { %v2767_v51 = vadd.f32 %v5191_v44, %v2379_v45  ;;  %vm169_vm0 = vcmp.eq.s32.totalorder %v6193_v19, %v6197_v20  ;;  %vm557_vm1 = vcmp.eq.s32.totalorder %v6193_v19, %v6199_v21  ;;  %vm945_vm2 = vcmp.eq.s32.totalorder %v6193_v19, %v6201_v22 }
  0x4f   :  { %v2768_v17 = vadd.f32 %v5192_v46, %v2380_v47  ;;  %vm170_vm3 = vcmp.eq.s32.totalorder %v70_v50, %v6197_v20  ;;  %v4633_v18 = vsel %vm169_vm0, 1.0, %v6094_v28  ;;  %vm558_vm4 = vcmp.eq.s32.totalorder %v70_v50, %v6199_v21 }
  0x50   :  { %v3155_v52 = vadd.f32 %v5287_v48, %v2767_v51  ;;  %v4634_v53 = vsel %vm170_vm3, 1.0, %v6094_v28  ;;  %v4729_v54 = vsel %vm557_vm1, 1.0, %v6094_v28  ;;  %v4730_v55 = vsel %vm558_vm4, 1.0, %v6094_v28 }
  0x51   :  { %v3156_v56 = vadd.f32 %v5288_v49, %v2768_v17  ;;  %v845_v57 = vadd.f32 %v4729_v54, %v4633_v18  ;;  %v846_v58 = vadd.f32 %v4730_v55, %v4634_v53  ;;  %vm946_vm5 = vcmp.eq.s32.totalorder %v70_v50, %v6201_v22 }
  0x52   :  { %v4825_v59 = vsel %vm945_vm2, 1.0, %v6094_v28  ;;  %v4826_v60 = vsel %vm946_vm5, 1.0, %v6094_v28  ;;  %vm1333_vm6 = vcmp.eq.s32.totalorder %v6193_v19, %v6203_v23  ;;  %vm1334_vm7 = vcmp.eq.s32.totalorder %v70_v50, %v6203_v23 }
  0x53   :  { %v3250_v61 = vpack.c.bf16 %v3156_v56, %v3155_v52  ;;  %v1233_v62 = vadd.f32 %v4825_v59, %v845_v57  ;;  %v1234_v63 = vadd.f32 %v4826_v60, %v846_v58  ;;  %v4921_v0 = vsel %vm1333_vm6, 1.0, %v6094_v28 }
  0x54   :  { %v4922_v1 = vsel %vm1334_vm7, 1.0, %v6094_v28  ;;  %vm1721_vm8 = vcmp.eq.s32.totalorder %v6193_v19, %v6205_v24  ;;  %vm1722_vm9 = vcmp.eq.s32.totalorder %v70_v50, %v6205_v24  ;;  %vm2109_vm10 = vcmp.eq.s32.totalorder %v6193_v19, %v6207_v25 }
  0x55   :  { %5487 = vmatpush3.bf16.msra.mxu0 %v3250_v61  ;;  %5876 = vmatpush3.bf16.msra.mxu1 %v3250_v61  ;;  %v1621_v3 = vadd.f32 %v4921_v0, %v1233_v62  ;;  %v1622_v4 = vadd.f32 %v4922_v1, %v1234_v63  ;;  %v5017_v6 = vsel %vm1721_vm8, 1.0, %v6094_v28  ;;  %v5018_v7 = vsel %vm1722_vm9, 1.0, %v6094_v28 }
  0x56   :  { %vm2110_vm11 = vcmp.eq.s32.totalorder %v70_v50, %v6207_v25  ;;  %v5113_v14 = vsel %vm2109_vm10, 1.0, %v6094_v28  ;;  %vm2497_vm12 = vcmp.eq.s32.totalorder %v6193_v19, %v6209_v26  ;;  %vm2498_vm13 = vcmp.eq.s32.totalorder %v70_v50, %v6209_v26 }
  0x57   :  { %v2009_v16 = vadd.f32 %v5017_v6, %v1621_v3  ;;  %v2010_v8 = vadd.f32 %v5018_v7, %v1622_v4  ;;  %v5114_v9 = vsel %vm2110_vm11, 1.0, %v6094_v28  ;;  %v5209_v10 = vsel %vm2497_vm12, 1.0, %v6094_v28  ;;  %v5894_v4 = vld [vmem:[#allocation3 + $0x4] ss:$24 sps:$4 sm:$0xff]  }
  0x58   :  { %v5210_v11 = vsel %vm2498_vm13, 1.0, %v6094_v28  ;;  %vm2885_vm14 = vcmp.eq.s32.totalorder %v6193_v19, %v6211_v27  ;;  %vm2886_vm15 = vcmp.eq.s32.totalorder %v70_v50, %v6211_v27  ;;  %v53_v12 = vadd.s32 32, %v6158_v2  ;;  %3905 = vmatprep.mubr.bf16.mxu0 %v5894_v4 }
  0x59   :  { %v2397_v15 = vadd.f32 %v5113_v14, %v2009_v16  ;;  %v2398_v29 = vadd.f32 %v5114_v9, %v2010_v8  ;;  %v5305_v30 = vsel %vm2885_vm14, 1.0, %v6094_v28  ;;  %v5306_v31 = vsel %vm2886_vm15, 1.0, %v6094_v28 }
  0x5a   :  { %v54_v32 = vadd.s32 40, %v6158_v2  ;;  %vm153_vm0 = vcmp.eq.s32.totalorder %v53_v12, %v6197_v20  ;;  %vm541_vm1 = vcmp.eq.s32.totalorder %v53_v12, %v6199_v21  ;;  %vm929_vm2 = vcmp.eq.s32.totalorder %v53_v12, %v6201_v22 }
  0x5b   :  { %v2785_v33 = vadd.f32 %v5209_v10, %v2397_v15  ;;  %v2786_v19 = vadd.f32 %v5210_v11, %v2398_v29  ;;  %v4617_v34 = vsel %vm153_vm0, 1.0, %v6094_v28  ;;  %v4713_v35 = vsel %vm541_vm1, 1.0, %v6094_v28  ;;  %v5897_v11 = vld [vmem:[#allocation3 + $0x1e4] ss:$24 sps:$4 sm:$0xff]  }
  0x5c   :  { %vm154_vm3 = vcmp.eq.s32.totalorder %v54_v32, %v6197_v20  ;;  %vm542_vm4 = vcmp.eq.s32.totalorder %v54_v32, %v6199_v21  ;;  %v829_v36 = vadd.f32 %v4713_v35, %v4617_v34  ;;  %vm930_vm5 = vcmp.eq.s32.totalorder %v54_v32, %v6201_v22  ;;  %3985 = vmatprep.mubr.bf16.mxu1 %v5897_v11 }
  0x5d   :  { %v3173_v37 = vadd.f32 %v5305_v30, %v2785_v33  ;;  %v3174_v38 = vadd.f32 %v5306_v31, %v2786_v19  ;;  %v4618_v39 = vsel %vm154_vm3, 1.0, %v6094_v28  ;;  %v4714_v40 = vsel %vm542_vm4, 1.0, %v6094_v28 }
  0x5e   :  { %v830_v13 = vadd.f32 %v4714_v40, %v4618_v39  ;;  %v4809_v41 = vsel %vm929_vm2, 1.0, %v6094_v28  ;;  %v4810_v42 = vsel %vm930_vm5, 1.0, %v6094_v28  ;;  %vm1317_vm6 = vcmp.eq.s32.totalorder %v53_v12, %v6203_v23 }
  0x5f   :  { %v3259_v43 = vpack.c.bf16 %v3174_v38, %v3173_v37  ;;  %v1217_v44 = vadd.f32 %v4809_v41, %v829_v36  ;;  %vm1318_vm7 = vcmp.eq.s32.totalorder %v54_v32, %v6203_v23  ;;  %v4905_v45 = vsel %vm1317_vm6, 1.0, %v6094_v28 }
  0x60   :  { %v1218_v46 = vadd.f32 %v4810_v42, %v830_v13  ;;  %v4906_v47 = vsel %vm1318_vm7, 1.0, %v6094_v28  ;;  %vm1705_vm8 = vcmp.eq.s32.totalorder %v53_v12, %v6205_v24  ;;  %vm1706_vm9 = vcmp.eq.s32.totalorder %v54_v32, %v6205_v24 }
  0x61   :  { %5488 = vmatprep.subr.bf16.mxu0 %v3259_v43  ;;  %5869 = vmatprep.subr.bf16.mxu1 %v3259_v43  ;;  %v1605_v48 = vadd.f32 %v4905_v45, %v1217_v44  ;;  %v5001_v49 = vsel %vm1705_vm8, 1.0, %v6094_v28  ;;  %v5002_v50 = vsel %vm1706_vm9, 1.0, %v6094_v28  ;;  %vm2093_vm10 = vcmp.eq.s32.totalorder %v53_v12, %v6207_v25 }
  0x62   :  { %v1606_v51 = vadd.f32 %v4906_v47, %v1218_v46  ;;  %vm2094_vm11 = vcmp.eq.s32.totalorder %v54_v32, %v6207_v25  ;;  %v5097_v17 = vsel %vm2093_vm10, 1.0, %v6094_v28  ;;  %vm2481_vm12 = vcmp.eq.s32.totalorder %v53_v12, %v6209_v26 }
  0x63   :  { %v1993_v18 = vadd.f32 %v5001_v49, %v1605_v48  ;;  %v5098_v52 = vsel %vm2094_vm11, 1.0, %v6094_v28  ;;  %vm2482_vm13 = vcmp.eq.s32.totalorder %v54_v32, %v6209_v26  ;;  %v5193_v53 = vsel %vm2481_vm12, 1.0, %v6094_v28 }
  0x64   :  { %v1994_v54 = vadd.f32 %v5002_v50, %v1606_v51  ;;  %v5194_v55 = vsel %vm2482_vm13, 1.0, %v6094_v28  ;;  %vm2869_vm14 = vcmp.eq.s32.totalorder %v53_v12, %v6211_v27  ;;  %vm2870_vm15 = vcmp.eq.s32.totalorder %v54_v32, %v6211_v27 }
  0x65   :  { %v2381_v56 = vadd.f32 %v5097_v17, %v1993_v18  ;;  %v5289_v57 = vsel %vm2869_vm14, 1.0, %v6094_v28  ;;  %v5290_v58 = vsel %vm2870_vm15, 1.0, %v6094_v28  ;;  %v71_v59 = vadd.s32 176, %v6158_v2 }
  0x66   :  { %v2382_v60 = vadd.f32 %v5098_v52, %v1994_v54  ;;  %v72_v61 = vadd.s32 184, %v6158_v2  ;;  %v6483_v62 = vadd.s32 48, %v6158_v2  ;;  %v6486_v63 = vadd.s32 56, %v6158_v2 }
  0x67   :  { %v2769_v0 = vadd.f32 %v5193_v53, %v2381_v56  ;;  %vm171_vm0 = vcmp.eq.s32.totalorder %v71_v59, %v6197_v20  ;;  %vm559_vm1 = vcmp.eq.s32.totalorder %v71_v59, %v6199_v21  ;;  %vm947_vm2 = vcmp.eq.s32.totalorder %v71_v59, %v6201_v22 }
  0x68   :  { %v2770_v1 = vadd.f32 %v5194_v55, %v2382_v60  ;;  %vm172_vm3 = vcmp.eq.s32.totalorder %v72_v61, %v6197_v20  ;;  %v4635_v3 = vsel %vm171_vm0, 1.0, %v6094_v28  ;;  %vm560_vm4 = vcmp.eq.s32.totalorder %v72_v61, %v6199_v21 }
  0x69   :  { %v3157_v6 = vadd.f32 %v5289_v57, %v2769_v0  ;;  %v4636_v7 = vsel %vm172_vm3, 1.0, %v6094_v28  ;;  %v4731_v14 = vsel %vm559_vm1, 1.0, %v6094_v28  ;;  %v4732_v16 = vsel %vm560_vm4, 1.0, %v6094_v28 }
  0x6a   :  { %v3158_v8 = vadd.f32 %v5290_v58, %v2770_v1  ;;  %v847_v9 = vadd.f32 %v4731_v14, %v4635_v3  ;;  %v848_v10 = vadd.f32 %v4732_v16, %v4636_v7  ;;  %vm948_vm5 = vcmp.eq.s32.totalorder %v72_v61, %v6201_v22 }
  0x6b   :  { %v4827_v12 = vsel %vm947_vm2, 1.0, %v6094_v28  ;;  %v4828_v15 = vsel %vm948_vm5, 1.0, %v6094_v28  ;;  %vm1335_vm6 = vcmp.eq.s32.totalorder %v71_v59, %v6203_v23  ;;  %vm1336_vm7 = vcmp.eq.s32.totalorder %v72_v61, %v6203_v23 }
  0x6c   :  { %v3251_v29 = vpack.c.bf16 %v3158_v8, %v3157_v6  ;;  %v1235_v30 = vadd.f32 %v4827_v12, %v847_v9  ;;  %v1236_v31 = vadd.f32 %v4828_v15, %v848_v10  ;;  %v4923_v32 = vsel %vm1335_vm6, 1.0, %v6094_v28 }
  0x6d   :  { %v4924_v33 = vsel %vm1336_vm7, 1.0, %v6094_v28  ;;  %vm1723_vm8 = vcmp.eq.s32.totalorder %v71_v59, %v6205_v24  ;;  %vm1724_vm9 = vcmp.eq.s32.totalorder %v72_v61, %v6205_v24  ;;  %vm2111_vm10 = vcmp.eq.s32.totalorder %v71_v59, %v6207_v25 }
  0x6e   :  { %5489 = vmatpush3.bf16.msra.mxu0 %v3251_v29  ;;  %5877 = vmatpush3.bf16.msra.mxu1 %v3251_v29  ;;  %v1623_v19 = vadd.f32 %v4923_v32, %v1235_v30  ;;  %v1624_v34 = vadd.f32 %v4924_v33, %v1236_v31  ;;  %v5019_v35 = vsel %vm1723_vm8, 1.0, %v6094_v28  ;;  %v5020_v36 = vsel %vm1724_vm9, 1.0, %v6094_v28 }
  0x6f   :  { %vm2112_vm11 = vcmp.eq.s32.totalorder %v72_v61, %v6207_v25  ;;  %v5115_v37 = vsel %vm2111_vm10, 1.0, %v6094_v28  ;;  %vm2499_vm12 = vcmp.eq.s32.totalorder %v71_v59, %v6209_v26  ;;  %vm2500_vm13 = vcmp.eq.s32.totalorder %v72_v61, %v6209_v26 }
  0x70   :  { %v2011_v38 = vadd.f32 %v5019_v35, %v1623_v19  ;;  %v2012_v39 = vadd.f32 %v5020_v36, %v1624_v34  ;;  %v5116_v40 = vsel %vm2112_vm11, 1.0, %v6094_v28  ;;  %v5211_v13 = vsel %vm2499_vm12, 1.0, %v6094_v28 }
  0x71   :  { %v5212_v41 = vsel %vm2500_vm13, 1.0, %v6094_v28  ;;  %vm2887_vm14 = vcmp.eq.s32.totalorder %v71_v59, %v6211_v27  ;;  %vm2888_vm15 = vcmp.eq.s32.totalorder %v72_v61, %v6211_v27  ;;  %vm155_vm0 = vcmp.eq.s32.totalorder %v6483_v62, %v6197_v20 }
  0x72   :  { %v2399_v42 = vadd.f32 %v5115_v37, %v2011_v38  ;;  %v2400_v43 = vadd.f32 %v5116_v40, %v2012_v39  ;;  %v5307_v44 = vsel %vm2887_vm14, 1.0, %v6094_v28  ;;  %v5308_v45 = vsel %vm2888_vm15, 1.0, %v6094_v28 }
  0x73   :  { %vm156_vm1 = vcmp.eq.s32.totalorder %v6486_v63, %v6197_v20  ;;  %v4619_v46 = vsel %vm155_vm0, 1.0, %v6094_v28  ;;  %vm543_vm2 = vcmp.eq.s32.totalorder %v6483_v62, %v6199_v21  ;;  %vm544_vm3 = vcmp.eq.s32.totalorder %v6486_v63, %v6199_v21 }
  0x74   :  { %v2787_v47 = vadd.f32 %v5211_v13, %v2399_v42  ;;  %v2788_v48 = vadd.f32 %v5212_v41, %v2400_v43  ;;  %v4620_v49 = vsel %vm156_vm1, 1.0, %v6094_v28  ;;  %v4715_v50 = vsel %vm543_vm2, 1.0, %v6094_v28 }
  0x75   :  { %v4716_v51 = vsel %vm544_vm3, 1.0, %v6094_v28  ;;  %v831_v17 = vadd.f32 %v4715_v50, %v4619_v46  ;;  %vm931_vm4 = vcmp.eq.s32.totalorder %v6483_v62, %v6201_v22  ;;  %vm932_vm5 = vcmp.eq.s32.totalorder %v6486_v63, %v6201_v22 }
  0x76   :  { %v3175_v18 = vadd.f32 %v5307_v44, %v2787_v47  ;;  %v3176_v52 = vadd.f32 %v5308_v45, %v2788_v48  ;;  %v832_v53 = vadd.f32 %v4716_v51, %v4620_v49  ;;  %v4811_v54 = vsel %vm931_vm4, 1.0, %v6094_v28 }
  0x77   :  { %v4812_v55 = vsel %vm932_vm5, 1.0, %v6094_v28  ;;  %v1219_v56 = vadd.f32 %v4811_v54, %v831_v17  ;;  %vm1319_vm6 = vcmp.eq.s32.totalorder %v6483_v62, %v6203_v23  ;;  %vm1320_vm7 = vcmp.eq.s32.totalorder %v6486_v63, %v6203_v23 }
  0x78   :  { %v3260_v57 = vpack.c.bf16 %v3176_v52, %v3175_v18  ;;  %v1220_v58 = vadd.f32 %v4812_v55, %v832_v53  ;;  %v4907_v59 = vsel %vm1319_vm6, 1.0, %v6094_v28  ;;  %v4908_v60 = vsel %vm1320_vm7, 1.0, %v6094_v28 }
  0x79   :  { %v1607_v61 = vadd.f32 %v4907_v59, %v1219_v56  ;;  %vm1707_vm8 = vcmp.eq.s32.totalorder %v6483_v62, %v6205_v24  ;;  %vm1708_vm9 = vcmp.eq.s32.totalorder %v6486_v63, %v6205_v24  ;;  %vm2095_vm10 = vcmp.eq.s32.totalorder %v6483_v62, %v6207_v25 }
  0x7a   :  { %5490 = vmatprep.subr.bf16.mxu0 %v3260_v57  ;;  %5870 = vmatprep.subr.bf16.mxu1 %v3260_v57  ;;  %v1608_v0 = vadd.f32 %v4908_v60, %v1220_v58  ;;  %v5003_v1 = vsel %vm1707_vm8, 1.0, %v6094_v28  ;;  %v5004_v3 = vsel %vm1708_vm9, 1.0, %v6094_v28  ;;  %vm2096_vm11 = vcmp.eq.s32.totalorder %v6486_v63, %v6207_v25 }
  0x7b   :  { %v1995_v4 = vadd.f32 %v5003_v1, %v1607_v61  ;;  %v5099_v6 = vsel %vm2095_vm10, 1.0, %v6094_v28  ;;  %v5100_v7 = vsel %vm2096_vm11, 1.0, %v6094_v28  ;;  %vm2483_vm12 = vcmp.eq.s32.totalorder %v6483_v62, %v6209_v26 }
  0x7c   :  { %v1996_v14 = vadd.f32 %v5004_v3, %v1608_v0  ;;  %vm2484_vm13 = vcmp.eq.s32.totalorder %v6486_v63, %v6209_v26  ;;  %v5195_v16 = vsel %vm2483_vm12, 1.0, %v6094_v28  ;;  %vm2871_vm14 = vcmp.eq.s32.totalorder %v6483_v62, %v6211_v27 }
  0x7d   :  { %v2383_v8 = vadd.f32 %v5099_v6, %v1995_v4  ;;  %v5196_v9 = vsel %vm2484_vm13, 1.0, %v6094_v28  ;;  %vm2872_vm15 = vcmp.eq.s32.totalorder %v6486_v63, %v6211_v27  ;;  %v5291_v10 = vsel %vm2871_vm14, 1.0, %v6094_v28 }
  0x7e   :  { %v2384_v11 = vadd.f32 %v5100_v7, %v1996_v14  ;;  %v5292_v12 = vsel %vm2872_vm15, 1.0, %v6094_v28  ;;  %v73_v15 = vadd.s32 192, %v6158_v2  ;;  %v74_v29 = vadd.s32 200, %v6158_v2 }
  0x7f   :  { %v2771_v30 = vadd.f32 %v5195_v16, %v2383_v8  ;;  %v6573_v31 = vadd.s32 64, %v6158_v2  ;;  %v6576_v62 = vadd.s32 72, %v6158_v2  ;;  %v6579_v32 = vadd.s32 208, %v6158_v2 }
  0x80   :  { %v2772_v63 = vadd.f32 %v5196_v9, %v2384_v11  ;;  %vm173_vm0 = vcmp.eq.s32.totalorder %v73_v15, %v6197_v20  ;;  %vm174_vm1 = vcmp.eq.s32.totalorder %v74_v29, %v6197_v20  ;;  %vm561_vm2 = vcmp.eq.s32.totalorder %v73_v15, %v6199_v21 }
  0x81   :  { %v3159_v33 = vadd.f32 %v5291_v10, %v2771_v30  ;;  %v4637_v19 = vsel %vm173_vm0, 1.0, %v6094_v28  ;;  %v4638_v34 = vsel %vm174_vm1, 1.0, %v6094_v28  ;;  %vm562_vm3 = vcmp.eq.s32.totalorder %v74_v29, %v6199_v21 }
  0x82   :  { %v3160_v35 = vadd.f32 %v5292_v12, %v2772_v63  ;;  %v4733_v36 = vsel %vm561_vm2, 1.0, %v6094_v28  ;;  %v4734_v37 = vsel %vm562_vm3, 1.0, %v6094_v28  ;;  %vm949_vm4 = vcmp.eq.s32.totalorder %v73_v15, %v6201_v22 }
  0x83   :  { %v849_v38 = vadd.f32 %v4733_v36, %v4637_v19  ;;  %v850_v39 = vadd.f32 %v4734_v37, %v4638_v34  ;;  %vm950_vm5 = vcmp.eq.s32.totalorder %v74_v29, %v6201_v22  ;;  %v4829_v40 = vsel %vm949_vm4, 1.0, %v6094_v28 }
  0x84   :  { %v3252_v13 = vpack.c.bf16 %v3160_v35, %v3159_v33  ;;  %v4830_v41 = vsel %vm950_vm5, 1.0, %v6094_v28  ;;  %vm1337_vm6 = vcmp.eq.s32.totalorder %v73_v15, %v6203_v23  ;;  %vm1338_vm7 = vcmp.eq.s32.totalorder %v74_v29, %v6203_v23 }
  0x85   :  { %v1237_v42 = vadd.f32 %v4829_v40, %v849_v38  ;;  %v1238_v43 = vadd.f32 %v4830_v41, %v850_v39  ;;  %v4925_v44 = vsel %vm1337_vm6, 1.0, %v6094_v28  ;;  %v4926_v45 = vsel %vm1338_vm7, 1.0, %v6094_v28 }
  0x86   :  { %5491 = vmatpush3.bf16.msra.mxu0 %v3252_v13  ;;  %5878 = vmatpush3.bf16.msra.mxu1 %v3252_v13  ;;  %vm1725_vm8 = vcmp.eq.s32.totalorder %v73_v15, %v6205_v24  ;;  %vm1726_vm9 = vcmp.eq.s32.totalorder %v74_v29, %v6205_v24  ;;  %vm2113_vm10 = vcmp.eq.s32.totalorder %v73_v15, %v6207_v25  ;;  %v6601_v46 = vadd.s32 216, %v6158_v2 }
  0x87   :  { %v1625_v47 = vadd.f32 %v4925_v44, %v1237_v42  ;;  %v1626_v48 = vadd.f32 %v4926_v45, %v1238_v43  ;;  %v5021_v49 = vsel %vm1725_vm8, 1.0, %v6094_v28  ;;  %v5022_v50 = vsel %vm1726_vm9, 1.0, %v6094_v28 }
  0x88   :  { %vm2114_vm11 = vcmp.eq.s32.totalorder %v74_v29, %v6207_v25  ;;  %v5117_v51 = vsel %vm2113_vm10, 1.0, %v6094_v28  ;;  %vm2501_vm12 = vcmp.eq.s32.totalorder %v73_v15, %v6209_v26  ;;  %vm2502_vm13 = vcmp.eq.s32.totalorder %v74_v29, %v6209_v26 }
  0x89   :  { %v2013_v17 = vadd.f32 %v5021_v49, %v1625_v47  ;;  %v2014_v18 = vadd.f32 %v5022_v50, %v1626_v48  ;;  %v5118_v52 = vsel %vm2114_vm11, 1.0, %v6094_v28  ;;  %v5213_v53 = vsel %vm2501_vm12, 1.0, %v6094_v28 }
  0x8a   :  { %v5214_v54 = vsel %vm2502_vm13, 1.0, %v6094_v28  ;;  %vm2889_vm14 = vcmp.eq.s32.totalorder %v73_v15, %v6211_v27  ;;  %vm2890_vm15 = vcmp.eq.s32.totalorder %v74_v29, %v6211_v27  ;;  %vm157_vm0 = vcmp.eq.s32.totalorder %v6573_v31, %v6197_v20 }
  0x8b   :  { %v2401_v55 = vadd.f32 %v5117_v51, %v2013_v17  ;;  %v2402_v56 = vadd.f32 %v5118_v52, %v2014_v18  ;;  %v5309_v57 = vsel %vm2889_vm14, 1.0, %v6094_v28  ;;  %v5310_v58 = vsel %vm2890_vm15, 1.0, %v6094_v28 }
  0x8c   :  { %vm158_vm1 = vcmp.eq.s32.totalorder %v6576_v62, %v6197_v20  ;;  %v4621_v59 = vsel %vm157_vm0, 1.0, %v6094_v28  ;;  %vm545_vm2 = vcmp.eq.s32.totalorder %v6573_v31, %v6199_v21  ;;  %vm546_vm3 = vcmp.eq.s32.totalorder %v6576_v62, %v6199_v21 }
  0x8d   :  { %v2789_v60 = vadd.f32 %v5213_v53, %v2401_v55  ;;  %v2790_v61 = vadd.f32 %v5214_v54, %v2402_v56  ;;  %v4622_v0 = vsel %vm158_vm1, 1.0, %v6094_v28  ;;  %v4717_v1 = vsel %vm545_vm2, 1.0, %v6094_v28 }
  0x8e   :  { %v4718_v3 = vsel %vm546_vm3, 1.0, %v6094_v28  ;;  %v833_v4 = vadd.f32 %v4717_v1, %v4621_v59  ;;  %vm933_vm4 = vcmp.eq.s32.totalorder %v6573_v31, %v6201_v22  ;;  %vm934_vm5 = vcmp.eq.s32.totalorder %v6576_v62, %v6201_v22 }
  0x8f   :  { %v3177_v6 = vadd.f32 %v5309_v57, %v2789_v60  ;;  %v3178_v7 = vadd.f32 %v5310_v58, %v2790_v61  ;;  %v834_v14 = vadd.f32 %v4718_v3, %v4622_v0  ;;  %v4813_v16 = vsel %vm933_vm4, 1.0, %v6094_v28 }
  0x90   :  { %v4814_v8 = vsel %vm934_vm5, 1.0, %v6094_v28  ;;  %v1221_v9 = vadd.f32 %v4813_v16, %v833_v4  ;;  %vm1321_vm6 = vcmp.eq.s32.totalorder %v6573_v31, %v6203_v23  ;;  %vm1322_vm7 = vcmp.eq.s32.totalorder %v6576_v62, %v6203_v23 }
  0x91   :  { %v3261_v10 = vpack.c.bf16 %v3178_v7, %v3177_v6  ;;  %v1222_v11 = vadd.f32 %v4814_v8, %v834_v14  ;;  %v4909_v12 = vsel %vm1321_vm6, 1.0, %v6094_v28  ;;  %v4910_v15 = vsel %vm1322_vm7, 1.0, %v6094_v28 }
  0x92   :  { %v1609_v29 = vadd.f32 %v4909_v12, %v1221_v9  ;;  %vm1709_vm8 = vcmp.eq.s32.totalorder %v6573_v31, %v6205_v24  ;;  %vm1710_vm9 = vcmp.eq.s32.totalorder %v6576_v62, %v6205_v24  ;;  %vm2097_vm10 = vcmp.eq.s32.totalorder %v6573_v31, %v6207_v25 }
  0x93   :  { %5492 = vmatprep.subr.bf16.mxu0 %v3261_v10  ;;  %5871 = vmatprep.subr.bf16.mxu1 %v3261_v10  ;;  %v1610_v30 = vadd.f32 %v4910_v15, %v1222_v11  ;;  %v5005_v63 = vsel %vm1709_vm8, 1.0, %v6094_v28  ;;  %v5006_v33 = vsel %vm1710_vm9, 1.0, %v6094_v28  ;;  %vm2098_vm11 = vcmp.eq.s32.totalorder %v6576_v62, %v6207_v25 }
  0x94   :  { %v1997_v19 = vadd.f32 %v5005_v63, %v1609_v29  ;;  %v5101_v34 = vsel %vm2097_vm10, 1.0, %v6094_v28  ;;  %v5102_v35 = vsel %vm2098_vm11, 1.0, %v6094_v28  ;;  %vm2485_vm12 = vcmp.eq.s32.totalorder %v6573_v31, %v6209_v26 }
  0x95   :  { %v1998_v36 = vadd.f32 %v5006_v33, %v1610_v30  ;;  %vm2486_vm13 = vcmp.eq.s32.totalorder %v6576_v62, %v6209_v26  ;;  %v5197_v37 = vsel %vm2485_vm12, 1.0, %v6094_v28  ;;  %vm2873_vm14 = vcmp.eq.s32.totalorder %v6573_v31, %v6211_v27 }
  0x96   :  { %v2385_v38 = vadd.f32 %v5101_v34, %v1997_v19  ;;  %v5198_v39 = vsel %vm2486_vm13, 1.0, %v6094_v28  ;;  %vm2874_vm15 = vcmp.eq.s32.totalorder %v6576_v62, %v6211_v27  ;;  %v5293_v40 = vsel %vm2873_vm14, 1.0, %v6094_v28 }
  0x97   :  { %v2386_v13 = vadd.f32 %v5102_v35, %v1998_v36  ;;  %v5294_v41 = vsel %vm2874_vm15, 1.0, %v6094_v28  ;;  %vm175_vm0 = vcmp.eq.s32.totalorder %v6579_v32, %v6197_v20  ;;  %vm176_vm1 = vcmp.eq.s32.totalorder %v6601_v46, %v6197_v20 }
  0x98   :  { %v2773_v42 = vadd.f32 %v5197_v37, %v2385_v38  ;;  %v4639_v31 = vsel %vm175_vm0, 1.0, %v6094_v28  ;;  %v4640_v43 = vsel %vm176_vm1, 1.0, %v6094_v28  ;;  %vm563_vm2 = vcmp.eq.s32.totalorder %v6579_v32, %v6199_v21 }
  0x99   :  { %v2774_v62 = vadd.f32 %v5198_v39, %v2386_v13  ;;  %vm564_vm3 = vcmp.eq.s32.totalorder %v6601_v46, %v6199_v21  ;;  %v4735_v44 = vsel %vm563_vm2, 1.0, %v6094_v28  ;;  %vm951_vm4 = vcmp.eq.s32.totalorder %v6579_v32, %v6201_v22 }
  0x9a   :  { %v3161_v45 = vadd.f32 %v5293_v40, %v2773_v42  ;;  %v4736_v47 = vsel %vm564_vm3, 1.0, %v6094_v28  ;;  %v851_v48 = vadd.f32 %v4735_v44, %v4639_v31  ;;  %vm952_vm5 = vcmp.eq.s32.totalorder %v6601_v46, %v6201_v22 }
  0x9b   :  { %v3162_v49 = vadd.f32 %v5294_v41, %v2774_v62  ;;  %v852_v50 = vadd.f32 %v4736_v47, %v4640_v43  ;;  %v4831_v51 = vsel %vm951_vm4, 1.0, %v6094_v28  ;;  %v4832_v17 = vsel %vm952_vm5, 1.0, %v6094_v28 }
  0x9c   :  { %v1239_v18 = vadd.f32 %v4831_v51, %v851_v48  ;;  %vm1339_vm6 = vcmp.eq.s32.totalorder %v6579_v32, %v6203_v23  ;;  %vm1340_vm7 = vcmp.eq.s32.totalorder %v6601_v46, %v6203_v23  ;;  %vm1727_vm8 = vcmp.eq.s32.totalorder %v6579_v32, %v6205_v24 }
  0x9d   :  { %v3253_v52 = vpack.c.bf16 %v3162_v49, %v3161_v45  ;;  %v1240_v53 = vadd.f32 %v4832_v17, %v852_v50  ;;  %v4927_v54 = vsel %vm1339_vm6, 1.0, %v6094_v28  ;;  %v4928_v55 = vsel %vm1340_vm7, 1.0, %v6094_v28 }
  0x9e   :  { %v1627_v56 = vadd.f32 %v4927_v54, %v1239_v18  ;;  %vm1728_vm9 = vcmp.eq.s32.totalorder %v6601_v46, %v6205_v24  ;;  %v5023_v57 = vsel %vm1727_vm8, 1.0, %v6094_v28  ;;  %vm2115_vm10 = vcmp.eq.s32.totalorder %v6579_v32, %v6207_v25 }
  0x9f   :  { %5493 = vmatpush3.bf16.msra.mxu0 %v3253_v52  ;;  %5879 = vmatpush3.bf16.msra.mxu1 %v3253_v52  ;;  %v1628_v58 = vadd.f32 %v4928_v55, %v1240_v53  ;;  %v5024_v59 = vsel %vm1728_vm9, 1.0, %v6094_v28  ;;  %vm2116_vm11 = vcmp.eq.s32.totalorder %v6601_v46, %v6207_v25  ;;  %v5119_v60 = vsel %vm2115_vm10, 1.0, %v6094_v28 }
  0xa0   :  { %v2015_v61 = vadd.f32 %v5023_v57, %v1627_v56  ;;  %v5120_v0 = vsel %vm2116_vm11, 1.0, %v6094_v28  ;;  %vm2503_vm12 = vcmp.eq.s32.totalorder %v6579_v32, %v6209_v26  ;;  %vm2504_vm13 = vcmp.eq.s32.totalorder %v6601_v46, %v6209_v26 }
  0xa1   :  { %v2016_v1 = vadd.f32 %v5024_v59, %v1628_v58  ;;  %v5215_v3 = vsel %vm2503_vm12, 1.0, %v6094_v28  ;;  %v5216_v4 = vsel %vm2504_vm13, 1.0, %v6094_v28  ;;  %vm2891_vm14 = vcmp.eq.s32.totalorder %v6579_v32, %v6211_v27 }
  0xa2   :  { %v2403_v6 = vadd.f32 %v5119_v60, %v2015_v61  ;;  %vm2892_vm15 = vcmp.eq.s32.totalorder %v6601_v46, %v6211_v27  ;;  %v5311_v7 = vsel %vm2891_vm14, 1.0, %v6094_v28  ;;  %v59_v14 = vadd.s32 80, %v6158_v2 }
  0xa3   :  { %v2404_v16 = vadd.f32 %v5120_v0, %v2016_v1  ;;  %v5312_v8 = vsel %vm2892_vm15, 1.0, %v6094_v28  ;;  %v60_v9 = vadd.s32 88, %v6158_v2  ;;  %v6715_v10 = vadd.s32 224, %v6158_v2 }
  0xa4   :  { %v2791_v11 = vadd.f32 %v5215_v3, %v2403_v6  ;;  %vm159_vm0 = vcmp.eq.s32.totalorder %v59_v14, %v6197_v20  ;;  %vm547_vm1 = vcmp.eq.s32.totalorder %v59_v14, %v6199_v21  ;;  %vm935_vm2 = vcmp.eq.s32.totalorder %v59_v14, %v6201_v22 }
  0xa5   :  { %v2792_v32 = vadd.f32 %v5216_v4, %v2404_v16  ;;  %vm160_vm3 = vcmp.eq.s32.totalorder %v60_v9, %v6197_v20  ;;  %v4623_v46 = vsel %vm159_vm0, 1.0, %v6094_v28  ;;  %vm548_vm4 = vcmp.eq.s32.totalorder %v60_v9, %v6199_v21 }
  0xa6   :  { %v3179_v12 = vadd.f32 %v5311_v7, %v2791_v11  ;;  %v4624_v15 = vsel %vm160_vm3, 1.0, %v6094_v28  ;;  %v4719_v29 = vsel %vm547_vm1, 1.0, %v6094_v28  ;;  %v4720_v30 = vsel %vm548_vm4, 1.0, %v6094_v28 }
  0xa7   :  { %v3180_v63 = vadd.f32 %v5312_v8, %v2792_v32  ;;  %v835_v33 = vadd.f32 %v4719_v29, %v4623_v46  ;;  %v836_v19 = vadd.f32 %v4720_v30, %v4624_v15  ;;  %vm936_vm5 = vcmp.eq.s32.totalorder %v60_v9, %v6201_v22 }
  0xa8   :  { %v4815_v34 = vsel %vm935_vm2, 1.0, %v6094_v28  ;;  %v4816_v35 = vsel %vm936_vm5, 1.0, %v6094_v28  ;;  %vm1323_vm6 = vcmp.eq.s32.totalorder %v59_v14, %v6203_v23  ;;  %vm1324_vm7 = vcmp.eq.s32.totalorder %v60_v9, %v6203_v23 }
  0xa9   :  { %v3262_v36 = vpack.c.bf16 %v3180_v63, %v3179_v12  ;;  %v1223_v37 = vadd.f32 %v4815_v34, %v835_v33  ;;  %v1224_v38 = vadd.f32 %v4816_v35, %v836_v19  ;;  %v4911_v39 = vsel %vm1323_vm6, 1.0, %v6094_v28 }
  0xaa   :  { %v4912_v40 = vsel %vm1324_vm7, 1.0, %v6094_v28  ;;  %vm1711_vm8 = vcmp.eq.s32.totalorder %v59_v14, %v6205_v24  ;;  %vm1712_vm9 = vcmp.eq.s32.totalorder %v60_v9, %v6205_v24  ;;  %vm2099_vm10 = vcmp.eq.s32.totalorder %v59_v14, %v6207_v25 }
  0xab   :  { %5494 = vmatprep.subr.bf16.mxu0 %v3262_v36  ;;  %5872 = vmatprep.subr.bf16.mxu1 %v3262_v36  ;;  %v1611_v13 = vadd.f32 %v4911_v39, %v1223_v37  ;;  %v1612_v41 = vadd.f32 %v4912_v40, %v1224_v38  ;;  %v5007_v42 = vsel %vm1711_vm8, 1.0, %v6094_v28  ;;  %v5008_v31 = vsel %vm1712_vm9, 1.0, %v6094_v28 }
  0xac   :  { %vm2100_vm11 = vcmp.eq.s32.totalorder %v60_v9, %v6207_v25  ;;  %v5103_v43 = vsel %vm2099_vm10, 1.0, %v6094_v28  ;;  %vm2487_vm12 = vcmp.eq.s32.totalorder %v59_v14, %v6209_v26  ;;  %vm2488_vm13 = vcmp.eq.s32.totalorder %v60_v9, %v6209_v26 }
  0xad   :  { %v1999_v62 = vadd.f32 %v5007_v42, %v1611_v13  ;;  %v2000_v44 = vadd.f32 %v5008_v31, %v1612_v41  ;;  %v5104_v45 = vsel %vm2100_vm11, 1.0, %v6094_v28  ;;  %v5199_v47 = vsel %vm2487_vm12, 1.0, %v6094_v28 }
  0xae   :  { %v5200_v48 = vsel %vm2488_vm13, 1.0, %v6094_v28  ;;  %vm2875_vm14 = vcmp.eq.s32.totalorder %v59_v14, %v6211_v27  ;;  %vm2876_vm15 = vcmp.eq.s32.totalorder %v60_v9, %v6211_v27  ;;  %v78_v49 = vadd.s32 232, %v6158_v2 }
  0xaf   :  { %v2387_v50 = vadd.f32 %v5103_v43, %v1999_v62  ;;  %v2388_v51 = vadd.f32 %v5104_v45, %v2000_v44  ;;  %v5295_v17 = vsel %vm2875_vm14, 1.0, %v6094_v28  ;;  %v5296_v18 = vsel %vm2876_vm15, 1.0, %v6094_v28 }
  0xb0   :  { %vm177_vm0 = vcmp.eq.s32.totalorder %v6715_v10, %v6197_v20  ;;  %vm178_vm1 = vcmp.eq.s32.totalorder %v78_v49, %v6197_v20  ;;  %vm565_vm2 = vcmp.eq.s32.totalorder %v6715_v10, %v6199_v21  ;;  %vm566_vm3 = vcmp.eq.s32.totalorder %v78_v49, %v6199_v21 }
  0xb1   :  { %v2775_v52 = vadd.f32 %v5199_v47, %v2387_v50  ;;  %v2776_v53 = vadd.f32 %v5200_v48, %v2388_v51  ;;  %v4641_v54 = vsel %vm177_vm0, 1.0, %v6094_v28  ;;  %v4642_v55 = vsel %vm178_vm1, 1.0, %v6094_v28 }
  0xb2   :  { %v4737_v56 = vsel %vm565_vm2, 1.0, %v6094_v28  ;;  %v4738_v57 = vsel %vm566_vm3, 1.0, %v6094_v28  ;;  %vm953_vm4 = vcmp.eq.s32.totalorder %v6715_v10, %v6201_v22  ;;  %vm954_vm5 = vcmp.eq.s32.totalorder %v78_v49, %v6201_v22 }
  0xb3   :  { %v3163_v58 = vadd.f32 %v5295_v17, %v2775_v52  ;;  %v3164_v59 = vadd.f32 %v5296_v18, %v2776_v53  ;;  %v853_v60 = vadd.f32 %v4737_v56, %v4641_v54  ;;  %v854_v61 = vadd.f32 %v4738_v57, %v4642_v55 }
  0xb4   :  { %v4833_v0 = vsel %vm953_vm4, 1.0, %v6094_v28  ;;  %v4834_v1 = vsel %vm954_vm5, 1.0, %v6094_v28  ;;  %vm1341_vm6 = vcmp.eq.s32.totalorder %v6715_v10, %v6203_v23  ;;  %vm1342_vm7 = vcmp.eq.s32.totalorder %v78_v49, %v6203_v23 }
  0xb5   :  { %v3254_v3 = vpack.c.bf16 %v3164_v59, %v3163_v58  ;;  %v1241_v4 = vadd.f32 %v4833_v0, %v853_v60  ;;  %v1242_v6 = vadd.f32 %v4834_v1, %v854_v61  ;;  %v4929_v7 = vsel %vm1341_vm6, 1.0, %v6094_v28 }
  0xb6   :  { %v4930_v14 = vsel %vm1342_vm7, 1.0, %v6094_v28  ;;  %vm1729_vm8 = vcmp.eq.s32.totalorder %v6715_v10, %v6205_v24  ;;  %vm1730_vm9 = vcmp.eq.s32.totalorder %v78_v49, %v6205_v24  ;;  %vm2117_vm10 = vcmp.eq.s32.totalorder %v6715_v10, %v6207_v25 }
  0xb7   :  { %5495 = vmatpush3.bf16.msra.mxu0 %v3254_v3  ;;  %5880 = vmatpush3.bf16.msra.mxu1 %v3254_v3  ;;  %v1629_v16 = vadd.f32 %v4929_v7, %v1241_v4  ;;  %v1630_v8 = vadd.f32 %v4930_v14, %v1242_v6  ;;  %v5025_v9 = vsel %vm1729_vm8, 1.0, %v6094_v28  ;;  %v5026_v11 = vsel %vm1730_vm9, 1.0, %v6094_v28 }
  0xb8   :  { %vm2118_vm11 = vcmp.eq.s32.totalorder %v78_v49, %v6207_v25  ;;  %v5121_v32 = vsel %vm2117_vm10, 1.0, %v6094_v28  ;;  %vm2505_vm12 = vcmp.eq.s32.totalorder %v6715_v10, %v6209_v26  ;;  %vm2506_vm13 = vcmp.eq.s32.totalorder %v78_v49, %v6209_v26 }
  0xb9   :  { %v2017_v46 = vadd.f32 %v5025_v9, %v1629_v16  ;;  %v2018_v12 = vadd.f32 %v5026_v11, %v1630_v8  ;;  %v5122_v15 = vsel %vm2118_vm11, 1.0, %v6094_v28  ;;  %v5217_v29 = vsel %vm2505_vm12, 1.0, %v6094_v28 }
  0xba   :  { %v5218_v30 = vsel %vm2506_vm13, 1.0, %v6094_v28  ;;  %vm2893_vm14 = vcmp.eq.s32.totalorder %v6715_v10, %v6211_v27  ;;  %vm2894_vm15 = vcmp.eq.s32.totalorder %v78_v49, %v6211_v27  ;;  %v61_v63 = vadd.s32 96, %v6158_v2 }
  0xbb   :  { %v2405_v33 = vadd.f32 %v5121_v32, %v2017_v46  ;;  %v2406_v19 = vadd.f32 %v5122_v15, %v2018_v12  ;;  %v5313_v34 = vsel %vm2893_vm14, 1.0, %v6094_v28  ;;  %v5314_v35 = vsel %vm2894_vm15, 1.0, %v6094_v28 }
  0xbc   :  { %v62_v36 = vadd.s32 104, %v6158_v2  ;;  %vm161_vm0 = vcmp.eq.s32.totalorder %v61_v63, %v6197_v20  ;;  %vm549_vm1 = vcmp.eq.s32.totalorder %v61_v63, %v6199_v21  ;;  %vm937_vm2 = vcmp.eq.s32.totalorder %v61_v63, %v6201_v22 }
  0xbd   :  { %v2793_v37 = vadd.f32 %v5217_v29, %v2405_v33  ;;  %v2794_v10 = vadd.f32 %v5218_v30, %v2406_v19  ;;  %v4625_v38 = vsel %vm161_vm0, 1.0, %v6094_v28  ;;  %v4721_v39 = vsel %vm549_vm1, 1.0, %v6094_v28 }
  0xbe   :  { %vm162_vm3 = vcmp.eq.s32.totalorder %v62_v36, %v6197_v20  ;;  %vm550_vm4 = vcmp.eq.s32.totalorder %v62_v36, %v6199_v21  ;;  %v837_v40 = vadd.f32 %v4721_v39, %v4625_v38  ;;  %vm938_vm5 = vcmp.eq.s32.totalorder %v62_v36, %v6201_v22 }
  0xbf   :  { %v3181_v13 = vadd.f32 %v5313_v34, %v2793_v37  ;;  %v3182_v41 = vadd.f32 %v5314_v35, %v2794_v10  ;;  %v4626_v42 = vsel %vm162_vm3, 1.0, %v6094_v28  ;;  %v4722_v31 = vsel %vm550_vm4, 1.0, %v6094_v28 }
  0xc0   :  { %v838_v43 = vadd.f32 %v4722_v31, %v4626_v42  ;;  %v4817_v62 = vsel %vm937_vm2, 1.0, %v6094_v28  ;;  %v4818_v44 = vsel %vm938_vm5, 1.0, %v6094_v28  ;;  %vm1325_vm6 = vcmp.eq.s32.totalorder %v61_v63, %v6203_v23 }
  0xc1   :  { %v3263_v45 = vpack.c.bf16 %v3182_v41, %v3181_v13  ;;  %v1225_v47 = vadd.f32 %v4817_v62, %v837_v40  ;;  %vm1326_vm7 = vcmp.eq.s32.totalorder %v62_v36, %v6203_v23  ;;  %v4913_v48 = vsel %vm1325_vm6, 1.0, %v6094_v28 }
  0xc2   :  { %v1226_v49 = vadd.f32 %v4818_v44, %v838_v43  ;;  %v4914_v50 = vsel %vm1326_vm7, 1.0, %v6094_v28  ;;  %vm1713_vm8 = vcmp.eq.s32.totalorder %v61_v63, %v6205_v24  ;;  %vm1714_vm9 = vcmp.eq.s32.totalorder %v62_v36, %v6205_v24 }
  0xc3   :  { %5496 = vmatprep.subr.bf16.mxu0 %v3263_v45  ;;  %5873 = vmatprep.subr.bf16.mxu1 %v3263_v45  ;;  %v1613_v51 = vadd.f32 %v4913_v48, %v1225_v47  ;;  %v5009_v17 = vsel %vm1713_vm8, 1.0, %v6094_v28  ;;  %v5010_v18 = vsel %vm1714_vm9, 1.0, %v6094_v28  ;;  %vm2101_vm10 = vcmp.eq.s32.totalorder %v61_v63, %v6207_v25 }
  0xc4   :  { %v1614_v52 = vadd.f32 %v4914_v50, %v1226_v49  ;;  %vm2102_vm11 = vcmp.eq.s32.totalorder %v62_v36, %v6207_v25  ;;  %v5105_v53 = vsel %vm2101_vm10, 1.0, %v6094_v28  ;;  %vm2489_vm12 = vcmp.eq.s32.totalorder %v61_v63, %v6209_v26 }
  0xc5   :  { %v2001_v54 = vadd.f32 %v5009_v17, %v1613_v51  ;;  %v5106_v55 = vsel %vm2102_vm11, 1.0, %v6094_v28  ;;  %vm2490_vm13 = vcmp.eq.s32.totalorder %v62_v36, %v6209_v26  ;;  %v5201_v56 = vsel %vm2489_vm12, 1.0, %v6094_v28 }
  0xc6   :  { %v2002_v57 = vadd.f32 %v5010_v18, %v1614_v52  ;;  %v5202_v58 = vsel %vm2490_vm13, 1.0, %v6094_v28  ;;  %vm2877_vm14 = vcmp.eq.s32.totalorder %v61_v63, %v6211_v27  ;;  %vm2878_vm15 = vcmp.eq.s32.totalorder %v62_v36, %v6211_v27 }
  0xc7   :  { %v2389_v59 = vadd.f32 %v5105_v53, %v2001_v54  ;;  %v5297_v60 = vsel %vm2877_vm14, 1.0, %v6094_v28  ;;  %v5298_v61 = vsel %vm2878_vm15, 1.0, %v6094_v28  ;;  %v79_v0 = vadd.s32 240, %v6158_v2 }
  0xc8   :  { %v2390_v1 = vadd.f32 %v5106_v55, %v2002_v57  ;;  %v80_v3 = vadd.s32 248, %v6158_v2  ;;  %v6827_v4 = vadd.s32 112, %v6158_v2  ;;  %v6830_v6 = vadd.s32 120, %v6158_v2 }
  0xc9   :  { %v2777_v7 = vadd.f32 %v5201_v56, %v2389_v59  ;;  %vm179_vm0 = vcmp.eq.s32.totalorder %v79_v0, %v6197_v20  ;;  %vm567_vm1 = vcmp.eq.s32.totalorder %v79_v0, %v6199_v21  ;;  %vm955_vm2 = vcmp.eq.s32.totalorder %v79_v0, %v6201_v22 }
  0xca   :  { %v2778_v14 = vadd.f32 %v5202_v58, %v2390_v1  ;;  %vm180_vm3 = vcmp.eq.s32.totalorder %v80_v3, %v6197_v20  ;;  %v4643_v16 = vsel %vm179_vm0, 1.0, %v6094_v28  ;;  %vm568_vm4 = vcmp.eq.s32.totalorder %v80_v3, %v6199_v21 }
  0xcb   :  { %v3165_v8 = vadd.f32 %v5297_v60, %v2777_v7  ;;  %v4644_v9 = vsel %vm180_vm3, 1.0, %v6094_v28  ;;  %v4739_v11 = vsel %vm567_vm1, 1.0, %v6094_v28  ;;  %v4740_v32 = vsel %vm568_vm4, 1.0, %v6094_v28 }
  0xcc   :  { %v3166_v46 = vadd.f32 %v5298_v61, %v2778_v14  ;;  %v855_v12 = vadd.f32 %v4739_v11, %v4643_v16  ;;  %v856_v15 = vadd.f32 %v4740_v32, %v4644_v9  ;;  %vm956_vm5 = vcmp.eq.s32.totalorder %v80_v3, %v6201_v22 }
  0xcd   :  { %v4835_v29 = vsel %vm955_vm2, 1.0, %v6094_v28  ;;  %v4836_v30 = vsel %vm956_vm5, 1.0, %v6094_v28  ;;  %vm1343_vm6 = vcmp.eq.s32.totalorder %v79_v0, %v6203_v23  ;;  %vm1344_vm7 = vcmp.eq.s32.totalorder %v80_v3, %v6203_v23 }
  0xce   :  { %v3255_v63 = vpack.c.bf16 %v3166_v46, %v3165_v8  ;;  %v1243_v33 = vadd.f32 %v4835_v29, %v855_v12  ;;  %v1244_v19 = vadd.f32 %v4836_v30, %v856_v15  ;;  %v4931_v34 = vsel %vm1343_vm6, 1.0, %v6094_v28 }
  0xcf   :  { %v4932_v35 = vsel %vm1344_vm7, 1.0, %v6094_v28  ;;  %vm1731_vm8 = vcmp.eq.s32.totalorder %v79_v0, %v6205_v24  ;;  %vm1732_vm9 = vcmp.eq.s32.totalorder %v80_v3, %v6205_v24  ;;  %vm2119_vm10 = vcmp.eq.s32.totalorder %v79_v0, %v6207_v25 }
  0xd0   :  { %5497 = vmatpush3.bf16.msra.mxu0 %v3255_v63  ;;  %5881 = vmatpush3.bf16.msra.mxu1 %v3255_v63  ;;  %v1631_v36 = vadd.f32 %v4931_v34, %v1243_v33  ;;  %v1632_v37 = vadd.f32 %v4932_v35, %v1244_v19  ;;  %v5027_v10 = vsel %vm1731_vm8, 1.0, %v6094_v28  ;;  %v5028_v38 = vsel %vm1732_vm9, 1.0, %v6094_v28 }
  0xd1   :  { %vm2120_vm11 = vcmp.eq.s32.totalorder %v80_v3, %v6207_v25  ;;  %v5123_v39 = vsel %vm2119_vm10, 1.0, %v6094_v28  ;;  %vm2507_vm12 = vcmp.eq.s32.totalorder %v79_v0, %v6209_v26  ;;  %vm2508_vm13 = vcmp.eq.s32.totalorder %v80_v3, %v6209_v26 }
  0xd2   :  { %v2019_v40 = vadd.f32 %v5027_v10, %v1631_v36  ;;  %v2020_v13 = vadd.f32 %v5028_v38, %v1632_v37  ;;  %v5124_v41 = vsel %vm2120_vm11, 1.0, %v6094_v28  ;;  %v5219_v42 = vsel %vm2507_vm12, 1.0, %v6094_v28 }
  0xd3   :  { %v5220_v31 = vsel %vm2508_vm13, 1.0, %v6094_v28  ;;  %vm2895_vm14 = vcmp.eq.s32.totalorder %v79_v0, %v6211_v27  ;;  %vm2896_vm15 = vcmp.eq.s32.totalorder %v80_v3, %v6211_v27  ;;  %vm163_vm0 = vcmp.eq.s32.totalorder %v6827_v4, %v6197_v20 }
  0xd4   :  { %v2407_v43 = vadd.f32 %v5123_v39, %v2019_v40  ;;  %v2408_v62 = vadd.f32 %v5124_v41, %v2020_v13  ;;  %v5315_v44 = vsel %vm2895_vm14, 1.0, %v6094_v28  ;;  %v5316_v45 = vsel %vm2896_vm15, 1.0, %v6094_v28 }
  0xd5   :  { %vm164_vm1 = vcmp.eq.s32.totalorder %v6830_v6, %v6197_v20  ;;  %v4627_v47 = vsel %vm163_vm0, 1.0, %v6094_v28  ;;  %vm551_vm2 = vcmp.eq.s32.totalorder %v6827_v4, %v6199_v21  ;;  %vm552_vm3 = vcmp.eq.s32.totalorder %v6830_v6, %v6199_v21 }
  0xd6   :  { %v2795_v48 = vadd.f32 %v5219_v42, %v2407_v43  ;;  %v2796_v49 = vadd.f32 %v5220_v31, %v2408_v62  ;;  %v4628_v50 = vsel %vm164_vm1, 1.0, %v6094_v28  ;;  %v4723_v51 = vsel %vm551_vm2, 1.0, %v6094_v28  ;;  %v5892_v43 = vld [vmem:[#allocation3] ss:$24 sps:$4 sm:$0xff]  }
  0xd7   :  { %v4724_v17 = vsel %vm552_vm3, 1.0, %v6094_v28  ;;  %v839_v18 = vadd.f32 %v4723_v51, %v4627_v47  ;;  %vm939_vm4 = vcmp.eq.s32.totalorder %v6827_v4, %v6201_v22  ;;  %vm940_vm5 = vcmp.eq.s32.totalorder %v6830_v6, %v6201_v22  ;;  %v5895_v62 = vld [vmem:[#allocation3 + $0x1e0] ss:$24 sps:$4 sm:$0xff]  }
  0xd8   :  { %v3183_v52 = vadd.f32 %v5315_v44, %v2795_v48  ;;  %v3184_v53 = vadd.f32 %v5316_v45, %v2796_v49  ;;  %v840_v54 = vadd.f32 %v4724_v17, %v4628_v50  ;;  %v4819_v55 = vsel %vm939_vm4, 1.0, %v6094_v28  ;;  %v5898_v49 = vld [vmem:[#allocation3 + $0x34] ss:$24 sps:$4 sm:$0xff]  }
  0xd9   :  { %v4820_v56 = vsel %vm940_vm5, 1.0, %v6094_v28  ;;  %v1227_v57 = vadd.f32 %v4819_v55, %v839_v18  ;;  %vm1327_vm6 = vcmp.eq.s32.totalorder %v6827_v4, %v6203_v23  ;;  %vm1328_vm7 = vcmp.eq.s32.totalorder %v6830_v6, %v6203_v23  ;;  %v5900_v50 = vld [vmem:[#allocation3 + $0x214] ss:$24 sps:$4 sm:$0xff]  }
  0xda   :  { %v3264_v58 = vpack.c.bf16 %v3184_v53, %v3183_v52  ;;  %v1228_v59 = vadd.f32 %v4820_v56, %v840_v54  ;;  %v4915_v60 = vsel %vm1327_vm6, 1.0, %v6094_v28  ;;  %v4916_v61 = vsel %vm1328_vm7, 1.0, %v6094_v28 }
  0xdb   :  { %v1615_v0 = vadd.f32 %v4915_v60, %v1227_v57  ;;  %vm1715_vm8 = vcmp.eq.s32.totalorder %v6827_v4, %v6205_v24  ;;  %vm1716_vm9 = vcmp.eq.s32.totalorder %v6830_v6, %v6205_v24  ;;  %vm2103_vm10 = vcmp.eq.s32.totalorder %v6827_v4, %v6207_v25 }
  0xdc   :  { %5498 = vmatprep.subr.bf16.mxu0 %v3264_v58  ;;  %5874 = vmatprep.subr.bf16.mxu1 %v3264_v58  ;;  %v1616_v1 = vadd.f32 %v4916_v61, %v1228_v59  ;;  %v5011_v3 = vsel %vm1715_vm8, 1.0, %v6094_v28  ;;  %v5012_v7 = vsel %vm1716_vm9, 1.0, %v6094_v28  ;;  %vm2104_vm11 = vcmp.eq.s32.totalorder %v6830_v6, %v6207_v25 }
  0xdd   :  { %v2003_v14 = vadd.f32 %v5011_v3, %v1615_v0  ;;  %v5107_v16 = vsel %vm2103_vm10, 1.0, %v6094_v28  ;;  %v5108_v8 = vsel %vm2104_vm11, 1.0, %v6094_v28  ;;  %vm2491_vm12 = vcmp.eq.s32.totalorder %v6827_v4, %v6209_v26 }
  0xde   :  { %v2004_v9 = vadd.f32 %v5012_v7, %v1616_v1  ;;  %vm2492_vm13 = vcmp.eq.s32.totalorder %v6830_v6, %v6209_v26  ;;  %v5203_v11 = vsel %vm2491_vm12, 1.0, %v6094_v28  ;;  %vm2879_vm14 = vcmp.eq.s32.totalorder %v6827_v4, %v6211_v27  ;;  %v5902_v7 = vld [vmem:[#allocation3 + $0x30] ss:$24 sps:$4 sm:$0xff]  }
  0xdf   :  { %v2391_v32 = vadd.f32 %v5107_v16, %v2003_v14  ;;  %v5204_v46 = vsel %vm2492_vm13, 1.0, %v6094_v28  ;;  %vm2880_vm15 = vcmp.eq.s32.totalorder %v6830_v6, %v6211_v27  ;;  %v5299_v12 = vsel %vm2879_vm14, 1.0, %v6094_v28  ;;  %v5903_v14 = vld [vmem:[#allocation3 + $0x210] ss:$24 sps:$4 sm:$0xff]  }
  0xe0   :  { %v2392_v15 = vadd.f32 %v5108_v8, %v2004_v9  ;;  %v5300_v29 = vsel %vm2880_vm15, 1.0, %v6094_v28  ;;  %v6913_v30 = vadd.s32 384, %v6158_v2  ;;  %v6916_v63 = vadd.s32 392, %v6158_v2 }
  0xe1   :  { %v2779_v33 = vadd.f32 %v5203_v11, %v2391_v32  ;;  %v6919_v4 = vadd.s32 256, %v6158_v2  ;;  %v6922_v19 = vadd.s32 264, %v6158_v2  ;;  %v6925_v6 = vadd.s32 400, %v6158_v2  ;;  %v5904_v32 = vld [vmem:[#allocation3 + $0x64] ss:$24 sps:$4 sm:$0xff]  }
  0xe2   :  { %v2780_v34 = vadd.f32 %v5204_v46, %v2392_v15  ;;  %vm197_vm0 = vcmp.eq.s32.totalorder %v6913_v30, %v6197_v20  ;;  %vm198_vm1 = vcmp.eq.s32.totalorder %v6916_v63, %v6197_v20  ;;  %vm585_vm2 = vcmp.eq.s32.totalorder %v6913_v30, %v6199_v21  ;;  %v5906_v46 = vld [vmem:[#allocation3 + $0x244] ss:$24 sps:$4 sm:$0xff]  }
  0xe3   :  { %v3167_v35 = vadd.f32 %v5299_v12, %v2779_v33  ;;  %v4661_v36 = vsel %vm197_vm0, 1.0, %v6094_v28  ;;  %v4662_v37 = vsel %vm198_vm1, 1.0, %v6094_v28  ;;  %vm586_vm3 = vcmp.eq.s32.totalorder %v6916_v63, %v6199_v21 }
  0xe4   :  { %v3168_v10 = vadd.f32 %v5300_v29, %v2780_v34  ;;  %v4757_v38 = vsel %vm585_vm2, 1.0, %v6094_v28  ;;  %v4758_v39 = vsel %vm586_vm3, 1.0, %v6094_v28  ;;  %vm973_vm4 = vcmp.eq.s32.totalorder %v6913_v30, %v6201_v22 }
  0xe5   :  { %v873_v40 = vadd.f32 %v4757_v38, %v4661_v36  ;;  %v874_v13 = vadd.f32 %v4758_v39, %v4662_v37  ;;  %vm974_vm5 = vcmp.eq.s32.totalorder %v6916_v63, %v6201_v22  ;;  %v4853_v41 = vsel %vm973_vm4, 1.0, %v6094_v28 }
  0xe6   :  { %v3256_v42 = vpack.c.bf16 %v3168_v10, %v3167_v35  ;;  %v4854_v31 = vsel %vm974_vm5, 1.0, %v6094_v28  ;;  %vm1361_vm6 = vcmp.eq.s32.totalorder %v6913_v30, %v6203_v23  ;;  %vm1362_vm7 = vcmp.eq.s32.totalorder %v6916_v63, %v6203_v23 }
  0xe7   :  { %v1261_v44 = vadd.f32 %v4853_v41, %v873_v40  ;;  %v1262_v45 = vadd.f32 %v4854_v31, %v874_v13  ;;  %v4949_v47 = vsel %vm1361_vm6, 1.0, %v6094_v28  ;;  %v4950_v48 = vsel %vm1362_vm7, 1.0, %v6094_v28 }
  0xe8   :  { %5499 = vmatpush3.bf16.msra.mxu0 %v3256_v42  ;;  %5882 = vmatpush3.bf16.msra.mxu1 %v3256_v42  ;;  %vm1749_vm8 = vcmp.eq.s32.totalorder %v6913_v30, %v6205_v24  ;;  %vm1750_vm9 = vcmp.eq.s32.totalorder %v6916_v63, %v6205_v24  ;;  %vm2137_vm10 = vcmp.eq.s32.totalorder %v6913_v30, %v6207_v25  ;;  %v6958_v51 = vadd.s32 408, %v6158_v2 }
  0xe9   :  { %v1649_v17 = vadd.f32 %v4949_v47, %v1261_v44  ;;  %v1650_v18 = vadd.f32 %v4950_v48, %v1262_v45  ;;  %v5045_v52 = vsel %vm1749_vm8, 1.0, %v6094_v28  ;;  %v5046_v53 = vsel %vm1750_vm9, 1.0, %v6094_v28  ;;  %v5909_v44 = vld [vmem:[#allocation3 + $0x240] ss:$24 sps:$4 sm:$0xff]  }
  0xea   :  { %vm2138_vm11 = vcmp.eq.s32.totalorder %v6916_v63, %v6207_v25  ;;  %v5141_v54 = vsel %vm2137_vm10, 1.0, %v6094_v28  ;;  %vm2525_vm12 = vcmp.eq.s32.totalorder %v6913_v30, %v6209_v26  ;;  %vm2526_vm13 = vcmp.eq.s32.totalorder %v6916_v63, %v6209_v26 }
  0xeb   :  { %3906 = vmatmul.mubr.bf16.vlgmr.msra.gmra.mrb[0].mxu0 %v5892_v43  ;;  %3986 = vmatmul.mubr.bf16.vlgmr.msra.gmra.mrb[0].mxu1 %v5895_v62  ;;  %v2037_v55 = vadd.f32 %v5045_v52, %v1649_v17  ;;  %v2038_v56 = vadd.f32 %v5046_v53, %v1650_v18  ;;  %v5142_v57 = vsel %vm2138_vm11, 1.0, %v6094_v28  ;;  %v5237_v58 = vsel %vm2525_vm12, 1.0, %v6094_v28  ;;  %v5908_v62 = vld [vmem:[#allocation3 + $0x60] ss:$24 sps:$4 sm:$0xff]   ;;  %v5910_v17 = vld [vmem:[#allocation3 + $0x94] ss:$24 sps:$4 sm:$0xff]  }
  0xec   :  { %3913 = vmatprep.mubr.bf16.mxu0 %v5898_v49  ;;  %3993 = vmatprep.mubr.bf16.mxu1 %v5900_v50  ;;  %v5238_v59 = vsel %vm2526_vm13, 1.0, %v6094_v28  ;;  %vm2913_vm14 = vcmp.eq.s32.totalorder %v6913_v30, %v6211_v27  ;;  %vm2914_vm15 = vcmp.eq.s32.totalorder %v6916_v63, %v6211_v27  ;;  %vm181_vm0 = vcmp.eq.s32.totalorder %v6919_v4, %v6197_v20  ;;  %v5912_v18 = vld [vmem:[#allocation3 + $0x274] ss:$24 sps:$4 sm:$0xff]  }
  0xed   :  { %v2425_v60 = vadd.f32 %v5141_v54, %v2037_v55  ;;  %v2426_v61 = vadd.f32 %v5142_v57, %v2038_v56  ;;  %v5333_v0 = vsel %vm2913_vm14, 1.0, %v6094_v28  ;;  %v5334_v1 = vsel %vm2914_vm15, 1.0, %v6094_v28 }
  0xee   :  { %vm182_vm1 = vcmp.eq.s32.totalorder %v6922_v19, %v6197_v20  ;;  %v4645_v3 = vsel %vm181_vm0, 1.0, %v6094_v28  ;;  %vm569_vm2 = vcmp.eq.s32.totalorder %v6919_v4, %v6199_v21  ;;  %vm570_vm3 = vcmp.eq.s32.totalorder %v6922_v19, %v6199_v21 }
  0xef   :  { %v2813_v16 = vadd.f32 %v5237_v58, %v2425_v60  ;;  %v2814_v8 = vadd.f32 %v5238_v59, %v2426_v61  ;;  %v4646_v9 = vsel %vm182_vm1, 1.0, %v6094_v28  ;;  %v4741_v11 = vsel %vm569_vm2, 1.0, %v6094_v28 }
  0xf0   :  { %v4742_v12 = vsel %vm570_vm3, 1.0, %v6094_v28  ;;  %v857_v15 = vadd.f32 %v4741_v11, %v4645_v3  ;;  %vm957_vm4 = vcmp.eq.s32.totalorder %v6919_v4, %v6201_v22  ;;  %vm958_vm5 = vcmp.eq.s32.totalorder %v6922_v19, %v6201_v22  ;;  %v5914_v11 = vld [vmem:[#allocation3 + $0x90] ss:$24 sps:$4 sm:$0xff]  }
  0xf1   :  { %v3201_v29 = vadd.f32 %v5333_v0, %v2813_v16  ;;  %v3202_v30 = vadd.f32 %v5334_v1, %v2814_v8  ;;  %v858_v63 = vadd.f32 %v4742_v12, %v4646_v9  ;;  %v4837_v33 = vsel %vm957_vm4, 1.0, %v6094_v28  ;;  %v5916_v12 = vld [vmem:[#allocation3 + $0xc4] ss:$24 sps:$4 sm:$0xff]  }
  0xf2   :  { %v4838_v34 = vsel %vm958_vm5, 1.0, %v6094_v28  ;;  %v1245_v35 = vadd.f32 %v4837_v33, %v857_v15  ;;  %vm1345_vm6 = vcmp.eq.s32.totalorder %v6919_v4, %v6203_v23  ;;  %vm1346_vm7 = vcmp.eq.s32.totalorder %v6922_v19, %v6203_v23  ;;  %v5918_v15 = vld [vmem:[#allocation3 + $0x2a4] ss:$24 sps:$4 sm:$0xff]  }
  0xf3   :  { %3914 = vmatmul.mubr.bf16.gmra.mrb[4].mxu0 %v5902_v7  ;;  %3994 = vmatmul.mubr.bf16.gmra.mrb[4].mxu1 %v5903_v14  ;;  %v3273_v36 = vpack.c.bf16 %v3202_v30, %v3201_v29  ;;  %v1246_v37 = vadd.f32 %v4838_v34, %v858_v63  ;;  %v4933_v10 = vsel %vm1345_vm6, 1.0, %v6094_v28  ;;  %v4934_v38 = vsel %vm1346_vm7, 1.0, %v6094_v28 }
  0xf4   :  { %3921 = vmatprep.mubr.bf16.mxu0 %v5904_v32  ;;  %4001 = vmatprep.mubr.bf16.mxu1 %v5906_v46  ;;  %v1633_v39 = vadd.f32 %v4933_v10, %v1245_v35  ;;  %vm1733_vm8 = vcmp.eq.s32.totalorder %v6919_v4, %v6205_v24  ;;  %vm1734_vm9 = vcmp.eq.s32.totalorder %v6922_v19, %v6205_v24  ;;  %v7007_v40 = vadd.s32 272, %v6158_v2  ;;  %v5915_v32 = vld [vmem:[#allocation3 + $0x270] ss:$24 sps:$4 sm:$0xff]  }
  0xf5   :  { %5596 = vmatprep.subr.bf16.mxu1 %v3273_v36  ;;  %v1634_v13 = vadd.f32 %v4934_v38, %v1246_v37  ;;  %v5029_v41 = vsel %vm1733_vm8, 1.0, %v6094_v28  ;;  %v5030_v42 = vsel %vm1734_vm9, 1.0, %v6094_v28  ;;  %vm2121_vm10 = vcmp.eq.s32.totalorder %v6919_v4, %v6207_v25 }
  0xf6   :  { %v2021_v31 = vadd.f32 %v5029_v41, %v1633_v39  ;;  %vm2122_vm11 = vcmp.eq.s32.totalorder %v6922_v19, %v6207_v25  ;;  %v5125_v43 = vsel %vm2121_vm10, 1.0, %v6094_v28  ;;  %vm2509_vm12 = vcmp.eq.s32.totalorder %v6919_v4, %v6209_v26 }
  0xf7   :  { %v2022_v45 = vadd.f32 %v5030_v42, %v1634_v13  ;;  %v5126_v47 = vsel %vm2122_vm11, 1.0, %v6094_v28  ;;  %vm2510_vm13 = vcmp.eq.s32.totalorder %v6922_v19, %v6209_v26  ;;  %v5221_v48 = vsel %vm2509_vm12, 1.0, %v6094_v28 }
  0xf8   :  { %v2409_v49 = vadd.f32 %v5125_v43, %v2021_v31  ;;  %v5222_v50 = vsel %vm2510_vm13, 1.0, %v6094_v28  ;;  %vm2897_vm14 = vcmp.eq.s32.totalorder %v6919_v4, %v6211_v27  ;;  %vm2898_vm15 = vcmp.eq.s32.totalorder %v6922_v19, %v6211_v27 }
  0xf9   :  { %v2410_v52 = vadd.f32 %v5126_v47, %v2022_v45  ;;  %v5317_v53 = vsel %vm2897_vm14, 1.0, %v6094_v28  ;;  %v5318_v54 = vsel %vm2898_vm15, 1.0, %v6094_v28  ;;  %vm199_vm0 = vcmp.eq.s32.totalorder %v6925_v6, %v6197_v20 }
  0xfa   :  { %v2797_v55 = vadd.f32 %v5221_v48, %v2409_v49  ;;  %vm200_vm1 = vcmp.eq.s32.totalorder %v6958_v51, %v6197_v20  ;;  %v4663_v56 = vsel %vm199_vm0, 1.0, %v6094_v28  ;;  %vm587_vm2 = vcmp.eq.s32.totalorder %v6925_v6, %v6199_v21 }
  0xfb   :  { %3922 = vmatmul.mubr.bf16.gmra.mrb[8].mxu0 %v5908_v62  ;;  %4002 = vmatmul.mubr.bf16.gmra.mrb[8].mxu1 %v5909_v44  ;;  %v2798_v4 = vadd.f32 %v5222_v50, %v2410_v52  ;;  %v4664_v19 = vsel %vm200_vm1, 1.0, %v6094_v28  ;;  %vm588_vm3 = vcmp.eq.s32.totalorder %v6958_v51, %v6199_v21  ;;  %v4759_v57 = vsel %vm587_vm2, 1.0, %v6094_v28  ;;  %v5920_v62 = vld [vmem:[#allocation3 + $0xc0] ss:$24 sps:$4 sm:$0xff]   ;;  %v5922_v50 = vld [vmem:[#allocation3 + $0xf4] ss:$24 sps:$4 sm:$0xff]  }
  0xfc   :  { %v3185_v58 = vadd.f32 %v5317_v53, %v2797_v55  ;;  %v4760_v59 = vsel %vm588_vm3, 1.0, %v6094_v28  ;;  %v875_v60 = vadd.f32 %v4759_v57, %v4663_v56  ;;  %vm975_vm4 = vcmp.eq.s32.totalorder %v6925_v6, %v6201_v22  ;;  %3929 = vmatprep.mubr.bf16.mxu0 %v5910_v17  ;;  %4009 = vmatprep.mubr.bf16.mxu1 %v5912_v18  ;;  %v5921_v44 = vld [vmem:[#allocation3 + $0x2a0] ss:$24 sps:$4 sm:$0xff]   ;;  %v5924_v53 = vld [vmem:[#allocation3 + $0x2d4] ss:$24 sps:$4 sm:$0xff]  }
  0xfd   :  { %v3186_v61 = vadd.f32 %v5318_v54, %v2798_v4  ;;  %v876_v0 = vadd.f32 %v4760_v59, %v4664_v19  ;;  %vm976_vm5 = vcmp.eq.s32.totalorder %v6958_v51, %v6201_v22  ;;  %v4855_v1 = vsel %vm975_vm4, 1.0, %v6094_v28 }
  0xfe   :  { %v4856_v3 = vsel %vm976_vm5, 1.0, %v6094_v28  ;;  %v1263_v7 = vadd.f32 %v4855_v1, %v875_v60  ;;  %vm1363_vm6 = vcmp.eq.s32.totalorder %v6925_v6, %v6203_v23  ;;  %vm1364_vm7 = vcmp.eq.s32.totalorder %v6958_v51, %v6203_v23 }
  0xff   :  { %v3265_v14 = vpack.c.bf16 %v3186_v61, %v3185_v58  ;;  %v1264_v16 = vadd.f32 %v4856_v3, %v876_v0  ;;  %v4951_v8 = vsel %vm1363_vm6, 1.0, %v6094_v28  ;;  %v4952_v9 = vsel %vm1364_vm7, 1.0, %v6094_v28 }
 0x100   :  { %v1651_v46 = vadd.f32 %v4951_v8, %v1263_v7  ;;  %vm1751_vm8 = vcmp.eq.s32.totalorder %v6925_v6, %v6205_v24  ;;  %vm1752_vm9 = vcmp.eq.s32.totalorder %v6958_v51, %v6205_v24  ;;  %vm2139_vm10 = vcmp.eq.s32.totalorder %v6925_v6, %v6207_v25 }
 0x101   :  { %5597 = vmatpush3.bf16.msra.mxu1 %v3265_v14  ;;  %v1652_v29 = vadd.f32 %v4952_v9, %v1264_v16  ;;  %v5047_v30 = vsel %vm1751_vm8, 1.0, %v6094_v28  ;;  %v5048_v63 = vsel %vm1752_vm9, 1.0, %v6094_v28  ;;  %vm2140_vm11 = vcmp.eq.s32.totalorder %v6958_v51, %v6207_v25  ;;  %v5926_v16 = vld [vmem:[#allocation3 + $0xf0] ss:$24 sps:$4 sm:$0xff]  }
 0x102   :  { %v2039_v33 = vadd.f32 %v5047_v30, %v1651_v46  ;;  %v5143_v34 = vsel %vm2139_vm10, 1.0, %v6094_v28  ;;  %v5144_v35 = vsel %vm2140_vm11, 1.0, %v6094_v28  ;;  %vm2527_vm12 = vcmp.eq.s32.totalorder %v6925_v6, %v6209_v26 }
 0x103   :  { %v2040_v36 = vadd.f32 %v5048_v63, %v1652_v29  ;;  %vm2528_vm13 = vcmp.eq.s32.totalorder %v6958_v51, %v6209_v26  ;;  %v5239_v37 = vsel %vm2527_vm12, 1.0, %v6094_v28  ;;  %vm2915_vm14 = vcmp.eq.s32.totalorder %v6925_v6, %v6211_v27  ;;  %3930 = vmatmul.mubr.bf16.gmra.mrb[12].mxu0 %v5914_v11  ;;  %4010 = vmatmul.mubr.bf16.gmra.mrb[12].mxu1 %v5915_v32  ;;  %v5927_v32 = vld [vmem:[#allocation3 + $0x2d0] ss:$24 sps:$4 sm:$0xff]  }
 0x104   :  { %v2427_v10 = vadd.f32 %v5143_v34, %v2039_v33  ;;  %v5240_v38 = vsel %vm2528_vm13, 1.0, %v6094_v28  ;;  %vm2916_vm15 = vcmp.eq.s32.totalorder %v6958_v51, %v6211_v27  ;;  %v5335_v39 = vsel %vm2915_vm14, 1.0, %v6094_v28  ;;  %3937 = vmatprep.mubr.bf16.mxu0 %v5916_v12  ;;  %4017 = vmatprep.mubr.bf16.mxu1 %v5918_v15 }
 0x105   :  { %v2428_v13 = vadd.f32 %v5144_v35, %v2040_v36  ;;  %v5336_v41 = vsel %vm2916_vm15, 1.0, %v6094_v28  ;;  %v84_v42 = vadd.s32 280, %v6158_v2  ;;  %vm183_vm0 = vcmp.eq.s32.totalorder %v7007_v40, %v6197_v20 }
 0x106   :  { %v2815_v6 = vadd.f32 %v5239_v37, %v2427_v10  ;;  %v4647_v31 = vsel %vm183_vm0, 1.0, %v6094_v28  ;;  %vm571_vm1 = vcmp.eq.s32.totalorder %v7007_v40, %v6199_v21  ;;  %vm959_vm2 = vcmp.eq.s32.totalorder %v7007_v40, %v6201_v22 }
 0x107   :  { %v2816_v51 = vadd.f32 %v5240_v38, %v2428_v13  ;;  %vm184_vm3 = vcmp.eq.s32.totalorder %v84_v42, %v6197_v20  ;;  %vm572_vm4 = vcmp.eq.s32.totalorder %v84_v42, %v6199_v21  ;;  %v4743_v43 = vsel %vm571_vm1, 1.0, %v6094_v28 }
 0x108   :  { %v3203_v45 = vadd.f32 %v5335_v39, %v2815_v6  ;;  %v4648_v47 = vsel %vm184_vm3, 1.0, %v6094_v28  ;;  %v4744_v48 = vsel %vm572_vm4, 1.0, %v6094_v28  ;;  %v859_v49 = vadd.f32 %v4743_v43, %v4647_v31 }
 0x109   :  { %v3204_v17 = vadd.f32 %v5336_v41, %v2816_v51  ;;  %v860_v18 = vadd.f32 %v4744_v48, %v4648_v47  ;;  %vm960_vm5 = vcmp.eq.s32.totalorder %v84_v42, %v6201_v22  ;;  %v4839_v52 = vsel %vm959_vm2, 1.0, %v6094_v28 }
 0x10a   :  { %v4840_v54 = vsel %vm960_vm5, 1.0, %v6094_v28  ;;  %v1247_v55 = vadd.f32 %v4839_v52, %v859_v49  ;;  %vm1347_vm6 = vcmp.eq.s32.totalorder %v7007_v40, %v6203_v23  ;;  %vm1348_vm7 = vcmp.eq.s32.totalorder %v84_v42, %v6203_v23 }
 0x10b   :  { %v3274_v56 = vpack.c.bf16 %v3204_v17, %v3203_v45  ;;  %v1248_v4 = vadd.f32 %v4840_v54, %v860_v18  ;;  %v4935_v19 = vsel %vm1347_vm6, 1.0, %v6094_v28  ;;  %v4936_v57 = vsel %vm1348_vm7, 1.0, %v6094_v28  ;;  %3938 = vmatmul.mubr.bf16.gmra.mrb[16].mxu0 %v5920_v62  ;;  %4018 = vmatmul.mubr.bf16.gmra.mrb[16].mxu1 %v5921_v44 }
 0x10c   :  { %v1635_v58 = vadd.f32 %v4935_v19, %v1247_v55  ;;  %vm1735_vm8 = vcmp.eq.s32.totalorder %v7007_v40, %v6205_v24  ;;  %vm1736_vm9 = vcmp.eq.s32.totalorder %v84_v42, %v6205_v24  ;;  %vm2123_vm10 = vcmp.eq.s32.totalorder %v7007_v40, %v6207_v25  ;;  %3945 = vmatprep.mubr.bf16.mxu0 %v5922_v50 }
 0x10d   :  { %5598 = vmatprep.subr.bf16.mxu1 %v3274_v56  ;;  %v1636_v59 = vadd.f32 %v4936_v57, %v1248_v4  ;;  %v5031_v60 = vsel %vm1735_vm8, 1.0, %v6094_v28  ;;  %v5032_v61 = vsel %vm1736_vm9, 1.0, %v6094_v28  ;;  %vm2124_vm11 = vcmp.eq.s32.totalorder %v84_v42, %v6207_v25  ;;  %4025 = vmatprep.mubr.bf16.mxu1 %v5924_v53 }
 0x10e   :  { %v2023_v0 = vadd.f32 %v5031_v60, %v1635_v58  ;;  %v5127_v1 = vsel %vm2123_vm10, 1.0, %v6094_v28  ;;  %v5128_v3 = vsel %vm2124_vm11, 1.0, %v6094_v28  ;;  %vm2511_vm12 = vcmp.eq.s32.totalorder %v7007_v40, %v6209_v26 }
 0x10f   :  { %v2024_v7 = vadd.f32 %v5032_v61, %v1636_v59  ;;  %vm2512_vm13 = vcmp.eq.s32.totalorder %v84_v42, %v6209_v26  ;;  %v5223_v14 = vsel %vm2511_vm12, 1.0, %v6094_v28  ;;  %vm2899_vm14 = vcmp.eq.s32.totalorder %v7007_v40, %v6211_v27 }
 0x110   :  { %v2411_v8 = vadd.f32 %v5127_v1, %v2023_v0  ;;  %v5224_v9 = vsel %vm2512_vm13, 1.0, %v6094_v28  ;;  %vm2900_vm15 = vcmp.eq.s32.totalorder %v84_v42, %v6211_v27  ;;  %v5319_v11 = vsel %vm2899_vm14, 1.0, %v6094_v28 }
 0x111   :  { %v2412_v46 = vadd.f32 %v5128_v3, %v2024_v7  ;;  %v5320_v12 = vsel %vm2900_vm15, 1.0, %v6094_v28  ;;  %v101_v15 = vadd.s32 416, %v6158_v2  ;;  %v102_v29 = vadd.s32 424, %v6158_v2 }
 0x112   :  { %v2799_v30 = vadd.f32 %v5223_v14, %v2411_v8  ;;  %v7121_v63 = vadd.s32 288, %v6158_v2  ;;  %v7124_v40 = vadd.s32 296, %v6158_v2  ;;  %v7127_v33 = vadd.s32 432, %v6158_v2 }
 0x113   :  { %v2800_v34 = vadd.f32 %v5224_v9, %v2412_v46  ;;  %vm201_vm0 = vcmp.eq.s32.totalorder %v101_v15, %v6197_v20  ;;  %vm202_vm1 = vcmp.eq.s32.totalorder %v102_v29, %v6197_v20  ;;  %vm589_vm2 = vcmp.eq.s32.totalorder %v101_v15, %v6199_v21  ;;  %3946 = vmatmul.mubr.bf16.gmra.mrb[20].mxu0 %v5926_v16 }
 0x114   :  { %v3187_v35 = vadd.f32 %v5319_v11, %v2799_v30  ;;  %v4665_v36 = vsel %vm201_vm0, 1.0, %v6094_v28  ;;  %v4666_v37 = vsel %vm202_vm1, 1.0, %v6094_v28  ;;  %vm590_vm3 = vcmp.eq.s32.totalorder %v102_v29, %v6199_v21  ;;  %4026 = vmatmul.mubr.bf16.gmra.mrb[20].mxu1 %v5927_v32 }
 0x115   :  { %v3188_v10 = vadd.f32 %v5320_v12, %v2800_v34  ;;  %v4761_v38 = vsel %vm589_vm2, 1.0, %v6094_v28  ;;  %v4762_v39 = vsel %vm590_vm3, 1.0, %v6094_v28  ;;  %vm977_vm4 = vcmp.eq.s32.totalorder %v101_v15, %v6201_v22 }
 0x116   :  { %v877_v13 = vadd.f32 %v4761_v38, %v4665_v36  ;;  %v878_v41 = vadd.f32 %v4762_v39, %v4666_v37  ;;  %vm978_vm5 = vcmp.eq.s32.totalorder %v102_v29, %v6201_v22  ;;  %v4857_v42 = vsel %vm977_vm4, 1.0, %v6094_v28 }
 0x117   :  { %v3266_v6 = vpack.c.bf16 %v3188_v10, %v3187_v35  ;;  %v4858_v31 = vsel %vm978_vm5, 1.0, %v6094_v28  ;;  %vm1365_vm6 = vcmp.eq.s32.totalorder %v101_v15, %v6203_v23  ;;  %vm1366_vm7 = vcmp.eq.s32.totalorder %v102_v29, %v6203_v23 }
 0x118   :  { %v1265_v51 = vadd.f32 %v4857_v42, %v877_v13  ;;  %v1266_v43 = vadd.f32 %v4858_v31, %v878_v41  ;;  %v4953_v62 = vsel %vm1365_vm6, 1.0, %v6094_v28  ;;  %v4954_v44 = vsel %vm1366_vm7, 1.0, %v6094_v28 }
 0x119   :  { %5599 = vmatpush3.bf16.msra.mxu1 %v3266_v6  ;;  %vm1753_vm8 = vcmp.eq.s32.totalorder %v101_v15, %v6205_v24  ;;  %vm1754_vm9 = vcmp.eq.s32.totalorder %v102_v29, %v6205_v24  ;;  %vm2141_vm10 = vcmp.eq.s32.totalorder %v101_v15, %v6207_v25  ;;  %vm2142_vm11 = vcmp.eq.s32.totalorder %v102_v29, %v6207_v25 }
 0x11a   :  { %v1653_v45 = vadd.f32 %v4953_v62, %v1265_v51  ;;  %v1654_v47 = vadd.f32 %v4954_v44, %v1266_v43  ;;  %v5049_v48 = vsel %vm1753_vm8, 1.0, %v6094_v28  ;;  %v5050_v49 = vsel %vm1754_vm9, 1.0, %v6094_v28  ;;  %v5928_v44 = vld [vmem:[#allocation3 + $0x124] ss:$24 sps:$4 sm:$0xff]  }
 0x11b   :  { %v5145_v50 = vsel %vm2141_vm10, 1.0, %v6094_v28  ;;  %v5146_v17 = vsel %vm2142_vm11, 1.0, %v6094_v28  ;;  %vm2529_vm12 = vcmp.eq.s32.totalorder %v101_v15, %v6209_v26  ;;  %vm2530_vm13 = vcmp.eq.s32.totalorder %v102_v29, %v6209_v26  ;;  %3953 = vmatprep.mubr.bf16.mxu0 %v5928_v44 }
 0x11c   :  { %v2041_v18 = vadd.f32 %v5049_v48, %v1653_v45  ;;  %v2042_v52 = vadd.f32 %v5050_v49, %v1654_v47  ;;  %v5241_v53 = vsel %vm2529_vm12, 1.0, %v6094_v28  ;;  %v5242_v54 = vsel %vm2530_vm13, 1.0, %v6094_v28  ;;  %v5932_v45 = vld [vmem:[#allocation3 + $0xc] ss:$24 sps:$4 sm:$0xff]  }
 0x11d   :  { %vm2917_vm14 = vcmp.eq.s32.totalorder %v101_v15, %v6211_v27  ;;  %vm2918_vm15 = vcmp.eq.s32.totalorder %v102_v29, %v6211_v27  ;;  %vm185_vm0 = vcmp.eq.s32.totalorder %v7121_v63, %v6197_v20  ;;  %vm186_vm1 = vcmp.eq.s32.totalorder %v7124_v40, %v6197_v20  ;;  %4066 = vmatprep.mubr.bf16.mxu1 %v5932_v45 }
 0x11e   :  { %v2429_v55 = vadd.f32 %v5145_v50, %v2041_v18  ;;  %v2430_v56 = vadd.f32 %v5146_v17, %v2042_v52  ;;  %v5337_v4 = vsel %vm2917_vm14, 1.0, %v6094_v28  ;;  %v5338_v19 = vsel %vm2918_vm15, 1.0, %v6094_v28  ;;  %v5933_v17 = vld [vmem:[#allocation3 + $0x120] ss:$24 sps:$4 sm:$0xff]  }
 0x11f   :  { %v4649_v57 = vsel %vm185_vm0, 1.0, %v6094_v28  ;;  %v4650_v58 = vsel %vm186_vm1, 1.0, %v6094_v28  ;;  %vm573_vm2 = vcmp.eq.s32.totalorder %v7121_v63, %v6199_v21  ;;  %vm574_vm3 = vcmp.eq.s32.totalorder %v7124_v40, %v6199_v21  ;;  %3954 = vmatmul.mubr.bf16.gmra.mrb[24].mxu0 %v5933_v17 }
 0x120   :  { %v2817_v59 = vadd.f32 %v5241_v53, %v2429_v55  ;;  %v2818_v60 = vadd.f32 %v5242_v54, %v2430_v56  ;;  %v4745_v61 = vsel %vm573_vm2, 1.0, %v6094_v28  ;;  %v4746_v0 = vsel %vm574_vm3, 1.0, %v6094_v28 }
 0x121   :  { %v861_v1 = vadd.f32 %v4745_v61, %v4649_v57  ;;  %v862_v3 = vadd.f32 %v4746_v0, %v4650_v58  ;;  %vm961_vm4 = vcmp.eq.s32.totalorder %v7121_v63, %v6201_v22  ;;  %vm962_vm5 = vcmp.eq.s32.totalorder %v7124_v40, %v6201_v22 }
 0x122   :  { %v3205_v7 = vadd.f32 %v5337_v4, %v2817_v59  ;;  %v3206_v14 = vadd.f32 %v5338_v19, %v2818_v60  ;;  %v4841_v16 = vsel %vm961_vm4, 1.0, %v6094_v28  ;;  %v4842_v8 = vsel %vm962_vm5, 1.0, %v6094_v28 }
 0x123   :  { %v1249_v9 = vadd.f32 %v4841_v16, %v861_v1  ;;  %v1250_v11 = vadd.f32 %v4842_v8, %v862_v3  ;;  %vm1349_vm6 = vcmp.eq.s32.totalorder %v7121_v63, %v6203_v23  ;;  %vm1350_vm7 = vcmp.eq.s32.totalorder %v7124_v40, %v6203_v23 }
 0x124   :  { %v3275_v32 = vpack.c.bf16 %v3206_v14, %v3205_v7  ;;  %v4937_v46 = vsel %vm1349_vm6, 1.0, %v6094_v28  ;;  %v4938_v12 = vsel %vm1350_vm7, 1.0, %v6094_v28  ;;  %vm1737_vm8 = vcmp.eq.s32.totalorder %v7121_v63, %v6205_v24 }
 0x125   :  { %v1637_v15 = vadd.f32 %v4937_v46, %v1249_v9  ;;  %v1638_v29 = vadd.f32 %v4938_v12, %v1250_v11  ;;  %vm1738_vm9 = vcmp.eq.s32.totalorder %v7124_v40, %v6205_v24  ;;  %v5033_v30 = vsel %vm1737_vm8, 1.0, %v6094_v28 }
 0x126   :  { %5600 = vmatprep.subr.bf16.mxu1 %v3275_v32  ;;  %v5034_v34 = vsel %vm1738_vm9, 1.0, %v6094_v28  ;;  %vm2125_vm10 = vcmp.eq.s32.totalorder %v7121_v63, %v6207_v25  ;;  %vm2126_vm11 = vcmp.eq.s32.totalorder %v7124_v40, %v6207_v25  ;;  %vm2513_vm12 = vcmp.eq.s32.totalorder %v7121_v63, %v6209_v26 }
 0x127   :  { %v2025_v35 = vadd.f32 %v5033_v30, %v1637_v15  ;;  %v2026_v36 = vadd.f32 %v5034_v34, %v1638_v29  ;;  %v5129_v37 = vsel %vm2125_vm10, 1.0, %v6094_v28  ;;  %v5130_v10 = vsel %vm2126_vm11, 1.0, %v6094_v28 }
 0x128   :  { %vm2514_vm13 = vcmp.eq.s32.totalorder %v7124_v40, %v6209_v26  ;;  %v5225_v38 = vsel %vm2513_vm12, 1.0, %v6094_v28  ;;  %vm2901_vm14 = vcmp.eq.s32.totalorder %v7121_v63, %v6211_v27  ;;  %vm2902_vm15 = vcmp.eq.s32.totalorder %v7124_v40, %v6211_v27 }
 0x129   :  { %v2413_v39 = vadd.f32 %v5129_v37, %v2025_v35  ;;  %v2414_v13 = vadd.f32 %v5130_v10, %v2026_v36  ;;  %v5226_v41 = vsel %vm2514_vm13, 1.0, %v6094_v28  ;;  %v5321_v42 = vsel %vm2901_vm14, 1.0, %v6094_v28 }
 0x12a   :  { %v5322_v6 = vsel %vm2902_vm15, 1.0, %v6094_v28  ;;  %v104_v31 = vadd.s32 440, %v6158_v2  ;;  %vm203_vm0 = vcmp.eq.s32.totalorder %v7127_v33, %v6197_v20  ;;  %vm591_vm1 = vcmp.eq.s32.totalorder %v7127_v33, %v6199_v21 }
 0x12b   :  { %v2801_v63 = vadd.f32 %v5225_v38, %v2413_v39  ;;  %v2802_v51 = vadd.f32 %v5226_v41, %v2414_v13  ;;  %v4667_v40 = vsel %vm203_vm0, 1.0, %v6094_v28  ;;  %v4763_v43 = vsel %vm591_vm1, 1.0, %v6094_v28 }
 0x12c   :  { %vm204_vm2 = vcmp.eq.s32.totalorder %v104_v31, %v6197_v20  ;;  %vm592_vm3 = vcmp.eq.s32.totalorder %v104_v31, %v6199_v21  ;;  %v879_v62 = vadd.f32 %v4763_v43, %v4667_v40  ;;  %vm979_vm4 = vcmp.eq.s32.totalorder %v7127_v33, %v6201_v22 }
 0x12d   :  { %v3189_v47 = vadd.f32 %v5321_v42, %v2801_v63  ;;  %v3190_v48 = vadd.f32 %v5322_v6, %v2802_v51  ;;  %v4668_v49 = vsel %vm204_vm2, 1.0, %v6094_v28  ;;  %v4764_v50 = vsel %vm592_vm3, 1.0, %v6094_v28 }
 0x12e   :  { %v880_v18 = vadd.f32 %v4764_v50, %v4668_v49  ;;  %vm980_vm5 = vcmp.eq.s32.totalorder %v104_v31, %v6201_v22  ;;  %v4859_v52 = vsel %vm979_vm4, 1.0, %v6094_v28  ;;  %vm1367_vm6 = vcmp.eq.s32.totalorder %v7127_v33, %v6203_v23 }
 0x12f   :  { %v3267_v53 = vpack.c.bf16 %v3190_v48, %v3189_v47  ;;  %v4860_v54 = vsel %vm980_vm5, 1.0, %v6094_v28  ;;  %v1267_v55 = vadd.f32 %v4859_v52, %v879_v62  ;;  %vm1368_vm7 = vcmp.eq.s32.totalorder %v104_v31, %v6203_v23 }
 0x130   :  { %v1268_v56 = vadd.f32 %v4860_v54, %v880_v18  ;;  %v4955_v4 = vsel %vm1367_vm6, 1.0, %v6094_v28  ;;  %v4956_v19 = vsel %vm1368_vm7, 1.0, %v6094_v28  ;;  %vm1755_vm8 = vcmp.eq.s32.totalorder %v7127_v33, %v6205_v24 }
 0x131   :  { %5601 = vmatpush3.bf16.msra.mxu1 %v3267_v53  ;;  %v1655_v57 = vadd.f32 %v4955_v4, %v1267_v55  ;;  %vm1756_vm9 = vcmp.eq.s32.totalorder %v104_v31, %v6205_v24  ;;  %v5051_v58 = vsel %vm1755_vm8, 1.0, %v6094_v28  ;;  %vm2143_vm10 = vcmp.eq.s32.totalorder %v7127_v33, %v6207_v25 }
 0x132   :  { %v1656_v59 = vadd.f32 %v4956_v19, %v1268_v56  ;;  %v5052_v60 = vsel %vm1756_vm9, 1.0, %v6094_v28  ;;  %vm2144_vm11 = vcmp.eq.s32.totalorder %v104_v31, %v6207_v25  ;;  %v5147_v61 = vsel %vm2143_vm10, 1.0, %v6094_v28 }
 0x133   :  { %v2043_v0 = vadd.f32 %v5051_v58, %v1655_v57  ;;  %v5148_v1 = vsel %vm2144_vm11, 1.0, %v6094_v28  ;;  %vm2531_vm12 = vcmp.eq.s32.totalorder %v7127_v33, %v6209_v26  ;;  %vm2532_vm13 = vcmp.eq.s32.totalorder %v104_v31, %v6209_v26 }
 0x134   :  { %v2044_v3 = vadd.f32 %v5052_v60, %v1656_v59  ;;  %v5243_v7 = vsel %vm2531_vm12, 1.0, %v6094_v28  ;;  %v5244_v14 = vsel %vm2532_vm13, 1.0, %v6094_v28  ;;  %vm2919_vm14 = vcmp.eq.s32.totalorder %v7127_v33, %v6211_v27 }
 0x135   :  { %v2431_v16 = vadd.f32 %v5147_v61, %v2043_v0  ;;  %vm2920_vm15 = vcmp.eq.s32.totalorder %v104_v31, %v6211_v27  ;;  %v5339_v8 = vsel %vm2919_vm14, 1.0, %v6094_v28  ;;  %v87_v9 = vadd.s32 304, %v6158_v2 }
 0x136   :  { %v2432_v11 = vadd.f32 %v5148_v1, %v2044_v3  ;;  %v5340_v32 = vsel %vm2920_vm15, 1.0, %v6094_v28  ;;  %v88_v46 = vadd.s32 312, %v6158_v2  ;;  %v7253_v12 = vadd.s32 448, %v6158_v2 }
 0x137   :  { %v2819_v15 = vadd.f32 %v5243_v7, %v2431_v16  ;;  %vm187_vm0 = vcmp.eq.s32.totalorder %v87_v9, %v6197_v20  ;;  %vm575_vm1 = vcmp.eq.s32.totalorder %v87_v9, %v6199_v21  ;;  %vm963_vm2 = vcmp.eq.s32.totalorder %v87_v9, %v6201_v22 }
 0x138   :  { %v2820_v33 = vadd.f32 %v5244_v14, %v2432_v11  ;;  %vm188_vm3 = vcmp.eq.s32.totalorder %v88_v46, %v6197_v20  ;;  %v4651_v29 = vsel %vm187_vm0, 1.0, %v6094_v28  ;;  %vm576_vm4 = vcmp.eq.s32.totalorder %v88_v46, %v6199_v21 }
 0x139   :  { %v3207_v30 = vadd.f32 %v5339_v8, %v2819_v15  ;;  %v4652_v34 = vsel %vm188_vm3, 1.0, %v6094_v28  ;;  %v4747_v35 = vsel %vm575_vm1, 1.0, %v6094_v28  ;;  %v4748_v36 = vsel %vm576_vm4, 1.0, %v6094_v28 }
 0x13a   :  { %v3208_v37 = vadd.f32 %v5340_v32, %v2820_v33  ;;  %v863_v10 = vadd.f32 %v4747_v35, %v4651_v29  ;;  %v864_v38 = vadd.f32 %v4748_v36, %v4652_v34  ;;  %vm964_vm5 = vcmp.eq.s32.totalorder %v88_v46, %v6201_v22 }
 0x13b   :  { %v4843_v39 = vsel %vm963_vm2, 1.0, %v6094_v28  ;;  %v4844_v13 = vsel %vm964_vm5, 1.0, %v6094_v28  ;;  %vm1351_vm6 = vcmp.eq.s32.totalorder %v87_v9, %v6203_v23  ;;  %vm1352_vm7 = vcmp.eq.s32.totalorder %v88_v46, %v6203_v23 }
 0x13c   :  { %v3276_v41 = vpack.c.bf16 %v3208_v37, %v3207_v30  ;;  %v1251_v42 = vadd.f32 %v4843_v39, %v863_v10  ;;  %v1252_v6 = vadd.f32 %v4844_v13, %v864_v38  ;;  %v4939_v31 = vsel %vm1351_vm6, 1.0, %v6094_v28 }
 0x13d   :  { %v4940_v63 = vsel %vm1352_vm7, 1.0, %v6094_v28  ;;  %vm1739_vm8 = vcmp.eq.s32.totalorder %v87_v9, %v6205_v24  ;;  %vm1740_vm9 = vcmp.eq.s32.totalorder %v88_v46, %v6205_v24  ;;  %vm2127_vm10 = vcmp.eq.s32.totalorder %v87_v9, %v6207_v25 }
 0x13e   :  { %5602 = vmatprep.subr.bf16.mxu1 %v3276_v41  ;;  %v1639_v51 = vadd.f32 %v4939_v31, %v1251_v42  ;;  %v1640_v40 = vadd.f32 %v4940_v63, %v1252_v6  ;;  %v5035_v43 = vsel %vm1739_vm8, 1.0, %v6094_v28  ;;  %v5036_v62 = vsel %vm1740_vm9, 1.0, %v6094_v28 }
 0x13f   :  { %vm2128_vm11 = vcmp.eq.s32.totalorder %v88_v46, %v6207_v25  ;;  %v5131_v44 = vsel %vm2127_vm10, 1.0, %v6094_v28  ;;  %vm2515_vm12 = vcmp.eq.s32.totalorder %v87_v9, %v6209_v26  ;;  %vm2516_vm13 = vcmp.eq.s32.totalorder %v88_v46, %v6209_v26 }
 0x140   :  { %v2027_v45 = vadd.f32 %v5035_v43, %v1639_v51  ;;  %v2028_v47 = vadd.f32 %v5036_v62, %v1640_v40  ;;  %v5132_v48 = vsel %vm2128_vm11, 1.0, %v6094_v28  ;;  %v5227_v49 = vsel %vm2515_vm12, 1.0, %v6094_v28 }
 0x141   :  { %v5228_v50 = vsel %vm2516_vm13, 1.0, %v6094_v28  ;;  %vm2903_vm14 = vcmp.eq.s32.totalorder %v87_v9, %v6211_v27  ;;  %vm2904_vm15 = vcmp.eq.s32.totalorder %v88_v46, %v6211_v27  ;;  %v106_v17 = vadd.s32 456, %v6158_v2 }
 0x142   :  { %v2415_v18 = vadd.f32 %v5131_v44, %v2027_v45  ;;  %v2416_v52 = vadd.f32 %v5132_v48, %v2028_v47  ;;  %v5323_v53 = vsel %vm2903_vm14, 1.0, %v6094_v28  ;;  %v5324_v54 = vsel %vm2904_vm15, 1.0, %v6094_v28 }
 0x143   :  { %vm205_vm0 = vcmp.eq.s32.totalorder %v7253_v12, %v6197_v20  ;;  %vm206_vm1 = vcmp.eq.s32.totalorder %v106_v17, %v6197_v20  ;;  %vm593_vm2 = vcmp.eq.s32.totalorder %v7253_v12, %v6199_v21  ;;  %vm594_vm3 = vcmp.eq.s32.totalorder %v106_v17, %v6199_v21 }
 0x144   :  { %v2803_v55 = vadd.f32 %v5227_v49, %v2415_v18  ;;  %v2804_v56 = vadd.f32 %v5228_v50, %v2416_v52  ;;  %v4669_v4 = vsel %vm205_vm0, 1.0, %v6094_v28  ;;  %v4670_v19 = vsel %vm206_vm1, 1.0, %v6094_v28 }
 0x145   :  { %v4765_v57 = vsel %vm593_vm2, 1.0, %v6094_v28  ;;  %v4766_v58 = vsel %vm594_vm3, 1.0, %v6094_v28  ;;  %vm981_vm4 = vcmp.eq.s32.totalorder %v7253_v12, %v6201_v22  ;;  %vm982_vm5 = vcmp.eq.s32.totalorder %v106_v17, %v6201_v22 }
 0x146   :  { %v3191_v59 = vadd.f32 %v5323_v53, %v2803_v55  ;;  %v3192_v60 = vadd.f32 %v5324_v54, %v2804_v56  ;;  %v881_v61 = vadd.f32 %v4765_v57, %v4669_v4  ;;  %v882_v0 = vadd.f32 %v4766_v58, %v4670_v19 }
 0x147   :  { %v4861_v1 = vsel %vm981_vm4, 1.0, %v6094_v28  ;;  %v4862_v3 = vsel %vm982_vm5, 1.0, %v6094_v28  ;;  %vm1369_vm6 = vcmp.eq.s32.totalorder %v7253_v12, %v6203_v23  ;;  %vm1370_vm7 = vcmp.eq.s32.totalorder %v106_v17, %v6203_v23 }
 0x148   :  { %v3268_v7 = vpack.c.bf16 %v3192_v60, %v3191_v59  ;;  %v1269_v14 = vadd.f32 %v4861_v1, %v881_v61  ;;  %v1270_v16 = vadd.f32 %v4862_v3, %v882_v0  ;;  %v4957_v8 = vsel %vm1369_vm6, 1.0, %v6094_v28 }
 0x149   :  { %v4958_v9 = vsel %vm1370_vm7, 1.0, %v6094_v28  ;;  %vm1757_vm8 = vcmp.eq.s32.totalorder %v7253_v12, %v6205_v24  ;;  %vm1758_vm9 = vcmp.eq.s32.totalorder %v106_v17, %v6205_v24  ;;  %vm2145_vm10 = vcmp.eq.s32.totalorder %v7253_v12, %v6207_v25 }
 0x14a   :  { %5603 = vmatpush3.bf16.msra.mxu1 %v3268_v7  ;;  %v1657_v11 = vadd.f32 %v4957_v8, %v1269_v14  ;;  %v1658_v32 = vadd.f32 %v4958_v9, %v1270_v16  ;;  %v5053_v46 = vsel %vm1757_vm8, 1.0, %v6094_v28  ;;  %v5054_v15 = vsel %vm1758_vm9, 1.0, %v6094_v28 }
 0x14b   :  { %vm2146_vm11 = vcmp.eq.s32.totalorder %v106_v17, %v6207_v25  ;;  %v5149_v33 = vsel %vm2145_vm10, 1.0, %v6094_v28  ;;  %vm2533_vm12 = vcmp.eq.s32.totalorder %v7253_v12, %v6209_v26  ;;  %vm2534_vm13 = vcmp.eq.s32.totalorder %v106_v17, %v6209_v26 }
 0x14c   :  { %v2045_v29 = vadd.f32 %v5053_v46, %v1657_v11  ;;  %v2046_v30 = vadd.f32 %v5054_v15, %v1658_v32  ;;  %v5150_v34 = vsel %vm2146_vm11, 1.0, %v6094_v28  ;;  %v5245_v35 = vsel %vm2533_vm12, 1.0, %v6094_v28  ;;  %v5934_v32 = vld [vmem:[#allocation3 + $0x154] ss:$24 sps:$4 sm:$0xff]  }
 0x14d   :  { %v5246_v36 = vsel %vm2534_vm13, 1.0, %v6094_v28  ;;  %vm2921_vm14 = vcmp.eq.s32.totalorder %v7253_v12, %v6211_v27  ;;  %vm2922_vm15 = vcmp.eq.s32.totalorder %v106_v17, %v6211_v27  ;;  %v89_v37 = vadd.s32 320, %v6158_v2  ;;  %3961 = vmatprep.mubr.bf16.mxu0 %v5934_v32 }
 0x14e   :  { %v2433_v10 = vadd.f32 %v5149_v33, %v2045_v29  ;;  %v2434_v38 = vadd.f32 %v5150_v34, %v2046_v30  ;;  %v5341_v39 = vsel %vm2921_vm14, 1.0, %v6094_v28  ;;  %v5342_v13 = vsel %vm2922_vm15, 1.0, %v6094_v28  ;;  %v5938_v30 = vld [vmem:[#allocation3 + $0x150] ss:$24 sps:$4 sm:$0xff]  }
 0x14f   :  { %v90_v41 = vadd.s32 328, %v6158_v2  ;;  %vm189_vm0 = vcmp.eq.s32.totalorder %v89_v37, %v6197_v20  ;;  %vm577_vm1 = vcmp.eq.s32.totalorder %v89_v37, %v6199_v21  ;;  %vm965_vm2 = vcmp.eq.s32.totalorder %v89_v37, %v6201_v22  ;;  %3962 = vmatmul.mubr.bf16.gmra.mrb[28].mxu0 %v5938_v30 }
 0x150   :  { %v2821_v42 = vadd.f32 %v5245_v35, %v2433_v10  ;;  %v2822_v12 = vadd.f32 %v5246_v36, %v2434_v38  ;;  %v4653_v6 = vsel %vm189_vm0, 1.0, %v6094_v28  ;;  %v4749_v31 = vsel %vm577_vm1, 1.0, %v6094_v28 }
 0x151   :  { %vm190_vm3 = vcmp.eq.s32.totalorder %v90_v41, %v6197_v20  ;;  %vm578_vm4 = vcmp.eq.s32.totalorder %v90_v41, %v6199_v21  ;;  %v865_v63 = vadd.f32 %v4749_v31, %v4653_v6  ;;  %vm966_vm5 = vcmp.eq.s32.totalorder %v90_v41, %v6201_v22 }
 0x152   :  { %v3209_v51 = vadd.f32 %v5341_v39, %v2821_v42  ;;  %v3210_v40 = vadd.f32 %v5342_v13, %v2822_v12  ;;  %v4654_v43 = vsel %vm190_vm3, 1.0, %v6094_v28  ;;  %v4750_v62 = vsel %vm578_vm4, 1.0, %v6094_v28 }
 0x153   :  { %v866_v44 = vadd.f32 %v4750_v62, %v4654_v43  ;;  %v4845_v45 = vsel %vm965_vm2, 1.0, %v6094_v28  ;;  %v4846_v47 = vsel %vm966_vm5, 1.0, %v6094_v28  ;;  %vm1353_vm6 = vcmp.eq.s32.totalorder %v89_v37, %v6203_v23 }
 0x154   :  { %v3277_v48 = vpack.c.bf16 %v3210_v40, %v3209_v51  ;;  %v1253_v49 = vadd.f32 %v4845_v45, %v865_v63  ;;  %vm1354_vm7 = vcmp.eq.s32.totalorder %v90_v41, %v6203_v23  ;;  %v4941_v50 = vsel %vm1353_vm6, 1.0, %v6094_v28 }
 0x155   :  { %v1254_v17 = vadd.f32 %v4846_v47, %v866_v44  ;;  %v4942_v18 = vsel %vm1354_vm7, 1.0, %v6094_v28  ;;  %vm1741_vm8 = vcmp.eq.s32.totalorder %v89_v37, %v6205_v24  ;;  %vm1742_vm9 = vcmp.eq.s32.totalorder %v90_v41, %v6205_v24 }
 0x156   :  { %5604 = vmatprep.subr.bf16.mxu1 %v3277_v48  ;;  %v1641_v52 = vadd.f32 %v4941_v50, %v1253_v49  ;;  %v5037_v53 = vsel %vm1741_vm8, 1.0, %v6094_v28  ;;  %v5038_v54 = vsel %vm1742_vm9, 1.0, %v6094_v28  ;;  %vm2129_vm10 = vcmp.eq.s32.totalorder %v89_v37, %v6207_v25 }
 0x157   :  { %v1642_v55 = vadd.f32 %v4942_v18, %v1254_v17  ;;  %vm2130_vm11 = vcmp.eq.s32.totalorder %v90_v41, %v6207_v25  ;;  %v5133_v56 = vsel %vm2129_vm10, 1.0, %v6094_v28  ;;  %vm2517_vm12 = vcmp.eq.s32.totalorder %v89_v37, %v6209_v26 }
 0x158   :  { %v2029_v4 = vadd.f32 %v5037_v53, %v1641_v52  ;;  %v5134_v19 = vsel %vm2130_vm11, 1.0, %v6094_v28  ;;  %vm2518_vm13 = vcmp.eq.s32.totalorder %v90_v41, %v6209_v26  ;;  %v5229_v57 = vsel %vm2517_vm12, 1.0, %v6094_v28 }
 0x159   :  { %v2030_v58 = vadd.f32 %v5038_v54, %v1642_v55  ;;  %v5230_v59 = vsel %vm2518_vm13, 1.0, %v6094_v28  ;;  %vm2905_vm14 = vcmp.eq.s32.totalorder %v89_v37, %v6211_v27  ;;  %vm2906_vm15 = vcmp.eq.s32.totalorder %v90_v41, %v6211_v27 }
 0x15a   :  { %v2417_v60 = vadd.f32 %v5133_v56, %v2029_v4  ;;  %v5325_v61 = vsel %vm2905_vm14, 1.0, %v6094_v28  ;;  %v5326_v0 = vsel %vm2906_vm15, 1.0, %v6094_v28  ;;  %v107_v1 = vadd.s32 464, %v6158_v2 }
 0x15b   :  { %v2418_v3 = vadd.f32 %v5134_v19, %v2030_v58  ;;  %v108_v7 = vadd.s32 472, %v6158_v2  ;;  %v7365_v14 = vadd.s32 336, %v6158_v2  ;;  %v7368_v16 = vadd.s32 344, %v6158_v2 }
 0x15c   :  { %v2805_v8 = vadd.f32 %v5229_v57, %v2417_v60  ;;  %vm207_vm0 = vcmp.eq.s32.totalorder %v107_v1, %v6197_v20  ;;  %vm595_vm1 = vcmp.eq.s32.totalorder %v107_v1, %v6199_v21  ;;  %vm983_vm2 = vcmp.eq.s32.totalorder %v107_v1, %v6201_v22 }
 0x15d   :  { %v2806_v9 = vadd.f32 %v5230_v59, %v2418_v3  ;;  %vm208_vm3 = vcmp.eq.s32.totalorder %v108_v7, %v6197_v20  ;;  %v4671_v11 = vsel %vm207_vm0, 1.0, %v6094_v28  ;;  %vm596_vm4 = vcmp.eq.s32.totalorder %v108_v7, %v6199_v21 }
 0x15e   :  { %v3193_v46 = vadd.f32 %v5325_v61, %v2805_v8  ;;  %v4672_v15 = vsel %vm208_vm3, 1.0, %v6094_v28  ;;  %v4767_v33 = vsel %vm595_vm1, 1.0, %v6094_v28  ;;  %v4768_v29 = vsel %vm596_vm4, 1.0, %v6094_v28 }
 0x15f   :  { %v3194_v34 = vadd.f32 %v5326_v0, %v2806_v9  ;;  %v883_v35 = vadd.f32 %v4767_v33, %v4671_v11  ;;  %v884_v36 = vadd.f32 %v4768_v29, %v4672_v15  ;;  %vm984_vm5 = vcmp.eq.s32.totalorder %v108_v7, %v6201_v22 }
 0x160   :  { %v4863_v37 = vsel %vm983_vm2, 1.0, %v6094_v28  ;;  %v4864_v10 = vsel %vm984_vm5, 1.0, %v6094_v28  ;;  %vm1371_vm6 = vcmp.eq.s32.totalorder %v107_v1, %v6203_v23  ;;  %vm1372_vm7 = vcmp.eq.s32.totalorder %v108_v7, %v6203_v23 }
 0x161   :  { %v3269_v38 = vpack.c.bf16 %v3194_v34, %v3193_v46  ;;  %v1271_v39 = vadd.f32 %v4863_v37, %v883_v35  ;;  %v1272_v13 = vadd.f32 %v4864_v10, %v884_v36  ;;  %v4959_v41 = vsel %vm1371_vm6, 1.0, %v6094_v28 }
 0x162   :  { %v4960_v42 = vsel %vm1372_vm7, 1.0, %v6094_v28  ;;  %vm1759_vm8 = vcmp.eq.s32.totalorder %v107_v1, %v6205_v24  ;;  %vm1760_vm9 = vcmp.eq.s32.totalorder %v108_v7, %v6205_v24  ;;  %vm2147_vm10 = vcmp.eq.s32.totalorder %v107_v1, %v6207_v25 }
 0x163   :  { %5605 = vmatpush3.bf16.msra.mxu1 %v3269_v38  ;;  %v1659_v12 = vadd.f32 %v4959_v41, %v1271_v39  ;;  %v1660_v6 = vadd.f32 %v4960_v42, %v1272_v13  ;;  %v5055_v31 = vsel %vm1759_vm8, 1.0, %v6094_v28  ;;  %v5056_v63 = vsel %vm1760_vm9, 1.0, %v6094_v28 }
 0x164   :  { %vm2148_vm11 = vcmp.eq.s32.totalorder %v108_v7, %v6207_v25  ;;  %v5151_v51 = vsel %vm2147_vm10, 1.0, %v6094_v28  ;;  %vm2535_vm12 = vcmp.eq.s32.totalorder %v107_v1, %v6209_v26  ;;  %vm2536_vm13 = vcmp.eq.s32.totalorder %v108_v7, %v6209_v26 }
 0x165   :  { %v2047_v40 = vadd.f32 %v5055_v31, %v1659_v12  ;;  %v2048_v43 = vadd.f32 %v5056_v63, %v1660_v6  ;;  %v5152_v62 = vsel %vm2148_vm11, 1.0, %v6094_v28  ;;  %v5247_v44 = vsel %vm2535_vm12, 1.0, %v6094_v28 }
 0x166   :  { %v5248_v45 = vsel %vm2536_vm13, 1.0, %v6094_v28  ;;  %vm2923_vm14 = vcmp.eq.s32.totalorder %v107_v1, %v6211_v27  ;;  %vm2924_vm15 = vcmp.eq.s32.totalorder %v108_v7, %v6211_v27  ;;  %vm191_vm0 = vcmp.eq.s32.totalorder %v7365_v14, %v6197_v20 }
 0x167   :  { %v2435_v47 = vadd.f32 %v5151_v51, %v2047_v40  ;;  %v2436_v48 = vadd.f32 %v5152_v62, %v2048_v43  ;;  %v5343_v49 = vsel %vm2923_vm14, 1.0, %v6094_v28  ;;  %v5344_v50 = vsel %vm2924_vm15, 1.0, %v6094_v28 }
 0x168   :  { %vm192_vm1 = vcmp.eq.s32.totalorder %v7368_v16, %v6197_v20  ;;  %v4655_v17 = vsel %vm191_vm0, 1.0, %v6094_v28  ;;  %vm579_vm2 = vcmp.eq.s32.totalorder %v7365_v14, %v6199_v21  ;;  %vm580_vm3 = vcmp.eq.s32.totalorder %v7368_v16, %v6199_v21 }
 0x169   :  { %v2823_v18 = vadd.f32 %v5247_v44, %v2435_v47  ;;  %v2824_v52 = vadd.f32 %v5248_v45, %v2436_v48  ;;  %v4656_v53 = vsel %vm192_vm1, 1.0, %v6094_v28  ;;  %v4751_v54 = vsel %vm579_vm2, 1.0, %v6094_v28 }
 0x16a   :  { %v4752_v55 = vsel %vm580_vm3, 1.0, %v6094_v28  ;;  %v867_v56 = vadd.f32 %v4751_v54, %v4655_v17  ;;  %vm967_vm4 = vcmp.eq.s32.totalorder %v7365_v14, %v6201_v22  ;;  %vm968_vm5 = vcmp.eq.s32.totalorder %v7368_v16, %v6201_v22 }
 0x16b   :  { %v3211_v4 = vadd.f32 %v5343_v49, %v2823_v18  ;;  %v3212_v19 = vadd.f32 %v5344_v50, %v2824_v52  ;;  %v868_v57 = vadd.f32 %v4752_v55, %v4656_v53  ;;  %v4847_v58 = vsel %vm967_vm4, 1.0, %v6094_v28 }
 0x16c   :  { %v4848_v59 = vsel %vm968_vm5, 1.0, %v6094_v28  ;;  %v1255_v60 = vadd.f32 %v4847_v58, %v867_v56  ;;  %vm1355_vm6 = vcmp.eq.s32.totalorder %v7365_v14, %v6203_v23  ;;  %vm1356_vm7 = vcmp.eq.s32.totalorder %v7368_v16, %v6203_v23 }
 0x16d   :  { %v3278_v61 = vpack.c.bf16 %v3212_v19, %v3211_v4  ;;  %v1256_v0 = vadd.f32 %v4848_v59, %v868_v57  ;;  %v4943_v1 = vsel %vm1355_vm6, 1.0, %v6094_v28  ;;  %v4944_v3 = vsel %vm1356_vm7, 1.0, %v6094_v28 }
 0x16e   :  { %v1643_v7 = vadd.f32 %v4943_v1, %v1255_v60  ;;  %vm1743_vm8 = vcmp.eq.s32.totalorder %v7365_v14, %v6205_v24  ;;  %vm1744_vm9 = vcmp.eq.s32.totalorder %v7368_v16, %v6205_v24  ;;  %vm2131_vm10 = vcmp.eq.s32.totalorder %v7365_v14, %v6207_v25 }
 0x16f   :  { %5606 = vmatprep.subr.bf16.mxu1 %v3278_v61  ;;  %v1644_v8 = vadd.f32 %v4944_v3, %v1256_v0  ;;  %v5039_v9 = vsel %vm1743_vm8, 1.0, %v6094_v28  ;;  %v5040_v11 = vsel %vm1744_vm9, 1.0, %v6094_v28  ;;  %vm2132_vm11 = vcmp.eq.s32.totalorder %v7368_v16, %v6207_v25 }
 0x170   :  { %v2031_v32 = vadd.f32 %v5039_v9, %v1643_v7  ;;  %v5135_v46 = vsel %vm2131_vm10, 1.0, %v6094_v28  ;;  %v5136_v15 = vsel %vm2132_vm11, 1.0, %v6094_v28  ;;  %vm2519_vm12 = vcmp.eq.s32.totalorder %v7365_v14, %v6209_v26 }
 0x171   :  { %v2032_v33 = vadd.f32 %v5040_v11, %v1644_v8  ;;  %vm2520_vm13 = vcmp.eq.s32.totalorder %v7368_v16, %v6209_v26  ;;  %v5231_v29 = vsel %vm2519_vm12, 1.0, %v6094_v28  ;;  %vm2907_vm14 = vcmp.eq.s32.totalorder %v7365_v14, %v6211_v27 }
 0x172   :  { %v2419_v30 = vadd.f32 %v5135_v46, %v2031_v32  ;;  %v5232_v34 = vsel %vm2520_vm13, 1.0, %v6094_v28  ;;  %vm2908_vm15 = vcmp.eq.s32.totalorder %v7368_v16, %v6211_v27  ;;  %v5327_v35 = vsel %vm2907_vm14, 1.0, %v6094_v28 }
 0x173   :  { %v2420_v36 = vadd.f32 %v5136_v15, %v2032_v33  ;;  %v5328_v37 = vsel %vm2908_vm15, 1.0, %v6094_v28  ;;  %v109_v10 = vadd.s32 480, %v6158_v2  ;;  %v110_v38 = vadd.s32 488, %v6158_v2 }
 0x174   :  { %v2807_v39 = vadd.f32 %v5231_v29, %v2419_v30  ;;  %v7455_v13 = vadd.s32 352, %v6158_v2  ;;  %v7458_v14 = vadd.s32 360, %v6158_v2  ;;  %v7461_v41 = vadd.s32 496, %v6158_v2 }
 0x175   :  { %v2808_v16 = vadd.f32 %v5232_v34, %v2420_v36  ;;  %vm209_vm0 = vcmp.eq.s32.totalorder %v109_v10, %v6197_v20  ;;  %vm210_vm1 = vcmp.eq.s32.totalorder %v110_v38, %v6197_v20  ;;  %vm597_vm2 = vcmp.eq.s32.totalorder %v109_v10, %v6199_v21 }
 0x176   :  { %v3195_v42 = vadd.f32 %v5327_v35, %v2807_v39  ;;  %v4673_v12 = vsel %vm209_vm0, 1.0, %v6094_v28  ;;  %v4674_v6 = vsel %vm210_vm1, 1.0, %v6094_v28  ;;  %vm598_vm3 = vcmp.eq.s32.totalorder %v110_v38, %v6199_v21 }
 0x177   :  { %v3196_v31 = vadd.f32 %v5328_v37, %v2808_v16  ;;  %v4769_v63 = vsel %vm597_vm2, 1.0, %v6094_v28  ;;  %v4770_v51 = vsel %vm598_vm3, 1.0, %v6094_v28  ;;  %vm985_vm4 = vcmp.eq.s32.totalorder %v109_v10, %v6201_v22 }
 0x178   :  { %v885_v40 = vadd.f32 %v4769_v63, %v4673_v12  ;;  %v886_v43 = vadd.f32 %v4770_v51, %v4674_v6  ;;  %vm986_vm5 = vcmp.eq.s32.totalorder %v110_v38, %v6201_v22  ;;  %v4865_v62 = vsel %vm985_vm4, 1.0, %v6094_v28 }
 0x179   :  { %v3270_v44 = vpack.c.bf16 %v3196_v31, %v3195_v42  ;;  %v4866_v45 = vsel %vm986_vm5, 1.0, %v6094_v28  ;;  %vm1373_vm6 = vcmp.eq.s32.totalorder %v109_v10, %v6203_v23  ;;  %vm1374_vm7 = vcmp.eq.s32.totalorder %v110_v38, %v6203_v23 }
 0x17a   :  { %v1273_v47 = vadd.f32 %v4865_v62, %v885_v40  ;;  %v1274_v48 = vadd.f32 %v4866_v45, %v886_v43  ;;  %v4961_v49 = vsel %vm1373_vm6, 1.0, %v6094_v28  ;;  %v4962_v50 = vsel %vm1374_vm7, 1.0, %v6094_v28 }
 0x17b   :  { %5607 = vmatpush3.bf16.msra.mxu1 %v3270_v44  ;;  %vm1761_vm8 = vcmp.eq.s32.totalorder %v109_v10, %v6205_v24  ;;  %vm1762_vm9 = vcmp.eq.s32.totalorder %v110_v38, %v6205_v24  ;;  %vm2149_vm10 = vcmp.eq.s32.totalorder %v109_v10, %v6207_v25  ;;  %vm2150_vm11 = vcmp.eq.s32.totalorder %v110_v38, %v6207_v25 }
 0x17c   :  { %v1661_v17 = vadd.f32 %v4961_v49, %v1273_v47  ;;  %v1662_v18 = vadd.f32 %v4962_v50, %v1274_v48  ;;  %v5057_v52 = vsel %vm1761_vm8, 1.0, %v6094_v28  ;;  %v5058_v53 = vsel %vm1762_vm9, 1.0, %v6094_v28  ;;  %v5940_v50 = vld [vmem:[#allocation3 + $0x184] ss:$24 sps:$4 sm:$0xff]  }
 0x17d   :  { %v5153_v54 = vsel %vm2149_vm10, 1.0, %v6094_v28  ;;  %v5154_v55 = vsel %vm2150_vm11, 1.0, %v6094_v28  ;;  %vm2537_vm12 = vcmp.eq.s32.totalorder %v109_v10, %v6209_v26  ;;  %vm2538_vm13 = vcmp.eq.s32.totalorder %v110_v38, %v6209_v26  ;;  %3969 = vmatprep.mubr.bf16.mxu0 %v5940_v50 }
 0x17e   :  { %v2049_v56 = vadd.f32 %v5057_v52, %v1661_v17  ;;  %v2050_v4 = vadd.f32 %v5058_v53, %v1662_v18  ;;  %v5249_v19 = vsel %vm2537_vm12, 1.0, %v6094_v28  ;;  %v5250_v57 = vsel %vm2538_vm13, 1.0, %v6094_v28  ;;  %v5944_v17 = vld [vmem:[#allocation3 + $0x180] ss:$24 sps:$4 sm:$0xff]  }
 0x17f   :  { %vm2925_vm14 = vcmp.eq.s32.totalorder %v109_v10, %v6211_v27  ;;  %vm2926_vm15 = vcmp.eq.s32.totalorder %v110_v38, %v6211_v27  ;;  %vm193_vm0 = vcmp.eq.s32.totalorder %v7455_v13, %v6197_v20  ;;  %vm194_vm1 = vcmp.eq.s32.totalorder %v7458_v14, %v6197_v20  ;;  %3970 = vmatmul.mubr.bf16.gmra.mrb[32].mxu0 %v5944_v17 }
 0x180   :  { %v2437_v58 = vadd.f32 %v5153_v54, %v2049_v56  ;;  %v2438_v59 = vadd.f32 %v5154_v55, %v2050_v4  ;;  %v5345_v60 = vsel %vm2925_vm14, 1.0, %v6094_v28  ;;  %v5346_v61 = vsel %vm2926_vm15, 1.0, %v6094_v28 }
 0x181   :  { %v4657_v0 = vsel %vm193_vm0, 1.0, %v6094_v28  ;;  %v4658_v1 = vsel %vm194_vm1, 1.0, %v6094_v28  ;;  %vm581_vm2 = vcmp.eq.s32.totalorder %v7455_v13, %v6199_v21  ;;  %vm582_vm3 = vcmp.eq.s32.totalorder %v7458_v14, %v6199_v21 }
 0x182   :  { %v2825_v3 = vadd.f32 %v5249_v19, %v2437_v58  ;;  %v2826_v7 = vadd.f32 %v5250_v57, %v2438_v59  ;;  %v4753_v8 = vsel %vm581_vm2, 1.0, %v6094_v28  ;;  %v4754_v9 = vsel %vm582_vm3, 1.0, %v6094_v28 }
 0x183   :  { %v869_v11 = vadd.f32 %v4753_v8, %v4657_v0  ;;  %v870_v32 = vadd.f32 %v4754_v9, %v4658_v1  ;;  %vm969_vm4 = vcmp.eq.s32.totalorder %v7455_v13, %v6201_v22  ;;  %vm970_vm5 = vcmp.eq.s32.totalorder %v7458_v14, %v6201_v22 }
 0x184   :  { %v3213_v46 = vadd.f32 %v5345_v60, %v2825_v3  ;;  %v3214_v15 = vadd.f32 %v5346_v61, %v2826_v7  ;;  %v4849_v33 = vsel %vm969_vm4, 1.0, %v6094_v28  ;;  %v4850_v29 = vsel %vm970_vm5, 1.0, %v6094_v28 }
 0x185   :  { %v1257_v30 = vadd.f32 %v4849_v33, %v869_v11  ;;  %v1258_v34 = vadd.f32 %v4850_v29, %v870_v32  ;;  %vm1357_vm6 = vcmp.eq.s32.totalorder %v7455_v13, %v6203_v23  ;;  %vm1358_vm7 = vcmp.eq.s32.totalorder %v7458_v14, %v6203_v23 }
 0x186   :  { %v3279_v35 = vpack.c.bf16 %v3214_v15, %v3213_v46  ;;  %v4945_v36 = vsel %vm1357_vm6, 1.0, %v6094_v28  ;;  %v4946_v37 = vsel %vm1358_vm7, 1.0, %v6094_v28  ;;  %vm1745_vm8 = vcmp.eq.s32.totalorder %v7455_v13, %v6205_v24 }
 0x187   :  { %v1645_v10 = vadd.f32 %v4945_v36, %v1257_v30  ;;  %v1646_v38 = vadd.f32 %v4946_v37, %v1258_v34  ;;  %vm1746_vm9 = vcmp.eq.s32.totalorder %v7458_v14, %v6205_v24  ;;  %v5041_v39 = vsel %vm1745_vm8, 1.0, %v6094_v28 }
 0x188   :  { %5608 = vmatprep.subr.bf16.mxu1 %v3279_v35  ;;  %v5042_v16 = vsel %vm1746_vm9, 1.0, %v6094_v28  ;;  %vm2133_vm10 = vcmp.eq.s32.totalorder %v7455_v13, %v6207_v25  ;;  %vm2134_vm11 = vcmp.eq.s32.totalorder %v7458_v14, %v6207_v25  ;;  %vm2521_vm12 = vcmp.eq.s32.totalorder %v7455_v13, %v6209_v26 }
 0x189   :  { %v2033_v42 = vadd.f32 %v5041_v39, %v1645_v10  ;;  %v2034_v12 = vadd.f32 %v5042_v16, %v1646_v38  ;;  %v5137_v6 = vsel %vm2133_vm10, 1.0, %v6094_v28  ;;  %v5138_v31 = vsel %vm2134_vm11, 1.0, %v6094_v28 }
 0x18a   :  { %vm2522_vm13 = vcmp.eq.s32.totalorder %v7458_v14, %v6209_v26  ;;  %v5233_v63 = vsel %vm2521_vm12, 1.0, %v6094_v28  ;;  %vm2909_vm14 = vcmp.eq.s32.totalorder %v7455_v13, %v6211_v27  ;;  %vm2910_vm15 = vcmp.eq.s32.totalorder %v7458_v14, %v6211_v27 }
 0x18b   :  { %v2421_v51 = vadd.f32 %v5137_v6, %v2033_v42  ;;  %v2422_v40 = vadd.f32 %v5138_v31, %v2034_v12  ;;  %v5234_v43 = vsel %vm2522_vm13, 1.0, %v6094_v28  ;;  %v5329_v62 = vsel %vm2909_vm14, 1.0, %v6094_v28 }
 0x18c   :  { %v5330_v44 = vsel %vm2910_vm15, 1.0, %v6094_v28  ;;  %v112_v45 = vadd.s32 504, %v6158_v2  ;;  %vm211_vm0 = vcmp.eq.s32.totalorder %v7461_v41, %v6197_v20  ;;  %vm599_vm1 = vcmp.eq.s32.totalorder %v7461_v41, %v6199_v21 }
 0x18d   :  { %v2809_v13 = vadd.f32 %v5233_v63, %v2421_v51  ;;  %v2810_v47 = vadd.f32 %v5234_v43, %v2422_v40  ;;  %v4675_v14 = vsel %vm211_vm0, 1.0, %v6094_v28  ;;  %v4771_v48 = vsel %vm599_vm1, 1.0, %v6094_v28 }
 0x18e   :  { %vm212_vm2 = vcmp.eq.s32.totalorder %v112_v45, %v6197_v20  ;;  %vm600_vm3 = vcmp.eq.s32.totalorder %v112_v45, %v6199_v21  ;;  %v887_v49 = vadd.f32 %v4771_v48, %v4675_v14  ;;  %vm987_vm4 = vcmp.eq.s32.totalorder %v7461_v41, %v6201_v22 }
 0x18f   :  { %v3197_v18 = vadd.f32 %v5329_v62, %v2809_v13  ;;  %v3198_v52 = vadd.f32 %v5330_v44, %v2810_v47  ;;  %v4676_v53 = vsel %vm212_vm2, 1.0, %v6094_v28  ;;  %v4772_v54 = vsel %vm600_vm3, 1.0, %v6094_v28 }
 0x190   :  { %v888_v55 = vadd.f32 %v4772_v54, %v4676_v53  ;;  %vm988_vm5 = vcmp.eq.s32.totalorder %v112_v45, %v6201_v22  ;;  %v4867_v56 = vsel %vm987_vm4, 1.0, %v6094_v28  ;;  %vm1375_vm6 = vcmp.eq.s32.totalorder %v7461_v41, %v6203_v23 }
 0x191   :  { %v3271_v4 = vpack.c.bf16 %v3198_v52, %v3197_v18  ;;  %v4868_v19 = vsel %vm988_vm5, 1.0, %v6094_v28  ;;  %v1275_v57 = vadd.f32 %v4867_v56, %v887_v49  ;;  %vm1376_vm7 = vcmp.eq.s32.totalorder %v112_v45, %v6203_v23 }
 0x192   :  { %v1276_v58 = vadd.f32 %v4868_v19, %v888_v55  ;;  %v4963_v59 = vsel %vm1375_vm6, 1.0, %v6094_v28  ;;  %v4964_v60 = vsel %vm1376_vm7, 1.0, %v6094_v28  ;;  %vm1763_vm8 = vcmp.eq.s32.totalorder %v7461_v41, %v6205_v24 }
 0x193   :  { %5609 = vmatpush3.bf16.msra.mxu1 %v3271_v4  ;;  %v1663_v61 = vadd.f32 %v4963_v59, %v1275_v57  ;;  %vm1764_vm9 = vcmp.eq.s32.totalorder %v112_v45, %v6205_v24  ;;  %v5059_v0 = vsel %vm1763_vm8, 1.0, %v6094_v28  ;;  %vm2151_vm10 = vcmp.eq.s32.totalorder %v7461_v41, %v6207_v25 }
 0x194   :  { %v1664_v1 = vadd.f32 %v4964_v60, %v1276_v58  ;;  %v5060_v3 = vsel %vm1764_vm9, 1.0, %v6094_v28  ;;  %vm2152_vm11 = vcmp.eq.s32.totalorder %v112_v45, %v6207_v25  ;;  %v5155_v7 = vsel %vm2151_vm10, 1.0, %v6094_v28 }
 0x195   :  { %v2051_v8 = vadd.f32 %v5059_v0, %v1663_v61  ;;  %v5156_v9 = vsel %vm2152_vm11, 1.0, %v6094_v28  ;;  %vm2539_vm12 = vcmp.eq.s32.totalorder %v7461_v41, %v6209_v26  ;;  %vm2540_vm13 = vcmp.eq.s32.totalorder %v112_v45, %v6209_v26 }
 0x196   :  { %v2052_v11 = vadd.f32 %v5060_v3, %v1664_v1  ;;  %v5251_v32 = vsel %vm2539_vm12, 1.0, %v6094_v28  ;;  %v5252_v46 = vsel %vm2540_vm13, 1.0, %v6094_v28  ;;  %vm2927_vm14 = vcmp.eq.s32.totalorder %v7461_v41, %v6211_v27 }
 0x197   :  { %v2439_v15 = vadd.f32 %v5155_v7, %v2051_v8  ;;  %vm2928_vm15 = vcmp.eq.s32.totalorder %v112_v45, %v6211_v27  ;;  %v5347_v33 = vsel %vm2927_vm14, 1.0, %v6094_v28  ;;  %v95_v29 = vadd.s32 368, %v6158_v2 }
 0x198   :  { %v2440_v30 = vadd.f32 %v5156_v9, %v2052_v11  ;;  %v5348_v34 = vsel %vm2928_vm15, 1.0, %v6094_v28  ;;  %v96_v35 = vadd.s32 376, %v6158_v2  ;;  %v7587_v36 = vadd.s32 640, %v6158_v2 }
 0x199   :  { %v2827_v37 = vadd.f32 %v5251_v32, %v2439_v15  ;;  %vm195_vm0 = vcmp.eq.s32.totalorder %v95_v29, %v6197_v20  ;;  %vm583_vm1 = vcmp.eq.s32.totalorder %v95_v29, %v6199_v21  ;;  %vm971_vm2 = vcmp.eq.s32.totalorder %v95_v29, %v6201_v22 }
 0x19a   :  { %v2828_v41 = vadd.f32 %v5252_v46, %v2440_v30  ;;  %vm196_vm3 = vcmp.eq.s32.totalorder %v96_v35, %v6197_v20  ;;  %v4659_v10 = vsel %vm195_vm0, 1.0, %v6094_v28  ;;  %vm584_vm4 = vcmp.eq.s32.totalorder %v96_v35, %v6199_v21 }
 0x19b   :  { %v3215_v38 = vadd.f32 %v5347_v33, %v2827_v37  ;;  %v4660_v39 = vsel %vm196_vm3, 1.0, %v6094_v28  ;;  %v4755_v16 = vsel %vm583_vm1, 1.0, %v6094_v28  ;;  %v4756_v42 = vsel %vm584_vm4, 1.0, %v6094_v28 }
 0x19c   :  { %v3216_v12 = vadd.f32 %v5348_v34, %v2828_v41  ;;  %v871_v6 = vadd.f32 %v4755_v16, %v4659_v10  ;;  %v872_v31 = vadd.f32 %v4756_v42, %v4660_v39  ;;  %vm972_vm5 = vcmp.eq.s32.totalorder %v96_v35, %v6201_v22  ;;  %v5936_v10 = vld [vmem:[#allocation3 + $0x3c] ss:$24 sps:$4 sm:$0xff]  }
 0x19d   :  { %v4851_v63 = vsel %vm971_vm2, 1.0, %v6094_v28  ;;  %v4852_v51 = vsel %vm972_vm5, 1.0, %v6094_v28  ;;  %vm1359_vm6 = vcmp.eq.s32.totalorder %v95_v29, %v6203_v23  ;;  %vm1360_vm7 = vcmp.eq.s32.totalorder %v96_v35, %v6203_v23 }
 0x19e   :  { %v3280_v40 = vpack.c.bf16 %v3216_v12, %v3215_v38  ;;  %v1259_v43 = vadd.f32 %v4851_v63, %v871_v6  ;;  %v1260_v62 = vadd.f32 %v4852_v51, %v872_v31  ;;  %v4947_v44 = vsel %vm1359_vm6, 1.0, %v6094_v28 }
 0x19f   :  { %v4948_v45 = vsel %vm1360_vm7, 1.0, %v6094_v28  ;;  %vm1747_vm8 = vcmp.eq.s32.totalorder %v95_v29, %v6205_v24  ;;  %vm1748_vm9 = vcmp.eq.s32.totalorder %v96_v35, %v6205_v24  ;;  %vm2135_vm10 = vcmp.eq.s32.totalorder %v95_v29, %v6207_v25 }
 0x1a0   :  { %5610 = vmatprep.subr.bf16.mxu1 %v3280_v40  ;;  %v1647_v13 = vadd.f32 %v4947_v44, %v1259_v43  ;;  %v1648_v47 = vadd.f32 %v4948_v45, %v1260_v62  ;;  %v5043_v14 = vsel %vm1747_vm8, 1.0, %v6094_v28  ;;  %v5044_v48 = vsel %vm1748_vm9, 1.0, %v6094_v28 }
 0x1a1   :  { %vm2136_vm11 = vcmp.eq.s32.totalorder %v96_v35, %v6207_v25  ;;  %v5139_v49 = vsel %vm2135_vm10, 1.0, %v6094_v28  ;;  %vm2523_vm12 = vcmp.eq.s32.totalorder %v95_v29, %v6209_v26  ;;  %vm2524_vm13 = vcmp.eq.s32.totalorder %v96_v35, %v6209_v26 }
 0x1a2   :  { %v2035_v50 = vadd.f32 %v5043_v14, %v1647_v13  ;;  %v2036_v17 = vadd.f32 %v5044_v48, %v1648_v47  ;;  %v5140_v18 = vsel %vm2136_vm11, 1.0, %v6094_v28  ;;  %v5235_v52 = vsel %vm2523_vm12, 1.0, %v6094_v28  ;;  %v5939_v14 = vld [vmem:[#allocation3 + $0x38] ss:$24 sps:$4 sm:$0xff]  }
 0x1a3   :  { %v5236_v53 = vsel %vm2524_vm13, 1.0, %v6094_v28  ;;  %vm2911_vm14 = vcmp.eq.s32.totalorder %v95_v29, %v6211_v27  ;;  %vm2912_vm15 = vcmp.eq.s32.totalorder %v96_v35, %v6211_v27  ;;  %v130_v54 = vadd.s32 648, %v6158_v2  ;;  %v5930_v29 = vld [vmem:[#allocation3 + $0x8] ss:$24 sps:$4 sm:$0xff]  }
 0x1a4   :  { %v2423_v55 = vadd.f32 %v5139_v49, %v2035_v50  ;;  %v2424_v56 = vadd.f32 %v5140_v18, %v2036_v17  ;;  %v5331_v4 = vsel %vm2911_vm14, 1.0, %v6094_v28  ;;  %v5332_v19 = vsel %vm2912_vm15, 1.0, %v6094_v28  ;;  %v5942_v18 = vld [vmem:[#allocation3 + $0x6c] ss:$24 sps:$4 sm:$0xff]  }
 0x1a5   :  { %vm229_vm0 = vcmp.eq.s32.totalorder %v7587_v36, %v6197_v20  ;;  %vm230_vm1 = vcmp.eq.s32.totalorder %v130_v54, %v6197_v20  ;;  %vm617_vm2 = vcmp.eq.s32.totalorder %v7587_v36, %v6199_v21  ;;  %vm618_vm3 = vcmp.eq.s32.totalorder %v130_v54, %v6199_v21 }
 0x1a6   :  { %v2811_v57 = vadd.f32 %v5235_v52, %v2423_v55  ;;  %v2812_v58 = vadd.f32 %v5236_v53, %v2424_v56  ;;  %v4693_v59 = vsel %vm229_vm0, 1.0, %v6094_v28  ;;  %v4694_v60 = vsel %vm230_vm1, 1.0, %v6094_v28 }
 0x1a7   :  { %v4789_v61 = vsel %vm617_vm2, 1.0, %v6094_v28  ;;  %v4790_v0 = vsel %vm618_vm3, 1.0, %v6094_v28  ;;  %vm1005_vm4 = vcmp.eq.s32.totalorder %v7587_v36, %v6201_v22  ;;  %vm1006_vm5 = vcmp.eq.s32.totalorder %v130_v54, %v6201_v22 }
 0x1a8   :  { %v3199_v1 = vadd.f32 %v5331_v4, %v2811_v57  ;;  %v3200_v3 = vadd.f32 %v5332_v19, %v2812_v58  ;;  %v905_v7 = vadd.f32 %v4789_v61, %v4693_v59  ;;  %v906_v8 = vadd.f32 %v4790_v0, %v4694_v60 }
 0x1a9   :  { %v4885_v9 = vsel %vm1005_vm4, 1.0, %v6094_v28  ;;  %v4886_v11 = vsel %vm1006_vm5, 1.0, %v6094_v28  ;;  %vm1393_vm6 = vcmp.eq.s32.totalorder %v7587_v36, %v6203_v23  ;;  %vm1394_vm7 = vcmp.eq.s32.totalorder %v130_v54, %v6203_v23 }
 0x1aa   :  { %v3272_v32 = vpack.c.bf16 %v3200_v3, %v3199_v1  ;;  %v1293_v46 = vadd.f32 %v4885_v9, %v905_v7  ;;  %v1294_v15 = vadd.f32 %v4886_v11, %v906_v8  ;;  %v4981_v33 = vsel %vm1393_vm6, 1.0, %v6094_v28  ;;  %v5945_v11 = vld [vmem:[#allocation3 + $0x68] ss:$24 sps:$4 sm:$0xff]  }
 0x1ab   :  { %v4982_v30 = vsel %vm1394_vm7, 1.0, %v6094_v28  ;;  %vm1781_vm8 = vcmp.eq.s32.totalorder %v7587_v36, %v6205_v24  ;;  %vm1782_vm9 = vcmp.eq.s32.totalorder %v130_v54, %v6205_v24  ;;  %vm2169_vm10 = vcmp.eq.s32.totalorder %v7587_v36, %v6207_v25 }
 0x1ac   :  { %5611 = vmatpush3.bf16.msra.mxu1 %v3272_v32  ;;  %v1681_v34 = vadd.f32 %v4981_v33, %v1293_v46  ;;  %v1682_v35 = vadd.f32 %v4982_v30, %v1294_v15  ;;  %v5077_v37 = vsel %vm1781_vm8, 1.0, %v6094_v28  ;;  %v5078_v41 = vsel %vm1782_vm9, 1.0, %v6094_v28 }
 0x1ad   :  { %vm2170_vm11 = vcmp.eq.s32.totalorder %v130_v54, %v6207_v25  ;;  %v5173_v38 = vsel %vm2169_vm10, 1.0, %v6094_v28  ;;  %vm2557_vm12 = vcmp.eq.s32.totalorder %v7587_v36, %v6209_v26  ;;  %vm2558_vm13 = vcmp.eq.s32.totalorder %v130_v54, %v6209_v26 }
 0x1ae   :  { %v2069_v39 = vadd.f32 %v5077_v37, %v1681_v34  ;;  %v2070_v16 = vadd.f32 %v5078_v41, %v1682_v35  ;;  %v5174_v42 = vsel %vm2170_vm11, 1.0, %v6094_v28  ;;  %v5269_v12 = vsel %vm2557_vm12, 1.0, %v6094_v28 }
 0x1af   :  { %4067 = vmatmul.mubr.bf16.vlgmr.msra.gmra.mrb[24].mxu1 %v5930_v29  ;;  %v5270_v6 = vsel %vm2558_vm13, 1.0, %v6094_v28  ;;  %vm2945_vm14 = vcmp.eq.s32.totalorder %v7587_v36, %v6211_v27  ;;  %vm2946_vm15 = vcmp.eq.s32.totalorder %v130_v54, %v6211_v27  ;;  %v113_v31 = vadd.s32 512, %v6158_v2 }
 0x1b0   :  { %v2457_v63 = vadd.f32 %v5173_v38, %v2069_v39  ;;  %v2458_v51 = vadd.f32 %v5174_v42, %v2070_v16  ;;  %v5365_v40 = vsel %vm2945_vm14, 1.0, %v6094_v28  ;;  %v5366_v43 = vsel %vm2946_vm15, 1.0, %v6094_v28  ;;  %4074 = vmatprep.mubr.bf16.mxu1 %v5936_v10  ;;  %v5946_v38 = vld [vmem:[#allocation3 + $0x1b4] ss:$24 sps:$4 sm:$0xff]  }
 0x1b1   :  { %v114_v62 = vadd.s32 520, %v6158_v2  ;;  %vm213_vm0 = vcmp.eq.s32.totalorder %v113_v31, %v6197_v20  ;;  %vm601_vm1 = vcmp.eq.s32.totalorder %v113_v31, %v6199_v21  ;;  %vm989_vm2 = vcmp.eq.s32.totalorder %v113_v31, %v6201_v22  ;;  %v5948_v39 = vld [vmem:[#allocation3 + $0x9c] ss:$24 sps:$4 sm:$0xff]   ;;  %3977 = vmatprep.mubr.bf16.mxu0 %v5946_v38 }
 0x1b2   :  { %v2845_v36 = vadd.f32 %v5269_v12, %v2457_v63  ;;  %v2846_v44 = vadd.f32 %v5270_v6, %v2458_v51  ;;  %v4677_v45 = vsel %vm213_vm0, 1.0, %v6094_v28  ;;  %v4773_v13 = vsel %vm601_vm1, 1.0, %v6094_v28 }
 0x1b3   :  { %vm214_vm3 = vcmp.eq.s32.totalorder %v114_v62, %v6197_v20  ;;  %vm602_vm4 = vcmp.eq.s32.totalorder %v114_v62, %v6199_v21  ;;  %v889_v47 = vadd.f32 %v4773_v13, %v4677_v45  ;;  %vm990_vm5 = vcmp.eq.s32.totalorder %v114_v62, %v6201_v22 }
 0x1b4   :  { %v3233_v48 = vadd.f32 %v5365_v40, %v2845_v36  ;;  %v3234_v49 = vadd.f32 %v5366_v43, %v2846_v44  ;;  %v4678_v50 = vsel %vm214_vm3, 1.0, %v6094_v28  ;;  %v4774_v17 = vsel %vm602_vm4, 1.0, %v6094_v28 }
 0x1b5   :  { %v890_v52 = vadd.f32 %v4774_v17, %v4678_v50  ;;  %v4869_v53 = vsel %vm989_vm2, 1.0, %v6094_v28  ;;  %v4870_v54 = vsel %vm990_vm5, 1.0, %v6094_v28  ;;  %vm1377_vm6 = vcmp.eq.s32.totalorder %v113_v31, %v6203_v23 }
 0x1b6   :  { %v3289_v55 = vpack.c.bf16 %v3234_v49, %v3233_v48  ;;  %v1277_v56 = vadd.f32 %v4869_v53, %v889_v47  ;;  %vm1378_vm7 = vcmp.eq.s32.totalorder %v114_v62, %v6203_v23  ;;  %v4965_v4 = vsel %vm1377_vm6, 1.0, %v6094_v28  ;;  %v5951_v47 = vld [vmem:[#allocation3 + $0x98] ss:$24 sps:$4 sm:$0xff]  }
 0x1b7   :  { %v1278_v19 = vadd.f32 %v4870_v54, %v890_v52  ;;  %v4966_v57 = vsel %vm1378_vm7, 1.0, %v6094_v28  ;;  %vm1765_vm8 = vcmp.eq.s32.totalorder %v113_v31, %v6205_v24  ;;  %vm1766_vm9 = vcmp.eq.s32.totalorder %v114_v62, %v6205_v24  ;;  %4075 = vmatmul.mubr.bf16.gmra.mrb[28].mxu1 %v5939_v14 }
 0x1b8   :  { %5708 = vmatprep.subr.bf16.mxu0 %v3289_v55  ;;  %v1665_v58 = vadd.f32 %v4965_v4, %v1277_v56  ;;  %v5061_v59 = vsel %vm1765_vm8, 1.0, %v6094_v28  ;;  %v5062_v60 = vsel %vm1766_vm9, 1.0, %v6094_v28  ;;  %vm2153_vm10 = vcmp.eq.s32.totalorder %v113_v31, %v6207_v25  ;;  %4082 = vmatprep.mubr.bf16.mxu1 %v5942_v18 }
 0x1b9   :  { %v1666_v61 = vadd.f32 %v4966_v57, %v1278_v19  ;;  %vm2154_vm11 = vcmp.eq.s32.totalorder %v114_v62, %v6207_v25  ;;  %v5157_v0 = vsel %vm2153_vm10, 1.0, %v6094_v28  ;;  %vm2541_vm12 = vcmp.eq.s32.totalorder %v113_v31, %v6209_v26 }
 0x1ba   :  { %v2053_v1 = vadd.f32 %v5061_v59, %v1665_v58  ;;  %v5158_v3 = vsel %vm2154_vm11, 1.0, %v6094_v28  ;;  %vm2542_vm13 = vcmp.eq.s32.totalorder %v114_v62, %v6209_v26  ;;  %v5253_v7 = vsel %vm2541_vm12, 1.0, %v6094_v28 }
 0x1bb   :  { %v2054_v8 = vadd.f32 %v5062_v60, %v1666_v61  ;;  %v5254_v9 = vsel %vm2542_vm13, 1.0, %v6094_v28  ;;  %vm2929_vm14 = vcmp.eq.s32.totalorder %v113_v31, %v6211_v27  ;;  %vm2930_vm15 = vcmp.eq.s32.totalorder %v114_v62, %v6211_v27  ;;  %v5950_v31 = vld [vmem:[#allocation3 + $0x1b0] ss:$24 sps:$4 sm:$0xff]  }
 0x1bc   :  { %v2441_v32 = vadd.f32 %v5157_v0, %v2053_v1  ;;  %v5349_v46 = vsel %vm2929_vm14, 1.0, %v6094_v28  ;;  %v5350_v15 = vsel %vm2930_vm15, 1.0, %v6094_v28  ;;  %v131_v33 = vadd.s32 656, %v6158_v2  ;;  %3978 = vmatmul.mubr.bf16.gmra.mrb[36].mxu0 %v5950_v31 }
 0x1bd   :  { %v2442_v29 = vadd.f32 %v5158_v3, %v2054_v8  ;;  %v132_v30 = vadd.s32 664, %v6158_v2  ;;  %v7701_v34 = vadd.s32 528, %v6158_v2  ;;  %v7704_v35 = vadd.s32 536, %v6158_v2 }
 0x1be   :  { %v2829_v37 = vadd.f32 %v5253_v7, %v2441_v32  ;;  %vm231_vm0 = vcmp.eq.s32.totalorder %v131_v33, %v6197_v20  ;;  %vm619_vm1 = vcmp.eq.s32.totalorder %v131_v33, %v6199_v21  ;;  %vm1007_vm2 = vcmp.eq.s32.totalorder %v131_v33, %v6201_v22 }
 0x1bf   :  { %v2830_v41 = vadd.f32 %v5254_v9, %v2442_v29  ;;  %vm232_vm3 = vcmp.eq.s32.totalorder %v132_v30, %v6197_v20  ;;  %v4695_v10 = vsel %vm231_vm0, 1.0, %v6094_v28  ;;  %vm620_vm4 = vcmp.eq.s32.totalorder %v132_v30, %v6199_v21  ;;  %4083 = vmatmul.mubr.bf16.gmra.mrb[32].mxu1 %v5945_v11 }
 0x1c0   :  { %v3217_v16 = vadd.f32 %v5349_v46, %v2829_v37  ;;  %v4696_v42 = vsel %vm232_vm3, 1.0, %v6094_v28  ;;  %v4791_v12 = vsel %vm619_vm1, 1.0, %v6094_v28  ;;  %v4792_v6 = vsel %vm620_vm4, 1.0, %v6094_v28  ;;  %4090 = vmatprep.mubr.bf16.mxu1 %v5948_v39 }
 0x1c1   :  { %v3218_v63 = vadd.f32 %v5350_v15, %v2830_v41  ;;  %v907_v51 = vadd.f32 %v4791_v12, %v4695_v10  ;;  %v908_v40 = vadd.f32 %v4792_v6, %v4696_v42  ;;  %vm1008_vm5 = vcmp.eq.s32.totalorder %v132_v30, %v6201_v22 }
 0x1c2   :  { %v4887_v43 = vsel %vm1007_vm2, 1.0, %v6094_v28  ;;  %v4888_v62 = vsel %vm1008_vm5, 1.0, %v6094_v28  ;;  %vm1395_vm6 = vcmp.eq.s32.totalorder %v131_v33, %v6203_v23  ;;  %vm1396_vm7 = vcmp.eq.s32.totalorder %v132_v30, %v6203_v23 }
 0x1c3   :  { %v3281_v36 = vpack.c.bf16 %v3218_v63, %v3217_v16  ;;  %v1295_v44 = vadd.f32 %v4887_v43, %v907_v51  ;;  %v1296_v45 = vadd.f32 %v4888_v62, %v908_v40  ;;  %v4983_v13 = vsel %vm1395_vm6, 1.0, %v6094_v28 }
 0x1c4   :  { %v4984_v14 = vsel %vm1396_vm7, 1.0, %v6094_v28  ;;  %vm1783_vm8 = vcmp.eq.s32.totalorder %v131_v33, %v6205_v24  ;;  %vm1784_vm9 = vcmp.eq.s32.totalorder %v132_v30, %v6205_v24  ;;  %vm2171_vm10 = vcmp.eq.s32.totalorder %v131_v33, %v6207_v25 }
 0x1c5   :  { %5709 = vmatpush3.bf16.msra.mxu0 %v3281_v36  ;;  %v1683_v48 = vadd.f32 %v4983_v13, %v1295_v44  ;;  %v1684_v49 = vadd.f32 %v4984_v14, %v1296_v45  ;;  %v5079_v50 = vsel %vm1783_vm8, 1.0, %v6094_v28  ;;  %v5080_v17 = vsel %vm1784_vm9, 1.0, %v6094_v28 }
 0x1c6   :  { %vm2172_vm11 = vcmp.eq.s32.totalorder %v132_v30, %v6207_v25  ;;  %v5175_v18 = vsel %vm2171_vm10, 1.0, %v6094_v28  ;;  %vm2559_vm12 = vcmp.eq.s32.totalorder %v131_v33, %v6209_v26  ;;  %vm2560_vm13 = vcmp.eq.s32.totalorder %v132_v30, %v6209_v26 }
 0x1c7   :  { %v2071_v52 = vadd.f32 %v5079_v50, %v1683_v48  ;;  %v2072_v53 = vadd.f32 %v5080_v17, %v1684_v49  ;;  %v5176_v54 = vsel %vm2172_vm11, 1.0, %v6094_v28  ;;  %v5271_v55 = vsel %vm2559_vm12, 1.0, %v6094_v28  ;;  %4091 = vmatmul.mubr.bf16.gmra.mrb[36].mxu1 %v5951_v47 }
 0x1c8   :  { %v5272_v56 = vsel %vm2560_vm13, 1.0, %v6094_v28  ;;  %vm2947_vm14 = vcmp.eq.s32.totalorder %v131_v33, %v6211_v27  ;;  %vm2948_vm15 = vcmp.eq.s32.totalorder %v132_v30, %v6211_v27  ;;  %vm215_vm0 = vcmp.eq.s32.totalorder %v7701_v34, %v6197_v20 }
 0x1c9   :  { %v2459_v4 = vadd.f32 %v5175_v18, %v2071_v52  ;;  %v2460_v19 = vadd.f32 %v5176_v54, %v2072_v53  ;;  %v5367_v57 = vsel %vm2947_vm14, 1.0, %v6094_v28  ;;  %v5368_v58 = vsel %vm2948_vm15, 1.0, %v6094_v28 }
 0x1ca   :  { %vm216_vm1 = vcmp.eq.s32.totalorder %v7704_v35, %v6197_v20  ;;  %v4679_v59 = vsel %vm215_vm0, 1.0, %v6094_v28  ;;  %vm603_vm2 = vcmp.eq.s32.totalorder %v7701_v34, %v6199_v21  ;;  %vm604_vm3 = vcmp.eq.s32.totalorder %v7704_v35, %v6199_v21 }
 0x1cb   :  { %v2847_v60 = vadd.f32 %v5271_v55, %v2459_v4  ;;  %v2848_v61 = vadd.f32 %v5272_v56, %v2460_v19  ;;  %v4680_v0 = vsel %vm216_vm1, 1.0, %v6094_v28  ;;  %v4775_v1 = vsel %vm603_vm2, 1.0, %v6094_v28 }
 0x1cc   :  { %v4776_v3 = vsel %vm604_vm3, 1.0, %v6094_v28  ;;  %v891_v7 = vadd.f32 %v4775_v1, %v4679_v59  ;;  %vm991_vm4 = vcmp.eq.s32.totalorder %v7701_v34, %v6201_v22  ;;  %vm992_vm5 = vcmp.eq.s32.totalorder %v7704_v35, %v6201_v22 }
 0x1cd   :  { %v3235_v8 = vadd.f32 %v5367_v57, %v2847_v60  ;;  %v3236_v9 = vadd.f32 %v5368_v58, %v2848_v61  ;;  %v892_v11 = vadd.f32 %v4776_v3, %v4680_v0  ;;  %v4871_v32 = vsel %vm991_vm4, 1.0, %v6094_v28 }
 0x1ce   :  { %v4872_v46 = vsel %vm992_vm5, 1.0, %v6094_v28  ;;  %v1279_v15 = vadd.f32 %v4871_v32, %v891_v7  ;;  %vm1379_vm6 = vcmp.eq.s32.totalorder %v7701_v34, %v6203_v23  ;;  %vm1380_vm7 = vcmp.eq.s32.totalorder %v7704_v35, %v6203_v23 }
 0x1cf   :  { %v3290_v33 = vpack.c.bf16 %v3236_v9, %v3235_v8  ;;  %v1280_v29 = vadd.f32 %v4872_v46, %v892_v11  ;;  %v4967_v30 = vsel %vm1379_vm6, 1.0, %v6094_v28  ;;  %v4968_v37 = vsel %vm1380_vm7, 1.0, %v6094_v28 }
 0x1d0   :  { %v1667_v41 = vadd.f32 %v4967_v30, %v1279_v15  ;;  %vm1767_vm8 = vcmp.eq.s32.totalorder %v7701_v34, %v6205_v24  ;;  %vm1768_vm9 = vcmp.eq.s32.totalorder %v7704_v35, %v6205_v24  ;;  %vm2155_vm10 = vcmp.eq.s32.totalorder %v7701_v34, %v6207_v25 }
 0x1d1   :  { %5710 = vmatprep.subr.bf16.mxu0 %v3290_v33  ;;  %v1668_v10 = vadd.f32 %v4968_v37, %v1280_v29  ;;  %v5063_v38 = vsel %vm1767_vm8, 1.0, %v6094_v28  ;;  %v5064_v39 = vsel %vm1768_vm9, 1.0, %v6094_v28  ;;  %vm2156_vm11 = vcmp.eq.s32.totalorder %v7704_v35, %v6207_v25 }
 0x1d2   :  { %v2055_v16 = vadd.f32 %v5063_v38, %v1667_v41  ;;  %v5159_v42 = vsel %vm2155_vm10, 1.0, %v6094_v28  ;;  %v5160_v12 = vsel %vm2156_vm11, 1.0, %v6094_v28  ;;  %vm2543_vm12 = vcmp.eq.s32.totalorder %v7701_v34, %v6209_v26 }
 0x1d3   :  { %v2056_v6 = vadd.f32 %v5064_v39, %v1668_v10  ;;  %vm2544_vm13 = vcmp.eq.s32.totalorder %v7704_v35, %v6209_v26  ;;  %v5255_v31 = vsel %vm2543_vm12, 1.0, %v6094_v28  ;;  %vm2931_vm14 = vcmp.eq.s32.totalorder %v7701_v34, %v6211_v27 }
 0x1d4   :  { %v2443_v63 = vadd.f32 %v5159_v42, %v2055_v16  ;;  %v5256_v51 = vsel %vm2544_vm13, 1.0, %v6094_v28  ;;  %vm2932_vm15 = vcmp.eq.s32.totalorder %v7704_v35, %v6211_v27  ;;  %v5351_v40 = vsel %vm2931_vm14, 1.0, %v6094_v28 }
 0x1d5   :  { %v2444_v43 = vadd.f32 %v5160_v12, %v2056_v6  ;;  %v5352_v62 = vsel %vm2932_vm15, 1.0, %v6094_v28  ;;  %v133_v36 = vadd.s32 672, %v6158_v2  ;;  %v134_v44 = vadd.s32 680, %v6158_v2 }
 0x1d6   :  { %v2831_v45 = vadd.f32 %v5255_v31, %v2443_v63  ;;  %v7791_v13 = vadd.s32 544, %v6158_v2  ;;  %v7794_v34 = vadd.s32 552, %v6158_v2  ;;  %v7797_v47 = vadd.s32 688, %v6158_v2 }
 0x1d7   :  { %v2832_v35 = vadd.f32 %v5256_v51, %v2444_v43  ;;  %vm233_vm0 = vcmp.eq.s32.totalorder %v133_v36, %v6197_v20  ;;  %vm234_vm1 = vcmp.eq.s32.totalorder %v134_v44, %v6197_v20  ;;  %vm621_vm2 = vcmp.eq.s32.totalorder %v133_v36, %v6199_v21 }
 0x1d8   :  { %v3219_v14 = vadd.f32 %v5351_v40, %v2831_v45  ;;  %v4697_v48 = vsel %vm233_vm0, 1.0, %v6094_v28  ;;  %v4698_v49 = vsel %vm234_vm1, 1.0, %v6094_v28  ;;  %vm622_vm3 = vcmp.eq.s32.totalorder %v134_v44, %v6199_v21 }
 0x1d9   :  { %v3220_v50 = vadd.f32 %v5352_v62, %v2832_v35  ;;  %v4793_v17 = vsel %vm621_vm2, 1.0, %v6094_v28  ;;  %v4794_v18 = vsel %vm622_vm3, 1.0, %v6094_v28  ;;  %vm1009_vm4 = vcmp.eq.s32.totalorder %v133_v36, %v6201_v22 }
 0x1da   :  { %v909_v52 = vadd.f32 %v4793_v17, %v4697_v48  ;;  %v910_v53 = vadd.f32 %v4794_v18, %v4698_v49  ;;  %vm1010_vm5 = vcmp.eq.s32.totalorder %v134_v44, %v6201_v22  ;;  %v4889_v54 = vsel %vm1009_vm4, 1.0, %v6094_v28 }
 0x1db   :  { %v3282_v55 = vpack.c.bf16 %v3220_v50, %v3219_v14  ;;  %v4890_v56 = vsel %vm1010_vm5, 1.0, %v6094_v28  ;;  %vm1397_vm6 = vcmp.eq.s32.totalorder %v133_v36, %v6203_v23  ;;  %vm1398_vm7 = vcmp.eq.s32.totalorder %v134_v44, %v6203_v23 }
 0x1dc   :  { %v1297_v4 = vadd.f32 %v4889_v54, %v909_v52  ;;  %v1298_v19 = vadd.f32 %v4890_v56, %v910_v53  ;;  %v4985_v57 = vsel %vm1397_vm6, 1.0, %v6094_v28  ;;  %v4986_v58 = vsel %vm1398_vm7, 1.0, %v6094_v28 }
 0x1dd   :  { %5711 = vmatpush3.bf16.msra.mxu0 %v3282_v55  ;;  %vm1785_vm8 = vcmp.eq.s32.totalorder %v133_v36, %v6205_v24  ;;  %vm1786_vm9 = vcmp.eq.s32.totalorder %v134_v44, %v6205_v24  ;;  %vm2173_vm10 = vcmp.eq.s32.totalorder %v133_v36, %v6207_v25  ;;  %vm2174_vm11 = vcmp.eq.s32.totalorder %v134_v44, %v6207_v25 }
 0x1de   :  { %v1685_v59 = vadd.f32 %v4985_v57, %v1297_v4  ;;  %v1686_v60 = vadd.f32 %v4986_v58, %v1298_v19  ;;  %v5081_v61 = vsel %vm1785_vm8, 1.0, %v6094_v28  ;;  %v5082_v0 = vsel %vm1786_vm9, 1.0, %v6094_v28  ;;  %v5952_v58 = vld [vmem:[#allocation3 + $0xcc] ss:$24 sps:$4 sm:$0xff]  }
 0x1df   :  { %v5177_v1 = vsel %vm2173_vm10, 1.0, %v6094_v28  ;;  %v5178_v3 = vsel %vm2174_vm11, 1.0, %v6094_v28  ;;  %vm2561_vm12 = vcmp.eq.s32.totalorder %v133_v36, %v6209_v26  ;;  %vm2562_vm13 = vcmp.eq.s32.totalorder %v134_v44, %v6209_v26  ;;  %4098 = vmatprep.mubr.bf16.mxu1 %v5952_v58 }
 0x1e0   :  { %v2073_v7 = vadd.f32 %v5081_v61, %v1685_v59  ;;  %v2074_v8 = vadd.f32 %v5082_v0, %v1686_v60  ;;  %v5273_v9 = vsel %vm2561_vm12, 1.0, %v6094_v28  ;;  %v5274_v11 = vsel %vm2562_vm13, 1.0, %v6094_v28  ;;  %v5956_v59 = vld [vmem:[#allocation3 + $0x14] ss:$24 sps:$4 sm:$0xff]  }
 0x1e1   :  { %vm2949_vm14 = vcmp.eq.s32.totalorder %v133_v36, %v6211_v27  ;;  %vm2950_vm15 = vcmp.eq.s32.totalorder %v134_v44, %v6211_v27  ;;  %vm217_vm0 = vcmp.eq.s32.totalorder %v7791_v13, %v6197_v20  ;;  %vm218_vm1 = vcmp.eq.s32.totalorder %v7794_v34, %v6197_v20  ;;  %4227 = vmatprep.mubr.bf16.mxu0 %v5956_v59 }
 0x1e2   :  { %v2461_v32 = vadd.f32 %v5177_v1, %v2073_v7  ;;  %v2462_v46 = vadd.f32 %v5178_v3, %v2074_v8  ;;  %v5369_v15 = vsel %vm2949_vm14, 1.0, %v6094_v28  ;;  %v5370_v33 = vsel %vm2950_vm15, 1.0, %v6094_v28  ;;  %v5957_v3 = vld [vmem:[#allocation3 + $0xc8] ss:$24 sps:$4 sm:$0xff]  }
 0x1e3   :  { %v4681_v29 = vsel %vm217_vm0, 1.0, %v6094_v28  ;;  %v4682_v30 = vsel %vm218_vm1, 1.0, %v6094_v28  ;;  %vm605_vm2 = vcmp.eq.s32.totalorder %v7791_v13, %v6199_v21  ;;  %vm606_vm3 = vcmp.eq.s32.totalorder %v7794_v34, %v6199_v21  ;;  %4099 = vmatmul.mubr.bf16.gmra.mrb[40].mxu1 %v5957_v3 }
 0x1e4   :  { %v2849_v37 = vadd.f32 %v5273_v9, %v2461_v32  ;;  %v2850_v41 = vadd.f32 %v5274_v11, %v2462_v46  ;;  %v4777_v10 = vsel %vm605_vm2, 1.0, %v6094_v28  ;;  %v4778_v38 = vsel %vm606_vm3, 1.0, %v6094_v28  ;;  %v5958_v46 = vld [vmem:[#allocation3 + $0xfc] ss:$24 sps:$4 sm:$0xff]  }
 0x1e5   :  { %v893_v39 = vadd.f32 %v4777_v10, %v4681_v29  ;;  %v894_v16 = vadd.f32 %v4778_v38, %v4682_v30  ;;  %vm993_vm4 = vcmp.eq.s32.totalorder %v7791_v13, %v6201_v22  ;;  %vm994_vm5 = vcmp.eq.s32.totalorder %v7794_v34, %v6201_v22  ;;  %4106 = vmatprep.mubr.bf16.mxu1 %v5958_v46 }
 0x1e6   :  { %v3237_v42 = vadd.f32 %v5369_v15, %v2849_v37  ;;  %v3238_v12 = vadd.f32 %v5370_v33, %v2850_v41  ;;  %v4873_v6 = vsel %vm993_vm4, 1.0, %v6094_v28  ;;  %v4874_v31 = vsel %vm994_vm5, 1.0, %v6094_v28 }
 0x1e7   :  { %v1281_v63 = vadd.f32 %v4873_v6, %v893_v39  ;;  %v1282_v51 = vadd.f32 %v4874_v31, %v894_v16  ;;  %vm1381_vm6 = vcmp.eq.s32.totalorder %v7791_v13, %v6203_v23  ;;  %vm1382_vm7 = vcmp.eq.s32.totalorder %v7794_v34, %v6203_v23 }
 0x1e8   :  { %v3291_v40 = vpack.c.bf16 %v3238_v12, %v3237_v42  ;;  %v4969_v43 = vsel %vm1381_vm6, 1.0, %v6094_v28  ;;  %v4970_v62 = vsel %vm1382_vm7, 1.0, %v6094_v28  ;;  %vm1769_vm8 = vcmp.eq.s32.totalorder %v7791_v13, %v6205_v24  ;;  %v5962_v42 = vld [vmem:[#allocation3 + $0xf8] ss:$24 sps:$4 sm:$0xff]  }
 0x1e9   :  { %v1669_v36 = vadd.f32 %v4969_v43, %v1281_v63  ;;  %v1670_v44 = vadd.f32 %v4970_v62, %v1282_v51  ;;  %vm1770_vm9 = vcmp.eq.s32.totalorder %v7794_v34, %v6205_v24  ;;  %v5065_v45 = vsel %vm1769_vm8, 1.0, %v6094_v28 }
 0x1ea   :  { %5712 = vmatprep.subr.bf16.mxu0 %v3291_v40  ;;  %v5066_v35 = vsel %vm1770_vm9, 1.0, %v6094_v28  ;;  %vm2157_vm10 = vcmp.eq.s32.totalorder %v7791_v13, %v6207_v25  ;;  %vm2158_vm11 = vcmp.eq.s32.totalorder %v7794_v34, %v6207_v25  ;;  %vm2545_vm12 = vcmp.eq.s32.totalorder %v7791_v13, %v6209_v26 }
 0x1eb   :  { %v2057_v14 = vadd.f32 %v5065_v45, %v1669_v36  ;;  %v2058_v48 = vadd.f32 %v5066_v35, %v1670_v44  ;;  %v5161_v49 = vsel %vm2157_vm10, 1.0, %v6094_v28  ;;  %v5162_v50 = vsel %vm2158_vm11, 1.0, %v6094_v28  ;;  %4107 = vmatmul.mubr.bf16.gmra.mrb[44].mxu1 %v5962_v42 }
 0x1ec   :  { %vm2546_vm13 = vcmp.eq.s32.totalorder %v7794_v34, %v6209_v26  ;;  %v5257_v17 = vsel %vm2545_vm12, 1.0, %v6094_v28  ;;  %vm2933_vm14 = vcmp.eq.s32.totalorder %v7791_v13, %v6211_v27  ;;  %vm2934_vm15 = vcmp.eq.s32.totalorder %v7794_v34, %v6211_v27 }
 0x1ed   :  { %v2445_v18 = vadd.f32 %v5161_v49, %v2057_v14  ;;  %v2446_v52 = vadd.f32 %v5162_v50, %v2058_v48  ;;  %v5258_v53 = vsel %vm2546_vm13, 1.0, %v6094_v28  ;;  %v5353_v54 = vsel %vm2933_vm14, 1.0, %v6094_v28 }
 0x1ee   :  { %v5354_v55 = vsel %vm2934_vm15, 1.0, %v6094_v28  ;;  %v136_v56 = vadd.s32 696, %v6158_v2  ;;  %vm235_vm0 = vcmp.eq.s32.totalorder %v7797_v47, %v6197_v20  ;;  %vm623_vm1 = vcmp.eq.s32.totalorder %v7797_v47, %v6199_v21 }
 0x1ef   :  { %v2833_v13 = vadd.f32 %v5257_v17, %v2445_v18  ;;  %v2834_v4 = vadd.f32 %v5258_v53, %v2446_v52  ;;  %v4699_v34 = vsel %vm235_vm0, 1.0, %v6094_v28  ;;  %v4795_v19 = vsel %vm623_vm1, 1.0, %v6094_v28 }
 0x1f0   :  { %vm236_vm2 = vcmp.eq.s32.totalorder %v136_v56, %v6197_v20  ;;  %vm624_vm3 = vcmp.eq.s32.totalorder %v136_v56, %v6199_v21  ;;  %v911_v57 = vadd.f32 %v4795_v19, %v4699_v34  ;;  %vm1011_vm4 = vcmp.eq.s32.totalorder %v7797_v47, %v6201_v22 }
 0x1f1   :  { %v3221_v60 = vadd.f32 %v5353_v54, %v2833_v13  ;;  %v3222_v61 = vadd.f32 %v5354_v55, %v2834_v4  ;;  %v4700_v0 = vsel %vm236_vm2, 1.0, %v6094_v28  ;;  %v4796_v1 = vsel %vm624_vm3, 1.0, %v6094_v28 }
 0x1f2   :  { %v912_v7 = vadd.f32 %v4796_v1, %v4700_v0  ;;  %vm1012_vm5 = vcmp.eq.s32.totalorder %v136_v56, %v6201_v22  ;;  %v4891_v8 = vsel %vm1011_vm4, 1.0, %v6094_v28  ;;  %vm1399_vm6 = vcmp.eq.s32.totalorder %v7797_v47, %v6203_v23  ;;  %v5970_v1 = vld [vmem:[#allocation3 + $0x15c] ss:$24 sps:$4 sm:$0xff]  }
 0x1f3   :  { %v3283_v9 = vpack.c.bf16 %v3222_v61, %v3221_v60  ;;  %v4892_v11 = vsel %vm1012_vm5, 1.0, %v6094_v28  ;;  %v1299_v32 = vadd.f32 %v4891_v8, %v911_v57  ;;  %vm1400_vm7 = vcmp.eq.s32.totalorder %v136_v56, %v6203_v23 }
 0x1f4   :  { %v1300_v15 = vadd.f32 %v4892_v11, %v912_v7  ;;  %v4987_v33 = vsel %vm1399_vm6, 1.0, %v6094_v28  ;;  %v4988_v29 = vsel %vm1400_vm7, 1.0, %v6094_v28  ;;  %vm1787_vm8 = vcmp.eq.s32.totalorder %v7797_v47, %v6205_v24 }
 0x1f5   :  { %5713 = vmatpush3.bf16.msra.mxu0 %v3283_v9  ;;  %v1687_v30 = vadd.f32 %v4987_v33, %v1299_v32  ;;  %vm1788_vm9 = vcmp.eq.s32.totalorder %v136_v56, %v6205_v24  ;;  %v5083_v37 = vsel %vm1787_vm8, 1.0, %v6094_v28  ;;  %vm2175_vm10 = vcmp.eq.s32.totalorder %v7797_v47, %v6207_v25 }
 0x1f6   :  { %v1688_v41 = vadd.f32 %v4988_v29, %v1300_v15  ;;  %v5084_v10 = vsel %vm1788_vm9, 1.0, %v6094_v28  ;;  %vm2176_vm11 = vcmp.eq.s32.totalorder %v136_v56, %v6207_v25  ;;  %v5179_v38 = vsel %vm2175_vm10, 1.0, %v6094_v28 }
 0x1f7   :  { %v2075_v39 = vadd.f32 %v5083_v37, %v1687_v30  ;;  %v5180_v16 = vsel %vm2176_vm11, 1.0, %v6094_v28  ;;  %vm2563_vm12 = vcmp.eq.s32.totalorder %v7797_v47, %v6209_v26  ;;  %vm2564_vm13 = vcmp.eq.s32.totalorder %v136_v56, %v6209_v26  ;;  %v5974_v30 = vld [vmem:[#allocation3 + $0x158] ss:$24 sps:$4 sm:$0xff]  }
 0x1f8   :  { %v2076_v12 = vadd.f32 %v5084_v10, %v1688_v41  ;;  %v5275_v6 = vsel %vm2563_vm12, 1.0, %v6094_v28  ;;  %v5276_v31 = vsel %vm2564_vm13, 1.0, %v6094_v28  ;;  %vm2951_vm14 = vcmp.eq.s32.totalorder %v7797_v47, %v6211_v27  ;;  %v5964_v47 = vld [vmem:[#allocation3 + $0x12c] ss:$24 sps:$4 sm:$0xff]  }
 0x1f9   :  { %v2463_v63 = vadd.f32 %v5179_v38, %v2075_v39  ;;  %vm2952_vm15 = vcmp.eq.s32.totalorder %v136_v56, %v6211_v27  ;;  %v5371_v51 = vsel %vm2951_vm14, 1.0, %v6094_v28  ;;  %v119_v40 = vadd.s32 560, %v6158_v2  ;;  %4114 = vmatprep.mubr.bf16.mxu1 %v5964_v47  ;;  %v5968_v56 = vld [vmem:[#allocation3 + $0x128] ss:$24 sps:$4 sm:$0xff]  }
 0x1fa   :  { %v2464_v43 = vadd.f32 %v5180_v16, %v2076_v12  ;;  %v5372_v62 = vsel %vm2952_vm15, 1.0, %v6094_v28  ;;  %v120_v36 = vadd.s32 568, %v6158_v2  ;;  %v7923_v44 = vadd.s32 704, %v6158_v2  ;;  %4115 = vmatmul.mubr.bf16.gmra.mrb[48].mxu1 %v5968_v56 }
 0x1fb   :  { %v2851_v45 = vadd.f32 %v5275_v6, %v2463_v63  ;;  %vm219_vm0 = vcmp.eq.s32.totalorder %v119_v40, %v6197_v20  ;;  %vm607_vm1 = vcmp.eq.s32.totalorder %v119_v40, %v6199_v21  ;;  %vm995_vm2 = vcmp.eq.s32.totalorder %v119_v40, %v6201_v22  ;;  %4122 = vmatprep.mubr.bf16.mxu1 %v5970_v1 }
 0x1fc   :  { %v2852_v35 = vadd.f32 %v5276_v31, %v2464_v43  ;;  %vm220_vm3 = vcmp.eq.s32.totalorder %v120_v36, %v6197_v20  ;;  %v4683_v14 = vsel %vm219_vm0, 1.0, %v6094_v28  ;;  %vm608_vm4 = vcmp.eq.s32.totalorder %v120_v36, %v6199_v21 }
 0x1fd   :  { %v3239_v48 = vadd.f32 %v5371_v51, %v2851_v45  ;;  %v4684_v49 = vsel %vm220_vm3, 1.0, %v6094_v28  ;;  %v4779_v50 = vsel %vm607_vm1, 1.0, %v6094_v28  ;;  %v4780_v17 = vsel %vm608_vm4, 1.0, %v6094_v28 }
 0x1fe   :  { %v3240_v18 = vadd.f32 %v5372_v62, %v2852_v35  ;;  %v895_v52 = vadd.f32 %v4779_v50, %v4683_v14  ;;  %v896_v53 = vadd.f32 %v4780_v17, %v4684_v49  ;;  %vm996_vm5 = vcmp.eq.s32.totalorder %v120_v36, %v6201_v22  ;;  %v5980_v17 = vld [vmem:[#allocation3 + $0x188] ss:$24 sps:$4 sm:$0xff]  }
 0x1ff   :  { %v4875_v54 = vsel %vm995_vm2, 1.0, %v6094_v28  ;;  %v4876_v55 = vsel %vm996_vm5, 1.0, %v6094_v28  ;;  %vm1383_vm6 = vcmp.eq.s32.totalorder %v119_v40, %v6203_v23  ;;  %vm1384_vm7 = vcmp.eq.s32.totalorder %v120_v36, %v6203_v23 }
 0x200   :  { %v3292_v13 = vpack.c.bf16 %v3240_v18, %v3239_v48  ;;  %v1283_v4 = vadd.f32 %v4875_v54, %v895_v52  ;;  %v1284_v34 = vadd.f32 %v4876_v55, %v896_v53  ;;  %v4971_v19 = vsel %vm1383_vm6, 1.0, %v6094_v28 }
 0x201   :  { %v4972_v57 = vsel %vm1384_vm7, 1.0, %v6094_v28  ;;  %vm1771_vm8 = vcmp.eq.s32.totalorder %v119_v40, %v6205_v24  ;;  %vm1772_vm9 = vcmp.eq.s32.totalorder %v120_v36, %v6205_v24  ;;  %vm2159_vm10 = vcmp.eq.s32.totalorder %v119_v40, %v6207_v25 }
 0x202   :  { %5714 = vmatprep.subr.bf16.mxu0 %v3292_v13  ;;  %v1671_v58 = vadd.f32 %v4971_v19, %v1283_v4  ;;  %v1672_v59 = vadd.f32 %v4972_v57, %v1284_v34  ;;  %v5067_v60 = vsel %vm1771_vm8, 1.0, %v6094_v28  ;;  %v5068_v61 = vsel %vm1772_vm9, 1.0, %v6094_v28  ;;  %4123 = vmatmul.mubr.bf16.gmra.mrb[52].mxu1 %v5974_v30 }
 0x203   :  { %vm2160_vm11 = vcmp.eq.s32.totalorder %v120_v36, %v6207_v25  ;;  %v5163_v0 = vsel %vm2159_vm10, 1.0, %v6094_v28  ;;  %vm2547_vm12 = vcmp.eq.s32.totalorder %v119_v40, %v6209_v26  ;;  %vm2548_vm13 = vcmp.eq.s32.totalorder %v120_v36, %v6209_v26 }
 0x204   :  { %v2059_v3 = vadd.f32 %v5067_v60, %v1671_v58  ;;  %v2060_v7 = vadd.f32 %v5068_v61, %v1672_v59  ;;  %v5164_v8 = vsel %vm2160_vm11, 1.0, %v6094_v28  ;;  %v5259_v9 = vsel %vm2547_vm12, 1.0, %v6094_v28 }
 0x205   :  { %v5260_v11 = vsel %vm2548_vm13, 1.0, %v6094_v28  ;;  %vm2935_vm14 = vcmp.eq.s32.totalorder %v119_v40, %v6211_v27  ;;  %vm2936_vm15 = vcmp.eq.s32.totalorder %v120_v36, %v6211_v27  ;;  %v138_v32 = vadd.s32 712, %v6158_v2  ;;  %v5976_v40 = vld [vmem:[#allocation3 + $0x18c] ss:$24 sps:$4 sm:$0xff]  }
 0x206   :  { %v2447_v46 = vadd.f32 %v5163_v0, %v2059_v3  ;;  %v2448_v15 = vadd.f32 %v5164_v8, %v2060_v7  ;;  %v5355_v33 = vsel %vm2935_vm14, 1.0, %v6094_v28  ;;  %v5356_v29 = vsel %vm2936_vm15, 1.0, %v6094_v28  ;;  %4130 = vmatprep.mubr.bf16.mxu1 %v5976_v40 }
 0x207   :  { %vm237_vm0 = vcmp.eq.s32.totalorder %v7923_v44, %v6197_v20  ;;  %vm238_vm1 = vcmp.eq.s32.totalorder %v138_v32, %v6197_v20  ;;  %vm625_vm2 = vcmp.eq.s32.totalorder %v7923_v44, %v6199_v21  ;;  %vm626_vm3 = vcmp.eq.s32.totalorder %v138_v32, %v6199_v21 }
 0x208   :  { %v2835_v37 = vadd.f32 %v5259_v9, %v2447_v46  ;;  %v2836_v41 = vadd.f32 %v5260_v11, %v2448_v15  ;;  %v4701_v10 = vsel %vm237_vm0, 1.0, %v6094_v28  ;;  %v4702_v38 = vsel %vm238_vm1, 1.0, %v6094_v28  ;;  %v5986_v46 = vld [vmem:[#allocation3 + $0x1b8] ss:$24 sps:$4 sm:$0xff]  }
 0x209   :  { %v4797_v39 = vsel %vm625_vm2, 1.0, %v6094_v28  ;;  %v4798_v16 = vsel %vm626_vm3, 1.0, %v6094_v28  ;;  %vm1013_vm4 = vcmp.eq.s32.totalorder %v7923_v44, %v6201_v22  ;;  %vm1014_vm5 = vcmp.eq.s32.totalorder %v138_v32, %v6201_v22 }
 0x20a   :  { %v3223_v42 = vadd.f32 %v5355_v33, %v2835_v37  ;;  %v3224_v12 = vadd.f32 %v5356_v29, %v2836_v41  ;;  %v913_v6 = vadd.f32 %v4797_v39, %v4701_v10  ;;  %v914_v31 = vadd.f32 %v4798_v16, %v4702_v38  ;;  %4131 = vmatmul.mubr.bf16.gmra.mrb[56].mxu1 %v5980_v17 }
 0x20b   :  { %v4893_v63 = vsel %vm1013_vm4, 1.0, %v6094_v28  ;;  %v4894_v51 = vsel %vm1014_vm5, 1.0, %v6094_v28  ;;  %vm1401_vm6 = vcmp.eq.s32.totalorder %v7923_v44, %v6203_v23  ;;  %vm1402_vm7 = vcmp.eq.s32.totalorder %v138_v32, %v6203_v23 }
 0x20c   :  { %v3284_v43 = vpack.c.bf16 %v3224_v12, %v3223_v42  ;;  %v1301_v62 = vadd.f32 %v4893_v63, %v913_v6  ;;  %v1302_v36 = vadd.f32 %v4894_v51, %v914_v31  ;;  %v4989_v45 = vsel %vm1401_vm6, 1.0, %v6094_v28  ;;  %v5988_v42 = vld [vmem:[#allocation3 + $0x1ec] ss:$24 sps:$4 sm:$0xff]  }
 0x20d   :  { %v4990_v47 = vsel %vm1402_vm7, 1.0, %v6094_v28  ;;  %vm1789_vm8 = vcmp.eq.s32.totalorder %v7923_v44, %v6205_v24  ;;  %vm1790_vm9 = vcmp.eq.s32.totalorder %v138_v32, %v6205_v24  ;;  %vm2177_vm10 = vcmp.eq.s32.totalorder %v7923_v44, %v6207_v25 }
 0x20e   :  { %5715 = vmatpush3.bf16.msra.mxu0 %v3284_v43  ;;  %v1689_v35 = vadd.f32 %v4989_v45, %v1301_v62  ;;  %v1690_v14 = vadd.f32 %v4990_v47, %v1302_v36  ;;  %v5085_v48 = vsel %vm1789_vm8, 1.0, %v6094_v28  ;;  %v5086_v49 = vsel %vm1790_vm9, 1.0, %v6094_v28 }
 0x20f   :  { %vm2178_vm11 = vcmp.eq.s32.totalorder %v138_v32, %v6207_v25  ;;  %v5181_v50 = vsel %vm2177_vm10, 1.0, %v6094_v28  ;;  %vm2565_vm12 = vcmp.eq.s32.totalorder %v7923_v44, %v6209_v26  ;;  %vm2566_vm13 = vcmp.eq.s32.totalorder %v138_v32, %v6209_v26 }
 0x210   :  { %v2077_v18 = vadd.f32 %v5085_v48, %v1689_v35  ;;  %v2078_v52 = vadd.f32 %v5086_v49, %v1690_v14  ;;  %v5182_v53 = vsel %vm2178_vm11, 1.0, %v6094_v28  ;;  %v5277_v54 = vsel %vm2565_vm12, 1.0, %v6094_v28  ;;  %v5992_v48 = vld [vmem:[#allocation3 + $0x1e8] ss:$24 sps:$4 sm:$0xff]  }
 0x211   :  { %v5278_v55 = vsel %vm2566_vm13, 1.0, %v6094_v28  ;;  %vm2953_vm14 = vcmp.eq.s32.totalorder %v7923_v44, %v6211_v27  ;;  %vm2954_vm15 = vcmp.eq.s32.totalorder %v138_v32, %v6211_v27  ;;  %v121_v56 = vadd.s32 576, %v6158_v2  ;;  %v5982_v44 = vld [vmem:[#allocation3 + $0x1bc] ss:$24 sps:$4 sm:$0xff]  }
 0x212   :  { %v2465_v13 = vadd.f32 %v5181_v50, %v2077_v18  ;;  %v2466_v4 = vadd.f32 %v5182_v53, %v2078_v52  ;;  %v5373_v34 = vsel %vm2953_vm14, 1.0, %v6094_v28  ;;  %v5374_v19 = vsel %vm2954_vm15, 1.0, %v6094_v28  ;;  %4138 = vmatprep.mubr.bf16.mxu1 %v5982_v44 }
 0x213   :  { %v122_v57 = vadd.s32 584, %v6158_v2  ;;  %vm221_vm0 = vcmp.eq.s32.totalorder %v121_v56, %v6197_v20  ;;  %vm609_vm1 = vcmp.eq.s32.totalorder %v121_v56, %v6199_v21  ;;  %vm997_vm2 = vcmp.eq.s32.totalorder %v121_v56, %v6201_v22  ;;  %4139 = vmatmul.mubr.bf16.gmra.mrb[60].mxu1 %v5986_v46 }
 0x214   :  { %v2853_v58 = vadd.f32 %v5277_v54, %v2465_v13  ;;  %v2854_v59 = vadd.f32 %v5278_v55, %v2466_v4  ;;  %v4685_v60 = vsel %vm221_vm0, 1.0, %v6094_v28  ;;  %v4781_v61 = vsel %vm609_vm1, 1.0, %v6094_v28  ;;  %4146 = vmatprep.mubr.bf16.mxu1 %v5988_v42  ;;  %v5994_v4 = vld [vmem:[#allocation3 + $0x21c] ss:$24 sps:$4 sm:$0xff]  }
 0x215   :  { %vm222_vm3 = vcmp.eq.s32.totalorder %v122_v57, %v6197_v20  ;;  %vm610_vm4 = vcmp.eq.s32.totalorder %v122_v57, %v6199_v21  ;;  %v897_v0 = vadd.f32 %v4781_v61, %v4685_v60  ;;  %vm998_vm5 = vcmp.eq.s32.totalorder %v122_v57, %v6201_v22 }
 0x216   :  { %v3241_v1 = vadd.f32 %v5373_v34, %v2853_v58  ;;  %v3242_v3 = vadd.f32 %v5374_v19, %v2854_v59  ;;  %v4686_v7 = vsel %vm222_vm3, 1.0, %v6094_v28  ;;  %v4782_v8 = vsel %vm610_vm4, 1.0, %v6094_v28 }
 0x217   :  { %v898_v9 = vadd.f32 %v4782_v8, %v4686_v7  ;;  %v4877_v11 = vsel %vm997_vm2, 1.0, %v6094_v28  ;;  %v4878_v32 = vsel %vm998_vm5, 1.0, %v6094_v28  ;;  %vm1385_vm6 = vcmp.eq.s32.totalorder %v121_v56, %v6203_v23  ;;  %v5998_v7 = vld [vmem:[#allocation3 + $0x218] ss:$24 sps:$4 sm:$0xff]  }
 0x218   :  { %v3293_v15 = vpack.c.bf16 %v3242_v3, %v3241_v1  ;;  %v1285_v33 = vadd.f32 %v4877_v11, %v897_v0  ;;  %vm1386_vm7 = vcmp.eq.s32.totalorder %v122_v57, %v6203_v23  ;;  %v4973_v29 = vsel %vm1385_vm6, 1.0, %v6094_v28 }
 0x219   :  { %v1286_v30 = vadd.f32 %v4878_v32, %v898_v9  ;;  %v4974_v37 = vsel %vm1386_vm7, 1.0, %v6094_v28  ;;  %vm1773_vm8 = vcmp.eq.s32.totalorder %v121_v56, %v6205_v24  ;;  %vm1774_vm9 = vcmp.eq.s32.totalorder %v122_v57, %v6205_v24 }
 0x21a   :  { %5716 = vmatprep.subr.bf16.mxu0 %v3293_v15  ;;  %v1673_v41 = vadd.f32 %v4973_v29, %v1285_v33  ;;  %v5069_v10 = vsel %vm1773_vm8, 1.0, %v6094_v28  ;;  %v5070_v38 = vsel %vm1774_vm9, 1.0, %v6094_v28  ;;  %vm2161_vm10 = vcmp.eq.s32.totalorder %v121_v56, %v6207_v25 }
 0x21b   :  { %v1674_v39 = vadd.f32 %v4974_v37, %v1286_v30  ;;  %vm2162_vm11 = vcmp.eq.s32.totalorder %v122_v57, %v6207_v25  ;;  %v5165_v16 = vsel %vm2161_vm10, 1.0, %v6094_v28  ;;  %vm2549_vm12 = vcmp.eq.s32.totalorder %v121_v56, %v6209_v26  ;;  %4147 = vmatmul.mubr.bf16.gmra.mrb[64].mxu1 %v5992_v48 }
 0x21c   :  { %v2061_v12 = vadd.f32 %v5069_v10, %v1673_v41  ;;  %v5166_v6 = vsel %vm2162_vm11, 1.0, %v6094_v28  ;;  %vm2550_vm13 = vcmp.eq.s32.totalorder %v122_v57, %v6209_v26  ;;  %v5261_v31 = vsel %vm2549_vm12, 1.0, %v6094_v28  ;;  %4154 = vmatprep.mubr.bf16.mxu1 %v5994_v4  ;;  %v6000_v41 = vld [vmem:[#allocation3 + $0x24c] ss:$24 sps:$4 sm:$0xff]  }
 0x21d   :  { %v2062_v63 = vadd.f32 %v5070_v38, %v1674_v39  ;;  %v5262_v51 = vsel %vm2550_vm13, 1.0, %v6094_v28  ;;  %vm2937_vm14 = vcmp.eq.s32.totalorder %v121_v56, %v6211_v27  ;;  %vm2938_vm15 = vcmp.eq.s32.totalorder %v122_v57, %v6211_v27 }
 0x21e   :  { %v2449_v40 = vadd.f32 %v5165_v16, %v2061_v12  ;;  %v5357_v43 = vsel %vm2937_vm14, 1.0, %v6094_v28  ;;  %v5358_v62 = vsel %vm2938_vm15, 1.0, %v6094_v28  ;;  %v139_v36 = vadd.s32 720, %v6158_v2 }
 0x21f   :  { %v2450_v45 = vadd.f32 %v5166_v6, %v2062_v63  ;;  %v140_v47 = vadd.s32 728, %v6158_v2  ;;  %v8039_v35 = vadd.s32 592, %v6158_v2  ;;  %v8042_v14 = vadd.s32 600, %v6158_v2 }
 0x220   :  { %v2837_v49 = vadd.f32 %v5261_v31, %v2449_v40  ;;  %vm239_vm0 = vcmp.eq.s32.totalorder %v139_v36, %v6197_v20  ;;  %vm627_vm1 = vcmp.eq.s32.totalorder %v139_v36, %v6199_v21  ;;  %vm1015_vm2 = vcmp.eq.s32.totalorder %v139_v36, %v6201_v22 }
 0x221   :  { %v2838_v50 = vadd.f32 %v5262_v51, %v2450_v45  ;;  %vm240_vm3 = vcmp.eq.s32.totalorder %v140_v47, %v6197_v20  ;;  %v4703_v17 = vsel %vm239_vm0, 1.0, %v6094_v28  ;;  %vm628_vm4 = vcmp.eq.s32.totalorder %v140_v47, %v6199_v21 }
 0x222   :  { %v3225_v18 = vadd.f32 %v5357_v43, %v2837_v49  ;;  %v4704_v52 = vsel %vm240_vm3, 1.0, %v6094_v28  ;;  %v4799_v53 = vsel %vm627_vm1, 1.0, %v6094_v28  ;;  %v4800_v54 = vsel %vm628_vm4, 1.0, %v6094_v28  ;;  %v6004_v43 = vld [vmem:[#allocation3 + $0x248] ss:$24 sps:$4 sm:$0xff]  }
 0x223   :  { %v3226_v55 = vadd.f32 %v5358_v62, %v2838_v50  ;;  %v915_v56 = vadd.f32 %v4799_v53, %v4703_v17  ;;  %v916_v13 = vadd.f32 %v4800_v54, %v4704_v52  ;;  %vm1016_vm5 = vcmp.eq.s32.totalorder %v140_v47, %v6201_v22  ;;  %4155 = vmatmul.mubr.bf16.gmra.mrb[68].mxu1 %v5998_v7  ;;  %v6006_v53 = vld [vmem:[#allocation3 + $0x27c] ss:$24 sps:$4 sm:$0xff]  }
 0x224   :  { %v4895_v34 = vsel %vm1015_vm2, 1.0, %v6094_v28  ;;  %v4896_v19 = vsel %vm1016_vm5, 1.0, %v6094_v28  ;;  %vm1403_vm6 = vcmp.eq.s32.totalorder %v139_v36, %v6203_v23  ;;  %vm1404_vm7 = vcmp.eq.s32.totalorder %v140_v47, %v6203_v23  ;;  %4162 = vmatprep.mubr.bf16.mxu1 %v6000_v41 }
 0x225   :  { %v3285_v57 = vpack.c.bf16 %v3226_v55, %v3225_v18  ;;  %v1303_v44 = vadd.f32 %v4895_v34, %v915_v56  ;;  %v1304_v58 = vadd.f32 %v4896_v19, %v916_v13  ;;  %v4991_v59 = vsel %vm1403_vm6, 1.0, %v6094_v28 }
 0x226   :  { %v4992_v60 = vsel %vm1404_vm7, 1.0, %v6094_v28  ;;  %vm1791_vm8 = vcmp.eq.s32.totalorder %v139_v36, %v6205_v24  ;;  %vm1792_vm9 = vcmp.eq.s32.totalorder %v140_v47, %v6205_v24  ;;  %vm2179_vm10 = vcmp.eq.s32.totalorder %v139_v36, %v6207_v25 }
 0x227   :  { %5717 = vmatpush3.bf16.msra.mxu0 %v3285_v57  ;;  %v1691_v61 = vadd.f32 %v4991_v59, %v1303_v44  ;;  %v1692_v0 = vadd.f32 %v4992_v60, %v1304_v58  ;;  %v5087_v1 = vsel %vm1791_vm8, 1.0, %v6094_v28  ;;  %v5088_v3 = vsel %vm1792_vm9, 1.0, %v6094_v28 }
 0x228   :  { %vm2180_vm11 = vcmp.eq.s32.totalorder %v140_v47, %v6207_v25  ;;  %v5183_v8 = vsel %vm2179_vm10, 1.0, %v6094_v28  ;;  %vm2567_vm12 = vcmp.eq.s32.totalorder %v139_v36, %v6209_v26  ;;  %vm2568_vm13 = vcmp.eq.s32.totalorder %v140_v47, %v6209_v26 }
 0x229   :  { %v2079_v9 = vadd.f32 %v5087_v1, %v1691_v61  ;;  %v2080_v11 = vadd.f32 %v5088_v3, %v1692_v0  ;;  %v5184_v32 = vsel %vm2180_vm11, 1.0, %v6094_v28  ;;  %v5279_v46 = vsel %vm2567_vm12, 1.0, %v6094_v28  ;;  %v6010_v61 = vld [vmem:[#allocation3 + $0x278] ss:$24 sps:$4 sm:$0xff]  }
 0x22a   :  { %v5280_v15 = vsel %vm2568_vm13, 1.0, %v6094_v28  ;;  %vm2955_vm14 = vcmp.eq.s32.totalorder %v139_v36, %v6211_v27  ;;  %vm2956_vm15 = vcmp.eq.s32.totalorder %v140_v47, %v6211_v27  ;;  %vm223_vm0 = vcmp.eq.s32.totalorder %v8039_v35, %v6197_v20 }
 0x22b   :  { %v2467_v33 = vadd.f32 %v5183_v8, %v2079_v9  ;;  %v2468_v29 = vadd.f32 %v5184_v32, %v2080_v11  ;;  %v5375_v30 = vsel %vm2955_vm14, 1.0, %v6094_v28  ;;  %v5376_v37 = vsel %vm2956_vm15, 1.0, %v6094_v28  ;;  %4163 = vmatmul.mubr.bf16.gmra.mrb[72].mxu1 %v6004_v43 }
 0x22c   :  { %vm224_vm1 = vcmp.eq.s32.totalorder %v8042_v14, %v6197_v20  ;;  %v4687_v10 = vsel %vm223_vm0, 1.0, %v6094_v28  ;;  %vm611_vm2 = vcmp.eq.s32.totalorder %v8039_v35, %v6199_v21  ;;  %vm612_vm3 = vcmp.eq.s32.totalorder %v8042_v14, %v6199_v21  ;;  %4170 = vmatprep.mubr.bf16.mxu1 %v6006_v53 }
 0x22d   :  { %v2855_v38 = vadd.f32 %v5279_v46, %v2467_v33  ;;  %v2856_v39 = vadd.f32 %v5280_v15, %v2468_v29  ;;  %v4688_v16 = vsel %vm224_vm1, 1.0, %v6094_v28  ;;  %v4783_v42 = vsel %vm611_vm2, 1.0, %v6094_v28  ;;  %v6012_v15 = vld [vmem:[#allocation3 + $0x2ac] ss:$24 sps:$4 sm:$0xff]  }
 0x22e   :  { %v4784_v12 = vsel %vm612_vm3, 1.0, %v6094_v28  ;;  %v899_v6 = vadd.f32 %v4783_v42, %v4687_v10  ;;  %vm999_vm4 = vcmp.eq.s32.totalorder %v8039_v35, %v6201_v22  ;;  %vm1000_vm5 = vcmp.eq.s32.totalorder %v8042_v14, %v6201_v22  ;;  %v6016_v42 = vld [vmem:[#allocation3 + $0x2a8] ss:$24 sps:$4 sm:$0xff]  }
 0x22f   :  { %v3243_v31 = vadd.f32 %v5375_v30, %v2855_v38  ;;  %v3244_v63 = vadd.f32 %v5376_v37, %v2856_v39  ;;  %v900_v51 = vadd.f32 %v4784_v12, %v4688_v16  ;;  %v4879_v40 = vsel %vm999_vm4, 1.0, %v6094_v28 }
 0x230   :  { %v4880_v62 = vsel %vm1000_vm5, 1.0, %v6094_v28  ;;  %v1287_v36 = vadd.f32 %v4879_v40, %v899_v6  ;;  %vm1387_vm6 = vcmp.eq.s32.totalorder %v8039_v35, %v6203_v23  ;;  %vm1388_vm7 = vcmp.eq.s32.totalorder %v8042_v14, %v6203_v23 }
 0x231   :  { %v3294_v45 = vpack.c.bf16 %v3244_v63, %v3243_v31  ;;  %v1288_v47 = vadd.f32 %v4880_v62, %v900_v51  ;;  %v4975_v48 = vsel %vm1387_vm6, 1.0, %v6094_v28  ;;  %v4976_v49 = vsel %vm1388_vm7, 1.0, %v6094_v28 }
 0x232   :  { %v1675_v50 = vadd.f32 %v4975_v48, %v1287_v36  ;;  %vm1775_vm8 = vcmp.eq.s32.totalorder %v8039_v35, %v6205_v24  ;;  %vm1776_vm9 = vcmp.eq.s32.totalorder %v8042_v14, %v6205_v24  ;;  %vm2163_vm10 = vcmp.eq.s32.totalorder %v8039_v35, %v6207_v25 }
 0x233   :  { %5718 = vmatprep.subr.bf16.mxu0 %v3294_v45  ;;  %v1676_v17 = vadd.f32 %v4976_v49, %v1288_v47  ;;  %v5071_v18 = vsel %vm1775_vm8, 1.0, %v6094_v28  ;;  %v5072_v52 = vsel %vm1776_vm9, 1.0, %v6094_v28  ;;  %vm2164_vm11 = vcmp.eq.s32.totalorder %v8042_v14, %v6207_v25  ;;  %4171 = vmatmul.mubr.bf16.gmra.mrb[76].mxu1 %v6010_v61  ;;  %v6018_v47 = vld [vmem:[#allocation3 + $0x2dc] ss:$24 sps:$4 sm:$0xff]  }
 0x234   :  { %v2063_v54 = vadd.f32 %v5071_v18, %v1675_v50  ;;  %v5167_v55 = vsel %vm2163_vm10, 1.0, %v6094_v28  ;;  %v5168_v56 = vsel %vm2164_vm11, 1.0, %v6094_v28  ;;  %vm2551_vm12 = vcmp.eq.s32.totalorder %v8039_v35, %v6209_v26  ;;  %4178 = vmatprep.mubr.bf16.mxu1 %v6012_v15 }
 0x235   :  { %v2064_v13 = vadd.f32 %v5072_v52, %v1676_v17  ;;  %vm2552_vm13 = vcmp.eq.s32.totalorder %v8042_v14, %v6209_v26  ;;  %v5263_v4 = vsel %vm2551_vm12, 1.0, %v6094_v28  ;;  %vm2939_vm14 = vcmp.eq.s32.totalorder %v8039_v35, %v6211_v27 }
 0x236   :  { %v2451_v34 = vadd.f32 %v5167_v55, %v2063_v54  ;;  %v5264_v19 = vsel %vm2552_vm13, 1.0, %v6094_v28  ;;  %vm2940_vm15 = vcmp.eq.s32.totalorder %v8042_v14, %v6211_v27  ;;  %v5359_v57 = vsel %vm2939_vm14, 1.0, %v6094_v28 }
 0x237   :  { %v2452_v44 = vadd.f32 %v5168_v56, %v2064_v13  ;;  %v5360_v58 = vsel %vm2940_vm15, 1.0, %v6094_v28  ;;  %v141_v59 = vadd.s32 736, %v6158_v2  ;;  %v142_v60 = vadd.s32 744, %v6158_v2 }
 0x238   :  { %v2839_v0 = vadd.f32 %v5263_v4, %v2451_v34  ;;  %v8127_v35 = vadd.s32 608, %v6158_v2  ;;  %v8130_v1 = vadd.s32 616, %v6158_v2  ;;  %v8133_v3 = vadd.s32 752, %v6158_v2  ;;  %v6022_v34 = vld [vmem:[#allocation3 + $0x2d8] ss:$24 sps:$4 sm:$0xff]  }
 0x239   :  { %v2840_v14 = vadd.f32 %v5264_v19, %v2452_v44  ;;  %vm241_vm0 = vcmp.eq.s32.totalorder %v141_v59, %v6197_v20  ;;  %vm242_vm1 = vcmp.eq.s32.totalorder %v142_v60, %v6197_v20  ;;  %vm629_vm2 = vcmp.eq.s32.totalorder %v141_v59, %v6199_v21 }
 0x23a   :  { %v3227_v7 = vadd.f32 %v5359_v57, %v2839_v0  ;;  %v4705_v8 = vsel %vm241_vm0, 1.0, %v6094_v28  ;;  %v4706_v9 = vsel %vm242_vm1, 1.0, %v6094_v28  ;;  %vm630_vm3 = vcmp.eq.s32.totalorder %v142_v60, %v6199_v21 }
 0x23b   :  { %v3228_v11 = vadd.f32 %v5360_v58, %v2840_v14  ;;  %v4801_v32 = vsel %vm629_vm2, 1.0, %v6094_v28  ;;  %v4802_v46 = vsel %vm630_vm3, 1.0, %v6094_v28  ;;  %vm1017_vm4 = vcmp.eq.s32.totalorder %v141_v59, %v6201_v22  ;;  %4179 = vmatmul.mubr.bf16.gmra.mrb[80].mxu1 %v6016_v42 }
 0x23c   :  { %v917_v33 = vadd.f32 %v4801_v32, %v4705_v8  ;;  %v918_v29 = vadd.f32 %v4802_v46, %v4706_v9  ;;  %vm1018_vm5 = vcmp.eq.s32.totalorder %v142_v60, %v6201_v22  ;;  %v4897_v30 = vsel %vm1017_vm4, 1.0, %v6094_v28  ;;  %4186 = vmatprep.mubr.bf16.mxu1 %v6018_v47 }
 0x23d   :  { %v3286_v37 = vpack.c.bf16 %v3228_v11, %v3227_v7  ;;  %v4898_v41 = vsel %vm1018_vm5, 1.0, %v6094_v28  ;;  %vm1405_vm6 = vcmp.eq.s32.totalorder %v141_v59, %v6203_v23  ;;  %vm1406_vm7 = vcmp.eq.s32.totalorder %v142_v60, %v6203_v23 }
 0x23e   :  { %v1305_v10 = vadd.f32 %v4897_v30, %v917_v33  ;;  %v1306_v38 = vadd.f32 %v4898_v41, %v918_v29  ;;  %v4993_v39 = vsel %vm1405_vm6, 1.0, %v6094_v28  ;;  %v4994_v16 = vsel %vm1406_vm7, 1.0, %v6094_v28 }
 0x23f   :  { %5719 = vmatpush3.bf16.msra.mxu0 %v3286_v37  ;;  %vm1793_vm8 = vcmp.eq.s32.totalorder %v141_v59, %v6205_v24  ;;  %vm1794_vm9 = vcmp.eq.s32.totalorder %v142_v60, %v6205_v24  ;;  %vm2181_vm10 = vcmp.eq.s32.totalorder %v141_v59, %v6207_v25  ;;  %vm2182_vm11 = vcmp.eq.s32.totalorder %v142_v60, %v6207_v25 }
 0x240   :  { %v1693_v12 = vadd.f32 %v4993_v39, %v1305_v10  ;;  %v1694_v6 = vadd.f32 %v4994_v16, %v1306_v38  ;;  %v5089_v31 = vsel %vm1793_vm8, 1.0, %v6094_v28  ;;  %v5090_v63 = vsel %vm1794_vm9, 1.0, %v6094_v28 }
 0x241   :  { %v5185_v51 = vsel %vm2181_vm10, 1.0, %v6094_v28  ;;  %v5186_v40 = vsel %vm2182_vm11, 1.0, %v6094_v28  ;;  %vm2569_vm12 = vcmp.eq.s32.totalorder %v141_v59, %v6209_v26  ;;  %vm2570_vm13 = vcmp.eq.s32.totalorder %v142_v60, %v6209_v26 }
 0x242   :  { %v2081_v43 = vadd.f32 %v5089_v31, %v1693_v12  ;;  %v2082_v62 = vadd.f32 %v5090_v63, %v1694_v6  ;;  %v5281_v36 = vsel %vm2569_vm12, 1.0, %v6094_v28  ;;  %v5282_v45 = vsel %vm2570_vm13, 1.0, %v6094_v28 }
 0x243   :  { %vm2957_vm14 = vcmp.eq.s32.totalorder %v141_v59, %v6211_v27  ;;  %vm2958_vm15 = vcmp.eq.s32.totalorder %v142_v60, %v6211_v27  ;;  %vm225_vm0 = vcmp.eq.s32.totalorder %v8127_v35, %v6197_v20  ;;  %vm226_vm1 = vcmp.eq.s32.totalorder %v8130_v1, %v6197_v20  ;;  %4187 = vmatmul.mubr.bf16.gmra.mrb[84].mxu1 %v6022_v34 }
 0x244   :  { %v2469_v48 = vadd.f32 %v5185_v51, %v2081_v43  ;;  %v2470_v49 = vadd.f32 %v5186_v40, %v2082_v62  ;;  %v5377_v50 = vsel %vm2957_vm14, 1.0, %v6094_v28  ;;  %v5378_v17 = vsel %vm2958_vm15, 1.0, %v6094_v28 }
 0x245   :  { %v4689_v18 = vsel %vm225_vm0, 1.0, %v6094_v28  ;;  %v4690_v52 = vsel %vm226_vm1, 1.0, %v6094_v28  ;;  %vm613_vm2 = vcmp.eq.s32.totalorder %v8127_v35, %v6199_v21  ;;  %vm614_vm3 = vcmp.eq.s32.totalorder %v8130_v1, %v6199_v21 }
 0x246   :  { %v2857_v53 = vadd.f32 %v5281_v36, %v2469_v48  ;;  %v2858_v54 = vadd.f32 %v5282_v45, %v2470_v49  ;;  %v4785_v55 = vsel %vm613_vm2, 1.0, %v6094_v28  ;;  %v4786_v56 = vsel %vm614_vm3, 1.0, %v6094_v28 }
 0x247   :  { %v901_v13 = vadd.f32 %v4785_v55, %v4689_v18  ;;  %v902_v4 = vadd.f32 %v4786_v56, %v4690_v52  ;;  %vm1001_vm4 = vcmp.eq.s32.totalorder %v8127_v35, %v6201_v22  ;;  %vm1002_vm5 = vcmp.eq.s32.totalorder %v8130_v1, %v6201_v22 }
 0x248   :  { %v3245_v19 = vadd.f32 %v5377_v50, %v2857_v53  ;;  %v3246_v57 = vadd.f32 %v5378_v17, %v2858_v54  ;;  %v4881_v44 = vsel %vm1001_vm4, 1.0, %v6094_v28  ;;  %v4882_v58 = vsel %vm1002_vm5, 1.0, %v6094_v28 }
 0x249   :  { %v1289_v59 = vadd.f32 %v4881_v44, %v901_v13  ;;  %v1290_v60 = vadd.f32 %v4882_v58, %v902_v4  ;;  %vm1389_vm6 = vcmp.eq.s32.totalorder %v8127_v35, %v6203_v23  ;;  %vm1390_vm7 = vcmp.eq.s32.totalorder %v8130_v1, %v6203_v23 }
 0x24a   :  { %v3295_v61 = vpack.c.bf16 %v3246_v57, %v3245_v19  ;;  %v4977_v0 = vsel %vm1389_vm6, 1.0, %v6094_v28  ;;  %v4978_v14 = vsel %vm1390_vm7, 1.0, %v6094_v28  ;;  %vm1777_vm8 = vcmp.eq.s32.totalorder %v8127_v35, %v6205_v24 }
 0x24b   :  { %v1677_v7 = vadd.f32 %v4977_v0, %v1289_v59  ;;  %v1678_v8 = vadd.f32 %v4978_v14, %v1290_v60  ;;  %vm1778_vm9 = vcmp.eq.s32.totalorder %v8130_v1, %v6205_v24  ;;  %v5073_v9 = vsel %vm1777_vm8, 1.0, %v6094_v28 }
 0x24c   :  { %5720 = vmatprep.subr.bf16.mxu0 %v3295_v61  ;;  %v5074_v11 = vsel %vm1778_vm9, 1.0, %v6094_v28  ;;  %vm2165_vm10 = vcmp.eq.s32.totalorder %v8127_v35, %v6207_v25  ;;  %vm2166_vm11 = vcmp.eq.s32.totalorder %v8130_v1, %v6207_v25  ;;  %vm2553_vm12 = vcmp.eq.s32.totalorder %v8127_v35, %v6209_v26 }
 0x24d   :  { %v2065_v32 = vadd.f32 %v5073_v9, %v1677_v7  ;;  %v2066_v46 = vadd.f32 %v5074_v11, %v1678_v8  ;;  %v5169_v15 = vsel %vm2165_vm10, 1.0, %v6094_v28  ;;  %v5170_v33 = vsel %vm2166_vm11, 1.0, %v6094_v28 }
 0x24e   :  { %vm2554_vm13 = vcmp.eq.s32.totalorder %v8130_v1, %v6209_v26  ;;  %v5265_v29 = vsel %vm2553_vm12, 1.0, %v6094_v28  ;;  %vm2941_vm14 = vcmp.eq.s32.totalorder %v8127_v35, %v6211_v27  ;;  %vm2942_vm15 = vcmp.eq.s32.totalorder %v8130_v1, %v6211_v27 }
 0x24f   :  { %v2453_v30 = vadd.f32 %v5169_v15, %v2065_v32  ;;  %v2454_v37 = vadd.f32 %v5170_v33, %v2066_v46  ;;  %v5266_v41 = vsel %vm2554_vm13, 1.0, %v6094_v28  ;;  %v5361_v10 = vsel %vm2941_vm14, 1.0, %v6094_v28 }
 0x250   :  { %v5362_v38 = vsel %vm2942_vm15, 1.0, %v6094_v28  ;;  %v144_v39 = vadd.s32 760, %v6158_v2  ;;  %vm243_vm0 = vcmp.eq.s32.totalorder %v8133_v3, %v6197_v20  ;;  %vm631_vm1 = vcmp.eq.s32.totalorder %v8133_v3, %v6199_v21 }
 0x251   :  { %v2841_v35 = vadd.f32 %v5265_v29, %v2453_v30  ;;  %v2842_v16 = vadd.f32 %v5266_v41, %v2454_v37  ;;  %v4707_v1 = vsel %vm243_vm0, 1.0, %v6094_v28  ;;  %v4803_v42 = vsel %vm631_vm1, 1.0, %v6094_v28 }
 0x252   :  { %vm244_vm2 = vcmp.eq.s32.totalorder %v144_v39, %v6197_v20  ;;  %vm632_vm3 = vcmp.eq.s32.totalorder %v144_v39, %v6199_v21  ;;  %v919_v12 = vadd.f32 %v4803_v42, %v4707_v1  ;;  %vm1019_vm4 = vcmp.eq.s32.totalorder %v8133_v3, %v6201_v22 }
 0x253   :  { %v3229_v6 = vadd.f32 %v5361_v10, %v2841_v35  ;;  %v3230_v31 = vadd.f32 %v5362_v38, %v2842_v16  ;;  %v4708_v63 = vsel %vm244_vm2, 1.0, %v6094_v28  ;;  %v4804_v51 = vsel %vm632_vm3, 1.0, %v6094_v28 }
 0x254   :  { %v920_v40 = vadd.f32 %v4804_v51, %v4708_v63  ;;  %vm1020_vm5 = vcmp.eq.s32.totalorder %v144_v39, %v6201_v22  ;;  %v4899_v43 = vsel %vm1019_vm4, 1.0, %v6094_v28  ;;  %vm1407_vm6 = vcmp.eq.s32.totalorder %v8133_v3, %v6203_v23  ;;  %v5560_v63 = vpop.f32.mrb[0].mxu1 }
 0x255   :  { %v3287_v62 = vpack.c.bf16 %v3230_v31, %v3229_v6  ;;  %v4900_v36 = vsel %vm1020_vm5, 1.0, %v6094_v28  ;;  %v1307_v45 = vadd.f32 %v4899_v43, %v919_v12  ;;  %vm1408_vm7 = vcmp.eq.s32.totalorder %v144_v39, %v6203_v23  ;;  %v5500_v31 = vpop.f32.mrb[0].mxu0 }
 0x256   :  { %v1308_v47 = vadd.f32 %v4900_v36, %v920_v40  ;;  %v4995_v48 = vsel %vm1407_vm6, 1.0, %v6094_v28  ;;  %v4996_v49 = vsel %vm1408_vm7, 1.0, %v6094_v28  ;;  %vm1795_vm8 = vcmp.eq.s32.totalorder %v8133_v3, %v6205_v24  ;;  %v5501_v43 = vpop.f32.mrb[1].mxu0 }
 0x257   :  { %5721 = vmatpush3.bf16.msra.mxu0 %v3287_v62  ;;  %v1695_v50 = vadd.f32 %v4995_v48, %v1307_v45  ;;  %vm1796_vm9 = vcmp.eq.s32.totalorder %v144_v39, %v6205_v24  ;;  %v5091_v17 = vsel %vm1795_vm8, 1.0, %v6094_v28  ;;  %vm2183_vm10 = vcmp.eq.s32.totalorder %v8133_v3, %v6207_v25  ;;  %v5561_v62 = vpop.f32.mrb[1].mxu1  ;;  %v5503_v45 = vpop.f32.mrb[2].mxu0 }
 0x258   :  { %v1696_v18 = vadd.f32 %v4996_v49, %v1308_v47  ;;  %v5092_v52 = vsel %vm1796_vm9, 1.0, %v6094_v28  ;;  %vm2184_vm11 = vcmp.eq.s32.totalorder %v144_v39, %v6207_v25  ;;  %v5187_v53 = vsel %vm2183_vm10, 1.0, %v6094_v28  ;;  %v5504_v49 = vpop.f32.mrb[3].mxu0 }
 0x259   :  { %v2083_v54 = vadd.f32 %v5091_v17, %v1695_v50  ;;  %v5188_v55 = vsel %vm2184_vm11, 1.0, %v6094_v28  ;;  %vm2571_vm12 = vcmp.eq.s32.totalorder %v8133_v3, %v6209_v26  ;;  %vm2572_vm13 = vcmp.eq.s32.totalorder %v144_v39, %v6209_v26  ;;  %v5954_v17 = vld [vmem:[#allocation3 + $0x10] ss:$24 sps:$4 sm:$0xff]  }
 0x25a   :  { %v2084_v56 = vadd.f32 %v5092_v52, %v1696_v18  ;;  %v5283_v13 = vsel %vm2571_vm12, 1.0, %v6094_v28  ;;  %vm2959_vm14 = vcmp.eq.s32.totalorder %v8133_v3, %v6211_v27  ;;  %v5284_v34 = vsel %vm2572_vm13, 1.0, %v6094_v28  ;;  %v5506_v52 = vpop.f32.mrb[4].mxu0 }
 0x25b   :  { %v2471_v4 = vadd.f32 %v5187_v53, %v2083_v54  ;;  %vm2960_vm15 = vcmp.eq.s32.totalorder %v144_v39, %v6211_v27  ;;  %v127_v19 = vadd.s32 624, %v6158_v2  ;;  %v5379_v44 = vsel %vm2959_vm14, 1.0, %v6094_v28 }
 0x25c   :  { %v2472_v57 = vadd.f32 %v5188_v55, %v2084_v56  ;;  %v5380_v58 = vsel %vm2960_vm15, 1.0, %v6094_v28  ;;  %v128_v59 = vadd.s32 632, %v6158_v2  ;;  %v8290_v36 = vadd.f32 %v5501_v43, %v5500_v31  ;;  %v5960_v55 = vld [vmem:[#allocation3 + $0x44] ss:$24 sps:$4 sm:$0xff]   ;;  %v5507_v56 = vpop.f32.mrb[5].mxu0 }
 0x25d   :  { %v2859_v60 = vadd.f32 %v5283_v13, %v2471_v4  ;;  %vm227_vm0 = vcmp.eq.s32.totalorder %v127_v19, %v6197_v20  ;;  %vm615_vm1 = vcmp.eq.s32.totalorder %v127_v19, %v6199_v21  ;;  %vm1003_vm2 = vcmp.eq.s32.totalorder %v127_v19, %v6201_v22  ;;  %v5969_v43 = vld [vmem:[#allocation3 + $0x70] ss:$24 sps:$4 sm:$0xff]  }
 0x25e   :  { %v2860_v3 = vadd.f32 %v5284_v34, %v2472_v57  ;;  %vm228_vm3 = vcmp.eq.s32.totalorder %v128_v59, %v6197_v20  ;;  %v4691_v61 = vsel %vm227_vm0, 1.0, %v6094_v28  ;;  %vm616_vm4 = vcmp.eq.s32.totalorder %v128_v59, %v6199_v21  ;;  %v5509_v34 = vpop.f32.mrb[6].mxu0 }
 0x25f   :  { %v3247_v0 = vadd.f32 %v5379_v44, %v2859_v60  ;;  %v4692_v14 = vsel %vm228_vm3, 1.0, %v6094_v28  ;;  %v4787_v7 = vsel %vm615_vm1, 1.0, %v6094_v28  ;;  %v4788_v8 = vsel %vm616_vm4, 1.0, %v6094_v28  ;;  %v5510_v44 = vpop.f32.mrb[7].mxu0 }
 0x260   :  { %v3248_v9 = vadd.f32 %v5380_v58, %v2860_v3  ;;  %v903_v11 = vadd.f32 %v4787_v7, %v4691_v61  ;;  %v904_v32 = vadd.f32 %v4788_v8, %v4692_v14  ;;  %vm1004_vm5 = vcmp.eq.s32.totalorder %v128_v59, %v6201_v22  ;;  %v5512_v60 = vpop.f32.mrb[8].mxu0 }
 0x261   :  { %v4883_v46 = vsel %vm1003_vm2, 1.0, %v6094_v28  ;;  %v4884_v20 = vsel %vm1004_vm5, 1.0, %v6094_v28  ;;  %vm1391_vm6 = vcmp.eq.s32.totalorder %v127_v19, %v6203_v23  ;;  %vm1392_vm7 = vcmp.eq.s32.totalorder %v128_v59, %v6203_v23 }
 0x262   :  { %v3296_v21 = vpack.c.bf16 %v3248_v9, %v3247_v0  ;;  %v1291_v15 = vadd.f32 %v4883_v46, %v903_v11  ;;  %v1292_v33 = vadd.f32 %v4884_v20, %v904_v32  ;;  %v4979_v29 = vsel %vm1391_vm6, 1.0, %v6094_v28  ;;  %v5513_v0 = vpop.f32.mrb[9].mxu0  ;;  %v5963_v20 = vld [vmem:[#allocation3 + $0x40] ss:$24 sps:$4 sm:$0xff]  }
 0x263   :  { %v4980_v30 = vsel %vm1392_vm7, 1.0, %v6094_v28  ;;  %vm1779_vm8 = vcmp.eq.s32.totalorder %v127_v19, %v6205_v24  ;;  %vm1780_vm9 = vcmp.eq.s32.totalorder %v128_v59, %v6205_v24  ;;  %vm2167_vm10 = vcmp.eq.s32.totalorder %v127_v19, %v6207_v25  ;;  %v5515_v8 = vpop.f32.mrb[10].mxu0 }
 0x264   :  { %5722 = vmatprep.subr.bf16.mxu0 %v3296_v21  ;;  %v1679_v22 = vadd.f32 %v4979_v29, %v1291_v15  ;;  %v1680_v37 = vadd.f32 %v4980_v30, %v1292_v33  ;;  %v5075_v41 = vsel %vm1779_vm8, 1.0, %v6094_v28  ;;  %v5076_v23 = vsel %vm1780_vm9, 1.0, %v6094_v28  ;;  %v5516_v32 = vpop.f32.mrb[11].mxu0  ;;  %v5966_v30 = vld [vmem:[#allocation3 + $0x74] ss:$24 sps:$4 sm:$0xff]  }
 0x265   :  { %vm2168_vm11 = vcmp.eq.s32.totalorder %v128_v59, %v6207_v25  ;;  %v5171_v10 = vsel %vm2167_vm10, 1.0, %v6094_v28  ;;  %vm2555_vm12 = vcmp.eq.s32.totalorder %v127_v19, %v6209_v26  ;;  %vm2556_vm13 = vcmp.eq.s32.totalorder %v128_v59, %v6209_v26  ;;  %v5518_v15 = vpop.f32.mrb[12].mxu0 }
 0x266   :  { %v2067_v38 = vadd.f32 %v5075_v41, %v1679_v22  ;;  %v2068_v39 = vadd.f32 %v5076_v23, %v1680_v37  ;;  %v5172_v24 = vsel %vm2168_vm11, 1.0, %v6094_v28  ;;  %v5267_v35 = vsel %vm2555_vm12, 1.0, %v6094_v28  ;;  %v5519_v22 = vpop.f32.mrb[13].mxu0 }
 0x267   :  { %v5268_v16 = vsel %vm2556_vm13, 1.0, %v6094_v28  ;;  %vm2943_vm14 = vcmp.eq.s32.totalorder %v127_v19, %v6211_v27  ;;  %vm2944_vm15 = vcmp.eq.s32.totalorder %v128_v59, %v6211_v27  ;;  %v8292_v47 = vadd.f32 %v5561_v62, %v5560_v63  ;;  %v5563_v27 = vpop.f32.mrb[2].mxu1  ;;  %v5521_v23 = vpop.f32.mrb[14].mxu0 }
 0x268   :  { %v2455_v1 = vadd.f32 %v5171_v10, %v2067_v38  ;;  %v2456_v25 = vadd.f32 %v5172_v24, %v2068_v39  ;;  %v5363_v42 = vsel %vm2943_vm14, 1.0, %v6094_v28  ;;  %v5364_v12 = vsel %vm2944_vm15, 1.0, %v6094_v28  ;;  %v5564_v50 = vpop.f32.mrb[3].mxu1  ;;  %v5522_v39 = vpop.f32.mrb[15].mxu0 }
 0x269   :  { %v8294_v18 = vadd.f32 %v5504_v49, %v5503_v45  ;;  %v8296_v53 = vadd.f32 %v5564_v50, %v5563_v27  ;;  %v5566_v54 = vpop.f32.mrb[4].mxu1  ;;  %v8298_v4 = vadd.f32 %v5507_v56, %v5506_v52  ;;  %v8302_v59 = vadd.f32 %v5510_v44, %v5509_v34  ;;  %v5972_v49 = vld [vmem:[#allocation3 + $0xa4] ss:$24 sps:$4 sm:$0xff]  }
 0x26a   :  { %v2843_v6 = vadd.f32 %v5267_v35, %v2455_v1  ;;  %v2844_v26 = vadd.f32 %v5268_v16, %v2456_v25  ;;  %v5567_v13 = vpop.f32.mrb[5].mxu1  ;;  %v8306_v7 = vadd.f32 %v5513_v0, %v5512_v60  ;;  %v8310_v21 = vadd.f32 %v5516_v32, %v5515_v8  ;;  %v5524_v16 = vpop.f32.mrb[16].mxu0 }
 0x26b   :  { %v8300_v19 = vadd.f32 %v5567_v13, %v5566_v54  ;;  %v5569_v57 = vpop.f32.mrb[6].mxu1  ;;  %v8314_v41 = vadd.f32 %v5519_v22, %v5518_v15  ;;  %v8318_v35 = vadd.f32 %v5522_v39, %v5521_v23  ;;  %v5975_v15 = vld [vmem:[#allocation3 + $0xa0] ss:$24 sps:$4 sm:$0xff]   ;;  %v5978_v23 = vld [vmem:[#allocation3 + $0xd4] ss:$24 sps:$4 sm:$0xff]   ;;  %vm6096_vm0 = vmmov 0  }
 0x26c   :  { %v3231_v51 = vadd.f32 %v5363_v42, %v2843_v6  ;;  %v3232_v40 = vadd.f32 %v5364_v12, %v2844_v26  ;;  %v5570_v58 = vpop.f32.mrb[7].mxu1  ;;  %v5525_v42 = vpop.f32.mrb[17].mxu0  ;;  %vm4494_vm1 = vcmask 261120   ;;  %vm4553_vm2 = vcmask 130048  }
 0x26d   :  { %v8304_v3 = vadd.f32 %v5570_v58, %v5569_v57  ;;  %v5572_v61 = vpop.f32.mrb[8].mxu1  ;;  %v8322_v6 = vadd.f32 %v5525_v42, %v5524_v16  ;;  %v5527_v26 = vpop.f32.mrb[18].mxu0 }
 0x26e   :  { %v3288_v48 = vpack.c.bf16 %v3232_v40, %v3231_v51  ;;  %v5573_v14 = vpop.f32.mrb[9].mxu1  ;;  %v5528_v51 = vpop.f32.mrb[19].mxu0 }
 0x26f   :  { %v8308_v9 = vadd.f32 %v5573_v14, %v5572_v61  ;;  %v5575_v11 = vpop.f32.mrb[10].mxu1  ;;  %v8326_v62 = vadd.f32 %v5528_v51, %v5527_v26  ;;  %v5530_v45 = vpop.f32.mrb[20].mxu0 }
 0x270   :  { %5723 = vmatpush3.bf16.msra.mxu0 %v3288_v48  ;;  %v5576_v46 = vpop.f32.mrb[11].mxu1  ;;  %v5531_v50 = vpop.f32.mrb[21].mxu0 }
 0x271   :  { %v8312_v33 = vadd.f32 %v5576_v46, %v5575_v11  ;;  %v5578_v29 = vpop.f32.mrb[12].mxu1  ;;  %v8330_v52 = vadd.f32 %v5531_v50, %v5530_v45  ;;  %v5533_v54 = vpop.f32.mrb[22].mxu0 }
 0x272   :  { %v5579_v37 = vpop.f32.mrb[13].mxu1  ;;  %v5534_v13 = vpop.f32.mrb[23].mxu0 }
 0x273   :  { %4228 = vmatmul.mubr.bf16.vlgmr.msra.gmra.mrb[40].mxu0 %v5954_v17  ;;  %v8316_v10 = vadd.f32 %v5579_v37, %v5578_v29  ;;  %v5581_v38 = vpop.f32.mrb[14].mxu1  ;;  %v8334_v57 = vadd.f32 %v5534_v13, %v5533_v54  ;;  %v5536_v58 = vpop.f32.mrb[24].mxu0 }
 0x274   :  { %4235 = vmatprep.mubr.bf16.mxu0 %v5960_v55  ;;  %v5582_v24 = vpop.f32.mrb[15].mxu1  ;;  %v5537_v61 = vpop.f32.mrb[25].mxu0 }
 0x275   :  { %v8320_v1 = vadd.f32 %v5582_v24, %v5581_v38  ;;  %v5584_v25 = vpop.f32.mrb[16].mxu1  ;;  %v8338_v14 = vadd.f32 %v5537_v61, %v5536_v58  ;;  %v5539_v11 = vpop.f32.mrb[26].mxu0 }
 0x276   :  { %v5585_v12 = vpop.f32.mrb[17].mxu1  ;;  %v5540_v46 = vpop.f32.mrb[27].mxu0 }
 0x277   :  { %v8324_v31 = vadd.f32 %v5585_v12, %v5584_v25  ;;  %v5587_v63 = vpop.f32.mrb[18].mxu1  ;;  %v5542_v37 = vpop.f32.mrb[28].mxu0 }
 0x278   :  { %v5588_v40 = vpop.f32.mrb[19].mxu1  ;;  %v5543_v38 = vpop.f32.mrb[29].mxu0 }
 0x279   :  { %v8328_v27 = vadd.f32 %v5588_v40, %v5587_v63  ;;  %v5590_v48 = vpop.f32.mrb[20].mxu1  ;;  %v8348_v24 = vadd.f32 %v5543_v38, %v5542_v37  ;;  %v5545_v16 = vpop.f32.mrb[30].mxu0 }
 0x27a   :  { %v5591_v17 = vpop.f32.mrb[21].mxu1  ;;  %v5546_v42 = vpop.f32.mrb[31].mxu0 }
 0x27b   :  { %4236 = vmatmul.mubr.bf16.gmra.mrb[44].mxu0 %v5963_v20  ;;  %v8332_v55 = vadd.f32 %v5591_v17, %v5590_v48  ;;  %v5593_v56 = vpop.f32.mrb[22].mxu1  ;;  %v8350_v26 = vadd.f32 %v5546_v42, %v5545_v16  ;;  %v5981_v17 = vld [vmem:[#allocation3 + $0xd0] ss:$24 sps:$4 sm:$0xff]  }
 0x27c   :  { %4243 = vmatprep.mubr.bf16.mxu0 %v5966_v30  ;;  %v5594_v34 = vpop.f32.mrb[23].mxu1  ;;  %v8343_v30 = vadd.f32 %v5540_v46, %v5539_v11  ;;  %v5987_v46 = vld [vmem:[#allocation3 + $0x100] ss:$24 sps:$4 sm:$0xff]  }
 0x27d   :  { %v8336_v44 = vadd.f32 %v5594_v34, %v5593_v56  ;;  %v5984_v56 = vld [vmem:[#allocation3 + $0x104] ss:$24 sps:$4 sm:$0xff]  }
 0x282   :  { %v5612_v60 = vpop.f32.mrb[24].mxu1 }
 0x283   :  { %4244 = vmatmul.mubr.bf16.gmra.mrb[48].mxu0 %v5969_v43  ;;  %v5613_v0 = vpop.f32.mrb[25].mxu1 }
 0x284   :  { %4251 = vmatprep.mubr.bf16.mxu0 %v5972_v49  ;;  %v5614_v8 = vadd.f32 %v5613_v0, %v5612_v60  ;;  %v5615_v32 = vpop.f32.mrb[26].mxu1 }
 0x285   :  { %v5616_v20 = vpop.f32.mrb[27].mxu1 }
 0x286   :  { %v8341_v29 = vadd.f32 %v5614_v8, %v8290_v36  ;;  %v5617_v22 = vadd.f32 %v5616_v20, %v5615_v32  ;;  %v5548_v36 = vpop.f32.mrb[32].mxu0 }
 0x287   :  { %v5549_v40 = vpop.f32.mrb[33].mxu0 }
 0x288   :  { %v8346_v39 = vadd.f32 %v5617_v22, %v8294_v18  ;;  %v8352_v45 = vadd.f32 %v5549_v40, %v5548_v36  ;;  %v5551_v48 = vpop.f32.mrb[34].mxu0  ;;  %v5990_v22 = vld [vmem:[#allocation3 + $0x134] ss:$24 sps:$4 sm:$0xff]  }
 0x289   :  { %v5552_v50 = vpop.f32.mrb[35].mxu0 }
 0x28a   :  { %v5618_v25 = vpop.f32.mrb[28].mxu1  ;;  %v8357_v54 = vadd.f32 %v5552_v50, %v5551_v48  ;;  %v6005_v48 = vld [vmem:[#allocation3 + $0x190] ss:$24 sps:$4 sm:$0xff]   ;;  %v6011_v50 = vld [vmem:[#allocation3 + $0x1c0] ss:$24 sps:$4 sm:$0xff]  }
 0x28b   :  { %4252 = vmatmul.mubr.bf16.gmra.mrb[52].mxu0 %v5975_v15  ;;  %v5619_v12 = vpop.f32.mrb[29].mxu1 }
 0x28c   :  { %4259 = vmatprep.mubr.bf16.mxu0 %v5978_v23  ;;  %v5620_v63 = vadd.f32 %v5619_v12, %v5618_v25  ;;  %v5621_v51 = vpop.f32.mrb[30].mxu1 }
 0x28d   :  { %v5622_v43 = vpop.f32.mrb[31].mxu1 }
 0x28e   :  { %v8355_v18 = vadd.f32 %v5620_v63, %v8298_v4  ;;  %v5623_v49 = vadd.f32 %v5622_v43, %v5621_v51  ;;  %v5993_v63 = vld [vmem:[#allocation3 + $0x130] ss:$24 sps:$4 sm:$0xff]   ;;  %v5996_v51 = vld [vmem:[#allocation3 + $0x164] ss:$24 sps:$4 sm:$0xff]   ;;  %v6002_v43 = vld [vmem:[#allocation3 + $0x194] ss:$24 sps:$4 sm:$0xff]  }
 0x28f   :  { %v5554_v8 = vpop.f32.mrb[36].mxu0 }
 0x290   :  { %v8360_v13 = vadd.f32 %v5623_v49, %v8302_v59  ;;  %v5555_v32 = vpop.f32.mrb[37].mxu0  ;;  %v6008_v49 = vld [vmem:[#allocation3 + $0x1c4] ss:$24 sps:$4 sm:$0xff]  }
 0x291   :  { %v8365_v20 = vadd.f32 %v5555_v32, %v5554_v8  ;;  %v5557_v15 = vpop.f32.mrb[38].mxu0 }
 0x292   :  { %v5624_v34 = vpop.f32.mrb[32].mxu1  ;;  %v5558_v37 = vpop.f32.mrb[39].mxu0 }
 0x293   :  { %4260 = vmatmul.mubr.bf16.gmra.mrb[56].mxu0 %v5981_v17  ;;  %v5625_v58 = vpop.f32.mrb[33].mxu1  ;;  %v8370_v23 = vadd.f32 %v5558_v37, %v5557_v15  ;;  %v6014_v17 = vld [vmem:[#allocation3 + $0x1f4] ss:$24 sps:$4 sm:$0xff]  }
 0x294   :  { %4267 = vmatprep.mubr.bf16.mxu0 %v5984_v56  ;;  %v5626_v60 = vadd.f32 %v5625_v58, %v5624_v34  ;;  %v5627_v61 = vpop.f32.mrb[34].mxu1  ;;  %v6020_v56 = vld [vmem:[#allocation3 + $0x224] ss:$24 sps:$4 sm:$0xff]   ;;  %v6023_v34 = vld [vmem:[#allocation3 + $0x220] ss:$24 sps:$4 sm:$0xff]  }
 0x295   :  { %v5628_v0 = vpop.f32.mrb[35].mxu1 }
 0x296   :  { %v8363_v4 = vadd.f32 %v5626_v60, %v8306_v7  ;;  %v5629_v11 = vadd.f32 %v5628_v0, %v5627_v61  ;;  %v6024_v60 = vld [vmem:[#allocation3 + $0x254] ss:$24 sps:$4 sm:$0xff]  }
 0x298   :  { %v8368_v59 = vadd.f32 %v5629_v11, %v8310_v21  ;;  %v5999_v21 = vld [vmem:[#allocation3 + $0x160] ss:$24 sps:$4 sm:$0xff]  }
 0x29a   :  { %v5630_v38 = vpop.f32.mrb[36].mxu1 }
 0x29b   :  { %4268 = vmatmul.mubr.bf16.gmra.mrb[60].mxu0 %v5987_v46  ;;  %v5631_v16 = vpop.f32.mrb[37].mxu1 }
 0x29c   :  { %4275 = vmatprep.mubr.bf16.mxu0 %v5990_v22  ;;  %v5632_v25 = vadd.f32 %v5631_v16, %v5630_v38  ;;  %v5633_v7 = vpop.f32.mrb[38].mxu1  ;;  %v6026_v22 = vld [vmem:[#allocation3 + $0x250] ss:$24 sps:$4 sm:$0xff]   ;;  %v6027_v38 = vld [vmem:[#allocation3 + $0x284] ss:$24 sps:$4 sm:$0xff]  }
 0x29d   :  { %v5634_v42 = vpop.f32.mrb[39].mxu1 }
 0x29e   :  { %v8373_v12 = vadd.f32 %v5632_v25, %v8314_v41  ;;  %v5635_v36 = vadd.f32 %v5634_v42, %v5633_v7  ;;  %v6017_v41 = vld [vmem:[#allocation3 + $0x1f0] ss:$24 sps:$4 sm:$0xff]  }
 0x2a0   :  { %v8376_v40 = vadd.f32 %v5635_v36, %v8318_v35 }
 0x2a3   :  { %4276 = vmatmul.mubr.bf16.gmra.mrb[64].mxu0 %v5993_v63 }
 0x2a4   :  { %4283 = vmatprep.mubr.bf16.mxu0 %v5996_v51  ;;  %v6029_v51 = vld [vmem:[#allocation3 + $0x280] ss:$24 sps:$4 sm:$0xff]  }
 0x2ab   :  { %4284 = vmatmul.mubr.bf16.gmra.mrb[68].mxu0 %v5999_v21  ;;  %v6030_v21 = vld [vmem:[#allocation3 + $0x2b4] ss:$24 sps:$4 sm:$0xff]  }
 0x2ac   :  { %4291 = vmatprep.mubr.bf16.mxu0 %v6002_v43 }
 0x2b3   :  { %4292 = vmatmul.mubr.bf16.gmra.mrb[72].mxu0 %v6005_v48 }
 0x2b4   :  { %4299 = vmatprep.mubr.bf16.mxu0 %v6008_v49 }
 0x2b6   :  { %v5636_v35 = vpop.f32.mrb[40].mxu1 }
 0x2b7   :  { %v5637_v58 = vpop.f32.mrb[41].mxu1 }
 0x2b8   :  { %v5638_v61 = vadd.f32 %v5637_v58, %v5636_v35  ;;  %v5639_v0 = vpop.f32.mrb[42].mxu1  ;;  %v6033_v35 = vld [vmem:[#allocation3 + $0x2e4] ss:$24 sps:$4 sm:$0xff]  }
 0x2b9   :  { %v5640_v8 = vpop.f32.mrb[43].mxu1 }
 0x2ba   :  { %v8379_v11 = vadd.f32 %v5638_v61, %v8322_v6  ;;  %v5641_v32 = vadd.f32 %v5640_v8, %v5639_v0 }
 0x2bb   :  { %4300 = vmatmul.mubr.bf16.gmra.mrb[76].mxu0 %v6011_v50 }
 0x2bc   :  { %4307 = vmatprep.mubr.bf16.mxu0 %v6014_v17  ;;  %v8382_v46 = vadd.f32 %v5641_v32, %v8326_v62  ;;  %v6035_v32 = vld [vmem:[#allocation3 + $0x2e0] ss:$24 sps:$4 sm:$0xff]  }
 0x2be   :  { %v5642_v15 = vpop.f32.mrb[44].mxu1 }
 0x2bf   :  { %v5643_v37 = vpop.f32.mrb[45].mxu1 }
 0x2c0   :  { %v5644_v16 = vadd.f32 %v5643_v37, %v5642_v15  ;;  %v5645_v25 = vpop.f32.mrb[46].mxu1 }
 0x2c1   :  { %v5646_v7 = vpop.f32.mrb[47].mxu1 }
 0x2c2   :  { %v8385_v42 = vadd.f32 %v5644_v16, %v8330_v52  ;;  %v5647_v36 = vadd.f32 %v5646_v7, %v5645_v25 }
 0x2c3   :  { %4308 = vmatmul.mubr.bf16.gmra.mrb[80].mxu0 %v6017_v41 }
 0x2c4   :  { %4315 = vmatprep.mubr.bf16.mxu0 %v6020_v56  ;;  %v8388_v6 = vadd.f32 %v5647_v36, %v8334_v57  ;;  %v6032_v56 = vld [vmem:[#allocation3 + $0x2b0] ss:$24 sps:$4 sm:$0xff]  }
 0x2cb   :  { %4316 = vmatmul.mubr.bf16.gmra.mrb[84].mxu0 %v6023_v34 }
 0x2cc   :  { %4323 = vmatprep.mubr.bf16.mxu0 %v6024_v60 }
 0x2cd   :  { %v5648_v63 = vpop.f32.mrb[48].mxu1 }
 0x2ce   :  { %v5649_v62 = vpop.f32.mrb[49].mxu1 }
 0x2cf   :  { %v5650_v43 = vadd.f32 %v5649_v62, %v5648_v63  ;;  %v5651_v48 = vpop.f32.mrb[50].mxu1 }
 0x2d0   :  { %v5652_v49 = vpop.f32.mrb[51].mxu1 }
 0x2d1   :  { %v8391_v50 = vadd.f32 %v5650_v43, %v8338_v14  ;;  %v5653_v17 = vadd.f32 %v5652_v49, %v5651_v48 }
 0x2d3   :  { %4324 = vmatmul.mubr.bf16.gmra.mrb[88].mxu0 %v6026_v22  ;;  %v8394_v52 = vadd.f32 %v5653_v17, %v8343_v30 }
 0x2d4   :  { %4331 = vmatprep.mubr.bf16.mxu0 %v6027_v38 }
 0x2d5   :  { %v5654_v41 = vpop.f32.mrb[52].mxu1 }
 0x2d6   :  { %v5655_v57 = vpop.f32.mrb[53].mxu1 }
 0x2d7   :  { %v5656_v34 = vadd.f32 %v5655_v57, %v5654_v41  ;;  %v5657_v58 = vpop.f32.mrb[54].mxu1 }
 0x2d8   :  { %v5658_v60 = vpop.f32.mrb[55].mxu1 }
 0x2d9   :  { %v8397_v61 = vadd.f32 %v5656_v34, %v8348_v24  ;;  %v5659_v0 = vadd.f32 %v5658_v60, %v5657_v58 }
 0x2db   :  { %4332 = vmatmul.mubr.bf16.gmra.mrb[92].mxu0 %v6029_v51  ;;  %v8400_v14 = vadd.f32 %v5659_v0, %v8350_v26 }
 0x2dc   :  { %4339 = vmatprep.mubr.bf16.mxu0 %v6030_v21 }
 0x2dd   :  { %v5660_v8 = vpop.f32.mrb[56].mxu1 }
 0x2de   :  { %v5661_v30 = vpop.f32.mrb[57].mxu1 }
 0x2df   :  { %v5662_v15 = vadd.f32 %v5661_v30, %v5660_v8  ;;  %v5663_v22 = vpop.f32.mrb[58].mxu1 }
 0x2e0   :  { %v5664_v37 = vpop.f32.mrb[59].mxu1 }
 0x2e1   :  { %v8403_v38 = vadd.f32 %v5662_v15, %v8352_v45  ;;  %v5665_v16 = vadd.f32 %v5664_v37, %v5663_v22 }
 0x2e3   :  { %4340 = vmatmul.mubr.bf16.gmra.mrb[96].mxu0 %v6032_v56  ;;  %v8406_v24 = vadd.f32 %v5665_v16, %v8357_v54 }
 0x2e4   :  { %4347 = vmatprep.mubr.bf16.mxu0 %v6033_v35 }
 0x2e6   :  { %v5666_v25 = vpop.f32.mrb[60].mxu1 }
 0x2e7   :  { %v5667_v7 = vpop.f32.mrb[61].mxu1 }
 0x2e8   :  { %v5668_v36 = vadd.f32 %v5667_v7, %v5666_v25  ;;  %v5669_v63 = vpop.f32.mrb[62].mxu1 }
 0x2e9   :  { %v5670_v26 = vpop.f32.mrb[63].mxu1 }
 0x2ea   :  { %v8409_v51 = vadd.f32 %v5668_v36, %v8365_v20  ;;  %v5671_v62 = vadd.f32 %v5670_v26, %v5669_v63 }
 0x2eb   :  { %4348 = vmatmul.mubr.bf16.gmra.mrb[100].mxu0 %v6035_v32 }
 0x2ec   :  { %v8412_v21 = vadd.f32 %v5671_v62, %v8370_v23 }
 0x2ee   :  { %v5672_v43 = vpop.f32.mrb[64].mxu1 }
 0x2ef   :  { %v5673_v45 = vpop.f32.mrb[65].mxu1 }
 0x2f0   :  { %v5674_v48 = vadd.f32 %v5673_v45, %v5672_v43  ;;  %v5675_v49 = vpop.f32.mrb[66].mxu1 }
 0x2f1   :  { %v5676_v17 = vpop.f32.mrb[67].mxu1 }
 0x2f2   :  { %v8415_v54 = vadd.f32 %v5674_v48, %v8292_v47  ;;  %v5677_v41 = vadd.f32 %v5676_v17, %v5675_v49 }
 0x2f4   :  { %v8418_v56 = vadd.f32 %v5677_v41, %v8296_v53 }
 0x2f6   :  { %v5678_v57 = vpop.f32.mrb[68].mxu1 }
 0x2f7   :  { %v5679_v35 = vpop.f32.mrb[69].mxu1 }
 0x2f8   :  { %v5680_v20 = vadd.f32 %v5679_v35, %v5678_v57  ;;  %v5681_v34 = vpop.f32.mrb[70].mxu1 }
 0x2f9   :  { %v5682_v58 = vpop.f32.mrb[71].mxu1 }
 0x2fa   :  { %v8421_v23 = vadd.f32 %v5680_v20, %v8300_v19  ;;  %v5683_v60 = vadd.f32 %v5682_v58, %v5681_v34 }
 0x2fc   :  { %v8424_v0 = vadd.f32 %v5683_v60, %v8304_v3 }
 0x2fe   :  { %v5684_v8 = vpop.f32.mrb[72].mxu1 }
 0x2ff   :  { %v5685_v32 = vpop.f32.mrb[73].mxu1 }
 0x300   :  { %v5686_v47 = vadd.f32 %v5685_v32, %v5684_v8  ;;  %v5687_v30 = vpop.f32.mrb[74].mxu1 }
 0x301   :  { %v5688_v15 = vpop.f32.mrb[75].mxu1 }
 0x302   :  { %v8427_v53 = vadd.f32 %v5686_v47, %v8308_v9  ;;  %v5689_v22 = vadd.f32 %v5688_v15, %v5687_v30 }
 0x304   :  { %v8430_v37 = vadd.f32 %v5689_v22, %v8312_v33 }
 0x306   :  { %v5690_v16 = vpop.f32.mrb[76].mxu1 }
 0x307   :  { %v5691_v25 = vpop.f32.mrb[77].mxu1 }
 0x308   :  { %v5692_v19 = vadd.f32 %v5691_v25, %v5690_v16  ;;  %v5693_v7 = vpop.f32.mrb[78].mxu1 }
 0x309   :  { %v5694_v36 = vpop.f32.mrb[79].mxu1 }
 0x30a   :  { %v8433_v3 = vadd.f32 %v5692_v19, %v8316_v10  ;;  %v5695_v63 = vadd.f32 %v5694_v36, %v5693_v7 }
 0x30c   :  { %v8436_v26 = vadd.f32 %v5695_v63, %v8320_v1 }
 0x30e   :  { %v5696_v62 = vpop.f32.mrb[80].mxu1 }
 0x30f   :  { %v5697_v43 = vpop.f32.mrb[81].mxu1 }
 0x310   :  { %v5698_v9 = vadd.f32 %v5697_v43, %v5696_v62  ;;  %v5699_v45 = vpop.f32.mrb[82].mxu1  ;;  %v4378_v62 = vld [vmem:[%s8614_s3 + $0x10] sm:$0xff]  ;;  %v6095_v43 = vmov 0  }
 0x311   :  { %v5700_v48 = vpop.f32.mrb[83].mxu1  ;;  %5890 = vset.pattern.permute.xlu0 %v6095_v43  ;;  %5891 = vset.pattern.permute.xlu1 %v6095_v43 }
 0x312   :  { %v8439_v33 = vadd.f32 %v5698_v9, %v8324_v31  ;;  %v5701_v49 = vadd.f32 %v5700_v48, %v5699_v45  ;;  %4392 = vperm.xlu1 %5891, %v4378_v62   ;;  %v4379_v48 = vld [vmem:[%s8614_s3 + $0x18] sm:$0xff] }
 0x314   :  { %v8442_v17 = vadd.f32 %v5701_v49, %v8328_v27  ;;  %v6038_v27 = vld [vmem:[%s8613_s2 + $0x4] ss:$8 sps:$4 sm:$0xff]  }
 0x315   :  { %4452 = vmatprep.mubr.bf16.mxu1 %v6038_v27 }
 0x316   :  { %v5702_v41 = vpop.f32.mrb[84].mxu1  ;;  %4397 = vperm.xlu1 %5891, %v4379_v48  }
 0x317   :  { %v5703_v57 = vpop.f32.mrb[85].mxu1 }
 0x318   :  { %v5704_v10 = vadd.f32 %v5703_v57, %v5702_v41  ;;  %v5705_v35 = vpop.f32.mrb[86].mxu1 }
 0x319   :  { %v5706_v20 = vpop.f32.mrb[87].mxu1 }
 0x31a   :  { %v8445_v1 = vadd.f32 %v5704_v10, %v8332_v55  ;;  %v5707_v34 = vadd.f32 %v5706_v20, %v5705_v35  ;;  %v4477_v20 = vld [vmem:[%s8616_s5] sm:$0xff] }
 0x31c   :  { %v8448_v58 = vadd.f32 %v5707_v34, %v8336_v44  ;;  %v4478_v34 = vld [vmem:[%s8616_s5 + $0x8] sm:$0xff] }
 0x31d   :  { %4486 = vperm.xlu1 %5891, %v4478_v34  }
 0x346   :  { %v5724_v60 = vpop.f32.mrb[40].mxu0 }
 0x347   :  { %v5725_v8 = vpop.f32.mrb[41].mxu0 }
 0x348   :  { %v5726_v31 = vadd.f32 %v5725_v8, %v5724_v60  ;;  %v5727_v32 = vpop.f32.mrb[42].mxu0 }
 0x349   :  { %v5728_v47 = vpop.f32.mrb[43].mxu0 }
 0x34a   :  { %v8454_v30 = vadd.f32 %v5726_v31, %v8341_v29  ;;  %v5729_v15 = vadd.f32 %v5728_v47, %v5727_v32  ;;  %v4543_v32 = vld [vmem:[#allocation2] sm:$0x1] }
 0x34c   :  { %v8457_v55 = vadd.f32 %v5729_v15, %v8346_v39  ;;  %v4376_v39 = vld [vmem:[%s8614_s3] sm:$0xff] }
 0x34d   :  { %4382 = vperm.xlu0 %5890, %v4376_v39  }
 0x34e   :  { %v4356_v44 = vpack.c.bf16 %v8457_v55, %v8454_v30  ;;  %v5730_v22 = vpop.f32.mrb[44].mxu0 }
 0x34f   :  { %v5731_v16 = vpop.f32.mrb[45].mxu0 }
 0x350   :  { %v5732_v25 = vadd.f32 %v5731_v16, %v5730_v22  ;;  %v5733_v19 = vpop.f32.mrb[46].mxu0 }
 0x351   :  { %v5734_v7 = vpop.f32.mrb[47].mxu0 }
 0x352   :  { %v8462_v36 = vadd.f32 %v5732_v25, %v8355_v18  ;;  %v5735_v63 = vadd.f32 %v5734_v7, %v5733_v19 }
 0x354   :  { %v8465_v29 = vadd.f32 %v5735_v63, %v8360_v13  ;;  %v4377_v13 = vld [vmem:[%s8614_s3 + $0x8] sm:$0xff] }
 0x355   :  { %4387 = vperm.xlu0 %5890, %v4377_v13  }
 0x356   :  { %v4357_v9 = vpack.c.bf16 %v8465_v29, %v8462_v36  ;;  %v5736_v18 = vpop.f32.mrb[48].mxu0 }
 0x357   :  { %v5737_v45 = vpop.f32.mrb[49].mxu0 }
 0x358   :  { %v5738_v49 = vadd.f32 %v5737_v45, %v5736_v18  ;;  %v5739_v41 = vpop.f32.mrb[50].mxu0 }
 0x359   :  { %v5740_v57 = vpop.f32.mrb[51].mxu0  ;;  %4481 = vperm.xlu0 %5890, %v4477_v20  }
 0x35a   :  { %v8482_v10 = vadd.f32 %v5738_v49, %v8363_v4  ;;  %v5741_v35 = vadd.f32 %v5740_v57, %v5739_v41 }
 0x35c   :  { %v8491_v60 = vadd.f32 %v5741_v35, %v8368_v59 }
 0x35d   :  { %4546 = vperm.xlu0 %5890, %v4543_v32  }
 0x35e   :  { %v4358_v8 = vpack.c.bf16 %v8491_v60, %v8482_v10  ;;  %v5742_v31 = vpop.f32.mrb[52].mxu0 }
 0x35f   :  { %v5743_v4 = vpop.f32.mrb[53].mxu0 }
 0x360   :  { %v5744_v47 = vadd.f32 %v5743_v4, %v5742_v31  ;;  %v5745_v27 = vpop.f32.mrb[54].mxu0 }
 0x361   :  { %v5746_v15 = vpop.f32.mrb[55].mxu0 }
 0x362   :  { %v8496_v22 = vadd.f32 %v5744_v47, %v8373_v12  ;;  %v5747_v16 = vadd.f32 %v5746_v15, %v5745_v27 }
 0x364   :  { %v8499_v25 = vadd.f32 %v5747_v16, %v8376_v40 }
 0x366   :  { %v4359_v59 = vpack.c.bf16 %v8499_v25, %v8496_v22  ;;  %v5748_v19 = vpop.f32.mrb[56].mxu0 }
 0x367   :  { %v5749_v7 = vpop.f32.mrb[57].mxu0 }
 0x368   :  { %v5750_v63 = vadd.f32 %v5749_v7, %v5748_v19  ;;  %v5751_v39 = vpop.f32.mrb[58].mxu0 }
 0x369   :  { %v5752_v62 = vpop.f32.mrb[59].mxu0 }
 0x36a   :  { %v8504_v43 = vadd.f32 %v5750_v63, %v8379_v11  ;;  %v5753_v18 = vadd.f32 %v5752_v62, %v5751_v39 }
 0x36c   :  { %v8507_v12 = vadd.f32 %v5753_v18, %v8382_v46 }
 0x36e   :  { %v4360_v45 = vpack.c.bf16 %v8507_v12, %v8504_v43  ;;  %v5754_v40 = vpop.f32.mrb[60].mxu0 }
 0x36f   :  { %v5755_v13 = vpop.f32.mrb[61].mxu0 }
 0x370   :  { %v5756_v48 = vadd.f32 %v5755_v13, %v5754_v40  ;;  %v5757_v49 = vpop.f32.mrb[62].mxu0 }
 0x371   :  { %v5758_v41 = vpop.f32.mrb[63].mxu0 }
 0x372   :  { %v8512_v57 = vadd.f32 %v5756_v48, %v8385_v42  ;;  %v5759_v35 = vadd.f32 %v5758_v41, %v5757_v49 }
 0x374   :  { %v8515_v20 = vadd.f32 %v5759_v35, %v8388_v6 }
 0x376   :  { %v4361_v11 = vpack.c.bf16 %v8515_v20, %v8512_v57  ;;  %v5760_v46 = vpop.f32.mrb[64].mxu0 }
 0x377   :  { %v5761_v34 = vpop.f32.mrb[65].mxu0 }
 0x378   :  { %v5762_v31 = vadd.f32 %v5761_v34, %v5760_v46  ;;  %v5763_v4 = vpop.f32.mrb[66].mxu0 }
 0x379   :  { %v5764_v32 = vpop.f32.mrb[67].mxu0 }
 0x37a   :  { %v8520_v47 = vadd.f32 %v5762_v31, %v8391_v50  ;;  %v5765_v27 = vadd.f32 %v5764_v32, %v5763_v4 }
 0x37c   :  { %v8523_v15 = vadd.f32 %v5765_v27, %v8394_v52 }
 0x37e   :  { %v4362_v42 = vpack.c.bf16 %v8523_v15, %v8520_v47  ;;  %v5766_v6 = vpop.f32.mrb[68].mxu0 }
 0x37f   :  { %v5767_v16 = vpop.f32.mrb[69].mxu0 }
 0x380   :  { %v5768_v19 = vadd.f32 %v5767_v16, %v5766_v6  ;;  %v5769_v7 = vpop.f32.mrb[70].mxu0 }
 0x381   :  { %v5770_v63 = vpop.f32.mrb[71].mxu0 }
 0x382   :  { %v8528_v39 = vadd.f32 %v5768_v19, %v8397_v61  ;;  %v5771_v62 = vadd.f32 %v5770_v63, %v5769_v7 }
 0x384   :  { %v8531_v18 = vadd.f32 %v5771_v62, %v8400_v14 }
 0x386   :  { %v4363_v50 = vpack.c.bf16 %v8531_v18, %v8528_v39  ;;  %v5772_v52 = vpop.f32.mrb[72].mxu0 }
 0x387   :  { %v5773_v40 = vpop.f32.mrb[73].mxu0 }
 0x388   :  { %v5774_v13 = vadd.f32 %v5773_v40, %v5772_v52  ;;  %v5775_v48 = vpop.f32.mrb[74].mxu0 }
 0x389   :  { %v5776_v49 = vpop.f32.mrb[75].mxu0 }
 0x38a   :  { %v4294_v41 = vadd.f32 %v5774_v13, %v8403_v38  ;;  %v5777_v35 = vadd.f32 %v5776_v49, %v5775_v48 }
 0x38c   :  { %v4297_v46 = vadd.f32 %v5777_v35, %v8406_v24 }
 0x38e   :  { %v5778_v34 = vpop.f32.mrb[76].mxu0  ;;  %v4364_v61 = vpack.c.bf16 %v4297_v46, %v4294_v41 }
 0x38f   :  { %v5779_v31 = vpop.f32.mrb[77].mxu0 }
 0x390   :  { %v5780_v4 = vadd.f32 %v5779_v31, %v5778_v34  ;;  %v5781_v32 = vpop.f32.mrb[78].mxu0  ;;  %5820 = vmatprep.subr.bf16.mxu1 %v4364_v61 }
 0x391   :  { %v5782_v14 = vpop.f32.mrb[79].mxu0  ;;  %5821 = vmatpush3.bf16.msra.mxu1 %v4356_v44 }
 0x392   :  { %v4302_v27 = vadd.f32 %v5780_v4, %v8409_v51  ;;  %v5783_v6 = vadd.f32 %v5782_v14, %v5781_v32 }
 0x394   :  { %v4305_v16 = vadd.f32 %v5783_v6, %v8412_v21 }
 0x396   :  { %v5784_v38 = vpop.f32.mrb[80].mxu0  ;;  %v4365_v19 = vpack.c.bf16 %v4305_v16, %v4302_v27 }
 0x397   :  { %v5785_v7 = vpop.f32.mrb[81].mxu0 }
 0x398   :  { %v5786_v24 = vadd.f32 %v5785_v7, %v5784_v38  ;;  %v5787_v63 = vpop.f32.mrb[82].mxu0  ;;  %5822 = vmatprep.subr.bf16.mxu1 %v4365_v19 }
 0x399   :  { %v5788_v62 = vpop.f32.mrb[83].mxu0  ;;  %5823 = vmatpush3.bf16.msra.mxu1 %v4357_v9 }
 0x39a   :  { %v4310_v52 = vadd.f32 %v5786_v24, %v8415_v54  ;;  %v5789_v30 = vadd.f32 %v5788_v62, %v5787_v63 }
 0x39c   :  { %v4313_v55 = vadd.f32 %v5789_v30, %v8418_v56  ;;  %v4393_v30 = vpop.permute.xlu1 %4392 }
 0x39e   :  { %v5790_v51 = vpop.f32.mrb[84].mxu0  ;;  %v4366_v44 = vpack.c.bf16 %v4313_v55, %v4310_v52 }
 0x39f   :  { %v5791_v40 = vpop.f32.mrb[85].mxu0 }
 0x3a0   :  { %v5792_v21 = vadd.f32 %v5791_v40, %v5790_v51  ;;  %v5793_v13 = vpop.f32.mrb[86].mxu0  ;;  %5824 = vmatprep.subr.bf16.mxu1 %v4366_v44 }
 0x3a1   :  { %v5794_v48 = vpop.f32.mrb[87].mxu0  ;;  %5825 = vmatpush3.bf16.msra.mxu1 %v4358_v8 }
 0x3a2   :  { %v4318_v49 = vadd.f32 %v5792_v21, %v8421_v23  ;;  %v5795_v36 = vadd.f32 %v5794_v48, %v5793_v13 }
 0x3a4   :  { %v4321_v29 = vadd.f32 %v5795_v36, %v8424_v0 }
 0x3a6   :  { %v5796_v54 = vpop.f32.mrb[88].mxu0  ;;  %v4367_v9 = vpack.c.bf16 %v4321_v29, %v4318_v49 }
 0x3a7   :  { %v5797_v41 = vpop.f32.mrb[89].mxu0 }
 0x3a8   :  { %v5798_v56 = vadd.f32 %v5797_v41, %v5796_v54  ;;  %v5799_v35 = vpop.f32.mrb[90].mxu0  ;;  %5826 = vmatprep.subr.bf16.mxu1 %v4367_v9  ;;  %v4398_v54 = vpop.permute.xlu1 %4397 }
 0x3a9   :  { %v5800_v46 = vpop.f32.mrb[91].mxu0  ;;  %5827 = vmatpush3.bf16.msra.mxu1 %v4359_v59 }
 0x3aa   :  { %v4326_v34 = vadd.f32 %v5798_v56, %v8427_v53  ;;  %v5801_v10 = vadd.f32 %v5800_v46, %v5799_v35  ;;  %v6042_v46 = vld [vmem:[%s8615_s4] sm:$0xff]  }
 0x3ac   :  { %v4329_v60 = vadd.f32 %v5801_v10, %v8430_v37 }
 0x3ae   :  { %v5802_v23 = vpop.f32.mrb[92].mxu0  ;;  %v4368_v8 = vpack.c.bf16 %v4329_v60, %v4326_v34 }
 0x3af   :  { %v5803_v61 = vpop.f32.mrb[93].mxu0 }
 0x3b0   :  { %v5804_v0 = vadd.f32 %v5803_v61, %v5802_v23  ;;  %v5805_v31 = vpop.f32.mrb[94].mxu0  ;;  %5828 = vmatprep.subr.bf16.mxu1 %v4368_v8  ;;  %v4487_v8 = vpop.permute.xlu1 %4486 }
 0x3b1   :  { %v5806_v4 = vpop.f32.mrb[95].mxu0  ;;  %5829 = vmatpush3.bf16.msra.mxu1 %v4360_v45 }
 0x3b2   :  { %v4334_v32 = vadd.f32 %v5804_v0, %v8433_v3  ;;  %v5807_v22 = vadd.f32 %v5806_v4, %v5805_v31 }
 0x3b4   :  { %v4337_v25 = vadd.f32 %v5807_v22, %v8436_v26 }
 0x3b6   :  { %v5808_v53 = vpop.f32.mrb[96].mxu0  ;;  %v4369_v59 = vpack.c.bf16 %v4337_v25, %v4334_v32  ;;  %v4542_v25 = vld [vmem:[%s8617_s6] sm:$0x1] }
 0x3b7   :  { %v5809_v14 = vpop.f32.mrb[97].mxu0 }
 0x3b8   :  { %v5810_v37 = vadd.f32 %v5809_v14, %v5808_v53  ;;  %v5811_v27 = vpop.f32.mrb[98].mxu0  ;;  %5830 = vmatprep.subr.bf16.mxu1 %v4369_v59 }
 0x3b9   :  { %v5812_v6 = vpop.f32.mrb[99].mxu0  ;;  %5831 = vmatpush3.bf16.msra.mxu1 %v4361_v11  ;;  %v6039_v11 = vld [vmem:[%s8613_s2 + $0x14] ss:$8 sps:$4 sm:$0xff]  }
 0x3ba   :  { %v4342_v16 = vadd.f32 %v5810_v37, %v8439_v33  ;;  %v5813_v43 = vadd.f32 %v5812_v6, %v5811_v27 }
 0x3bc   :  { %v4345_v12 = vadd.f32 %v5813_v43, %v8442_v17  ;;  %v6036_v17 = vld [vmem:[%s8613_s2] ss:$8 sps:$4 sm:$0xff]  }
 0x3be   :  { %v5814_v3 = vpop.f32.mrb[100].mxu0  ;;  %v4370_v45 = vpack.c.bf16 %v4345_v12, %v4342_v16 }
 0x3bf   :  { %v5815_v38 = vpop.f32.mrb[101].mxu0 }
 0x3c0   :  { %v5816_v26 = vadd.f32 %v5815_v38, %v5814_v3  ;;  %v5817_v19 = vpop.f32.mrb[102].mxu0  ;;  %5832 = vmatprep.subr.bf16.mxu1 %v4370_v45 }
 0x3c1   :  { %v5818_v7 = vpop.f32.mrb[103].mxu0  ;;  %5833 = vmatpush3.bf16.msra.mxu1 %v4362_v42 }
 0x3c2   :  { %v4350_v24 = vadd.f32 %v5816_v26, %v8445_v1  ;;  %v5819_v57 = vadd.f32 %v5818_v7, %v5817_v19  ;;  %v6041_v1 = vld [vmem:[%s8613_s2 + $0x10] ss:$8 sps:$4 sm:$0xff]  }
 0x3c4   :  { %v4353_v20 = vadd.f32 %v5819_v57, %v8448_v58 }
 0x3c6   :  { %v4371_v33 = vpack.c.bf16 %v4353_v20, %v4350_v24 }
 0x3c8   :  { %5834 = vmatprep.subr.bf16.mxu1 %v4371_v33 }
 0x3c9   :  { %5835 = vmatpush3.bf16.msra.mxu1 %v4363_v50 }
 0x3ca   :  { %5853 = vmatprep.subr.bf16.mxu1 %v6094_v28 }
 0x3cc   :  { %4453 = vmatmul.mubr.bf16.vlgmr.msra.gmra.mrb[88].mxu1 %v6036_v17  ;;  %v4383_v58 = vpop.permute.xlu0 %4382 }
 0x3cd   :  { %4460 = vmatprep.mubr.bf16.mxu1 %v6039_v11 }
 0x3d4   :  { %4461 = vmatmul.mubr.bf16.gmra.mrb[92].mxu1 %v6041_v1  ;;  %v4388_v62 = vpop.permute.xlu0 %4387 }
 0x3d5   :  { %5857 = vmatprep.mubr.msk.bf16.mxu1 %vm6096_vm0, %v6094_v28 }
 0x3d8   :  { %v4482_v34 = vpop.permute.xlu0 %4481 }
 0x3dc   :  { %v4547_v53 = vpop.permute.xlu0 %4546 }
 0x49f   :  { %v5836_v47 = vpop.f32.mrb[88].mxu1 }
 0x4a0   :  { %v5837_v15 = vpop.f32.mrb[89].mxu1 }
 0x4a1   :  { %v5838_v42 = vadd.f32 %v5837_v15, %v5836_v47  ;;  %v5839_v39 = vpop.f32.mrb[90].mxu1 }
 0x4a2   :  { %v5840_v18 = vpop.f32.mrb[91].mxu1 }
 0x4a3   :  { %v4455_v50 = vadd.f32 %v5838_v42, %v4383_v58  ;;  %v5841_v63 = vadd.f32 %v5840_v18, %v5839_v39 }
 0x4a5   :  { %v4458_v52 = vadd.f32 %v5841_v63, %v4388_v62  ;;  %v4469_v55 = vmax.f32 %v4455_v50, 0.0 }
 0x4a7   :  { %v5842_v51 = vpop.f32.mrb[92].mxu1  ;;  %v4470_v44 = vmax.f32 %v4458_v52, 0.0 }
 0x4a8   :  { %v5843_v40 = vpop.f32.mrb[93].mxu1 }
 0x4a9   :  { %v4473_v21 = vpack.c.bf16 %v4470_v44, %v4469_v55  ;;  %v5844_v13 = vadd.f32 %v5843_v40, %v5842_v51  ;;  %v5845_v48 = vpop.f32.mrb[94].mxu1 }
 0x4aa   :  { %v5846_v49 = vpop.f32.mrb[95].mxu1 }
 0x4ab   :  { %v4463_v36 = vadd.f32 %v5844_v13, %v4393_v30  ;;  %v5847_v29 = vadd.f32 %v5846_v49, %v5845_v48  ;;  %5854 = vmatpush3.bf16.msra.mxu1 %v4473_v21 }
 0x4ac   :  { %5855 = vmatprep.subr.bf16.mxu1 %v6094_v28 }
 0x4ad   :  { %v4466_v9 = vadd.f32 %v5847_v29, %v4398_v54  ;;  %v4471_v41 = vmax.f32 %v4463_v36, 0.0 }
 0x4af   :  { %v4472_v56 = vmax.f32 %v4466_v9, 0.0 }
 0x4b1   :  { %v4474_v35 = vpack.c.bf16 %v4472_v56, %v4471_v41 }
 0x4b3   :  { %5856 = vmatpush3.bf16.msra.mxu1 %v4474_v35 }
 0x4b4   :  { %5861 = vmatprep.subr.bf16.mxu1 %v6094_v28 }
 0x4b6   :  { %5858 = vmatmul.mubr.msk.bf16.vlgmr.msra.gmra.mrb[96].mxu1 %vm4494_vm1, %v6042_v46 }
 0x4b7   :  { %5863 = vmatprep.mubr.msk.bf16.mxu1 %vm6096_vm0, %v6094_v28  ;;  %v4552_v28 = vrot.slane %v4547_v53, %v147_v5 }
 0x589   :  { %v4532_v10 = vpop.f32.mrb[96].mxu1 }
 0x58a   :  { %v4533_v60 = vadd.f32 %v4532_v10, %v4482_v34  ;;  %v5859_v23 = vpop.f32.mrb[97].mxu1 }
 0x58b   :  { %v4535_v61 = vpop.f32.mrb[98].mxu1 }
 0x58c   :  { %v4536_v0 = vadd.f32 %v4535_v61, %v4487_v8  ;;  %v5860_v31 = vpop.f32.mrb[99].mxu1  ;;  %v4539_v4 = vmax.f32 %v4533_v60, 0.0 }
 0x58e   :  { %v4540_v32 = vmax.f32 %v4536_v0, 0.0 }
 0x590   :  { %v4541_v22 = vpack.c.bf16 %v4540_v32, %v4539_v4 }
 0x592   :  { %5862 = vmatpush3.bf16.msra.mxu1 %v4541_v22 }
 0x595   :  { %5864 = vmatmul.mubr.msk.bf16.vlgmr.msra.gmra.mrb[100].mxu1 %vm4553_vm2, %v4542_v25 }
 0x668   :  { %v4591_v59 = vpop.f32.mrb[100].mxu1 }
 0x669   :  { %v4592_v14 = vadd.f32 %v4591_v59, %v4552_v28  ;;  %v5865_v37 = vpop.f32.mrb[101].mxu1 }
 0x66a   :  { %v4594_v27 = vpop.f32.mrb[102].mxu1 }
 0x66b   :  { %4597 = vst [vmem:[#allocation6] sm:$0x1] %v4592_v14  ;;  %v5866_v6 = vpop.f32.mrb[103].mxu1 }
 0x66c   :  { %6076 = shalt.err (!%p6073_p12)
}
 0x66d   :  { %s6077_s0 = scalar_lea.hbm %s8619_s8, 16 }
 0x66e   :  { %p6078_p13 = scmp.ne.s32.totalorder %s8619_s8, %s6077_s0  ;;  %p6081_p0 = scmp.lt.u32.totalorder %s6077_s0, %s8619_s8 }
 0x670   :  { %p6083_p1 = pnand %p6081_p0, %p6078_p13 }
 0x672   :  { %6086 = shalt.err (!%p6083_p1)
}
 0x673   :  { %4607 = dma.vmem_to_hbm [thread:$0]  %s4605_s18, 16, %s8619_s8, [#allocation5]  }
 0x674   :  { %6089 = dma.done.wait [#allocation5], 16  }
 0x675   :  { %6090 = vsyncadd [#allocation5], 4294967280 }
 0x676   :  { %4611 = vsyncpa [#allocation4], 1 }
 0x677   :  { %4612 = vsyncpa [#allocation5], 1 }

</bundles_post_ra>
